<compile_context>
chip_gen: v5e
topology: v5e:2x2
jax: 0.10.0
libtpu: 0.0.40
codegen_flags: <defaults>
</compile_context>

<pallas_src>
import functools

import numpy as np
import jax
import jax.numpy as jnp
from jax.experimental import pallas as pl
from jax.experimental.pallas import tpu as pltpu

_HP = 128  # per-gate lane padding (hidden dim padded to one vreg width)


def _sigmoid(x):
    # sigmoid(x) = 0.5 * (tanh(x/2) + 1): single EUP tanh, scale/add on the VPU.
    return 0.5 * (jnp.tanh(0.5 * x) + 1.0)


def _gates_split(gates, hp):
    """Split fused pre-activations (rows, 4*hp), gate order [i, f, g, o]."""
    i = _sigmoid(gates[:, 0 * hp:1 * hp])
    f = _sigmoid(gates[:, 1 * hp:2 * hp])
    g = jnp.tanh(gates[:, 2 * hp:3 * hp])
    o = _sigmoid(gates[:, 3 * hp:4 * hp])
    return i, f, g, o


# ----------------------------------------------------------------------------
# Encoder kernel: masked variable-length LSTM over the observed trajectory.
# ----------------------------------------------------------------------------
def encoder_kernel(fhi_ref, obs_ref, wx_ref, bx_ref, wih_ref, whh_ref, bg_ref,
                   h_out_ref, c_out_ref, xih_scr):
    """fhi: (B_pad,1) i32; obs: (T*B_pad, 6) time-major, NaN-padded prefix.
    Outputs final (h, c) of shape (B_pad, Hp) in f32."""
    B_pad = fhi_ref.shape[0]
    Hp = whh_ref.shape[0]
    T = obs_ref.shape[0] // B_pad

    fhi = fhi_ref[...]                                          # (B_pad, 1) int32
    whh = whh_ref[...]                                          # (Hp, 4Hp) bf16

    # Hoisted x-path: spatial_embedding_X + x @ Wih (+bias) for ALL timesteps.
    obs = obs_ref[...]
    x = jnp.where(jnp.isnan(obs), 0.0, obs).astype(jnp.bfloat16)  # kill NaN history
    e = jnp.maximum(
        jnp.dot(x, wx_ref[...], preferred_element_type=jnp.float32) + bx_ref[...],
        0.0)                                                    # (T*B_pad, E) f32
    xih_scr[...] = (jnp.dot(e.astype(jnp.bfloat16), wih_ref[...],
                            preferred_element_type=jnp.float32)
                    + bg_ref[...])                              # (T*B_pad, 4Hp) f32

    # Masked LSTM recurrence (fully unrolled, static T).
    h = jnp.zeros((B_pad, Hp), jnp.float32)
    c = jnp.zeros((B_pad, Hp), jnp.float32)
    for t in range(T):
        gates = (xih_scr[pl.ds(t * B_pad, B_pad), :]
                 + jnp.dot(h.astype(jnp.bfloat16), whh,
                           preferred_element_type=jnp.float32))
        i, f, g, o = _gates_split(gates, Hp)
        c_new = f * c + i * g
        h_new = o * jnp.tanh(c_new)
        m = t >= fhi                                            # (B_pad, 1) valid mask
        h = jnp.where(m, h_new, h)
        c = jnp.where(m, c_new, c)

    h_out_ref[...] = h
    c_out_ref[...] = c


# ----------------------------------------------------------------------------
# Decoder + classifier kernel: gridded over the B*K row axis.
# ----------------------------------------------------------------------------
def decoder_kernel(h0_ref, c0_ref, pred_ref, wy_ref, by_ref,
                   wih_ref, whh_ref, bg_ref, w1_ref, b1_ref, w2_ref, b2_ref,
                   scores_ref):
    """Per BK-tile: LSTM over predicted steps starting from the replicated encoder
    state, then real_classifier.  pred: (TILE, P*2) lane-packed timesteps."""
    Hp = whh_ref.shape[0]
    P = pred_ref.shape[1] // 2

    wy = wy_ref[...]
    by = by_ref[...]
    wih = wih_ref[...]
    whh = whh_ref[...]
    bg = bg_ref[...]

    hd = h0_ref[...]                                            # (TILE, Hp) f32
    cd = c0_ref[...]
    pred = pred_ref[...]                                        # (TILE, P*2) f32

    for t in range(P):
        y = pred[:, 2 * t:2 * t + 2].astype(jnp.bfloat16)       # (TILE, 2)
        ey = jnp.maximum(
            jnp.dot(y, wy, preferred_element_type=jnp.float32) + by, 0.0)
        gates = (jnp.dot(ey.astype(jnp.bfloat16), wih,
                         preferred_element_type=jnp.float32)
                 + bg
                 + jnp.dot(hd.astype(jnp.bfloat16), whh,
                           preferred_element_type=jnp.float32))
        i, f, g, o = _gates_split(gates, Hp)
        cd = f * cd + i * g
        hd = o * jnp.tanh(cd)

    # real_classifier: Linear(H, M) -> ReLU -> Linear(M, 1) (lane-padded to 128).
    hid = jnp.maximum(
        jnp.dot(hd.astype(jnp.bfloat16), w1_ref[...],
                preferred_element_type=jnp.float32) + b1_ref[...], 0.0)
    scores_ref[...] = (jnp.dot(hid.astype(jnp.bfloat16), w2_ref[...],
                               preferred_element_type=jnp.float32) + b2_ref[...])


# ----------------------------------------------------------------------------
# Parameter packing (torch-shaped params -> fused / lane-padded / bf16 params)
# ----------------------------------------------------------------------------
def _pack_params(p, hp=_HP):
    """Fuse gates along lanes (order [i, f, g, o]), zero-pad to hp, cast weights bf16."""
    H = p["whh"].shape[-1]
    assert H <= hp
    bf = jnp.bfloat16
    wih = jnp.concatenate(
        [jnp.pad(p["wih"][k], ((0, 0), (0, hp - H))) for k in range(4)], axis=1)
    whh = jnp.concatenate(
        [jnp.pad(p["whh"][k], ((0, hp - H), (0, hp - H))) for k in range(4)], axis=1)
    bg = jnp.concatenate(
        [jnp.pad(p["bg"][k], ((0, 0), (0, hp - H))) for k in range(4)], axis=1)
    return dict(
        wx=p["wx"].astype(bf), bx=p["bx"],
        wy=p["wy"].astype(bf), by=p["by"],
        wih=wih.astype(bf), whh=whh.astype(bf), bg=bg,
        w1=jnp.pad(p["w1"], ((0, hp - H), (0, 0))).astype(bf),
        b1=p["b1"],
        w2=jnp.pad(p["w2"], ((0, 0), (0, 128 - p["w2"].shape[1]))).astype(bf),
        b2=jnp.pad(p["b2"], ((0, 0), (0, 128 - p["b2"].shape[1]))),
    )


def init_params(key, embedding_dim=16, h_dim=48, mlp_dim=64):
    """Deterministic synthetic parameters (shapes follow the torch module)."""
    ks = jax.random.split(key, 11)

    def u(k, shape, scale):
        return jax.random.uniform(k, shape, jnp.float32, -scale, scale)

    E, H, M = embedding_dim, h_dim, mlp_dim
    return dict(
        wx=u(ks[0], (6, E), 1.0 / np.sqrt(6.0)),
        bx=u(ks[1], (1, E), 1.0 / np.sqrt(6.0)),
        wy=u(ks[2], (2, E), 1.0 / np.sqrt(2.0)),
        by=u(ks[3], (1, E), 1.0 / np.sqrt(2.0)),
        wih=u(ks[4], (4, E, H), 1.0 / np.sqrt(H)),
        whh=u(ks[5], (4, H, H), 1.0 / np.sqrt(H)),
        bg=u(ks[6], (4, 1, H), 1.0 / np.sqrt(H)),   # bias_ih + bias_hh combined
        w1=u(ks[7], (H, M), 1.0 / np.sqrt(H)),
        b1=u(ks[8], (1, M), 1.0 / np.sqrt(H)),
        w2=u(ks[9], (M, 1), 1.0 / np.sqrt(M)),
        b2=u(ks[10], (1, 1), 1.0 / np.sqrt(M)),
    )


# ----------------------------------------------------------------------------
# Wrapper
# ----------------------------------------------------------------------------
@functools.partial(jax.jit, static_argnames=("K",))
def trajectory_discriminator_forward(params, obs_traj_rel, pred_traj_rel,
                                     pred_traj_rel_gt, first_history_index, *, K):
    """JAX/Pallas equivalent of TrajectoryDiscriminator.forward.

    obs_traj_rel: (B, obs_len, 6)  (NaN-padded before first_history_index)
    pred_traj_rel: (B, K, pred_len, 2)
    pred_traj_rel_gt: (B, pred_len, 2)  (unused, as in the torch forward)
    first_history_index: (B,) int32
    Returns scores: (B, K)
    """
    del pred_traj_rel_gt  # unused by the reference forward pass
    B, obs_len, _ = obs_traj_rel.shape
    pred_len = pred_traj_rel.shape[2]
    BK = B * K
    B_pad = -(-B // 8) * 8
    BK_pad8 = -(-BK // 8) * 8
    TILE = min(32, BK_pad8)                 # decoder row tile (vreg-pressure bound)
    BK_pad = -(-BK // TILE) * TILE

    pk = _pack_params(params)
    Hp = pk["whh"].shape[0]
    E = pk["wx"].shape[1]
    M = pk["w1"].shape[1]

    # ---- encoder glue: time-major + sublane padding (tiny, fused under jit) ----
    obs_tm = jnp.transpose(obs_traj_rel, (1, 0, 2))                   # (T, B, 6)
    obs_tm = jnp.pad(obs_tm, ((0, 0), (0, B_pad - B), (0, 0)))
    obs_flat = obs_tm.reshape(obs_len * B_pad, 6)
    fhi = jnp.pad(first_history_index.astype(jnp.int32), (0, B_pad - B),
                  constant_values=obs_len).reshape(B_pad, 1)          # pad rows never valid

    vmem = pl.BlockSpec(memory_space=pltpu.MemorySpace.VMEM)
    h_enc, c_enc = pl.pallas_call(
        encoder_kernel,
        out_shape=(jax.ShapeDtypeStruct((B_pad, Hp), jnp.float32),
                   jax.ShapeDtypeStruct((B_pad, Hp), jnp.float32)),
        in_specs=[vmem] * 7,
        out_specs=(vmem, vmem),
        scratch_shapes=[pltpu.VMEM((obs_len * B_pad, 4 * Hp), jnp.float32)],
    )(fhi, obs_flat, pk["wx"], pk["bx"], pk["wih"], pk["whh"], pk["bg"])

    # ---- K-replication of the encoder state in the wrapper (tiny XLA op) ----
    h0 = jnp.pad(jnp.repeat(h_enc[:B], K, axis=0), ((0, BK_pad - BK), (0, 0)))
    c0 = jnp.pad(jnp.repeat(c_enc[:B], K, axis=0), ((0, BK_pad - BK), (0, 0)))

    # ---- decoder glue: lane-pack predicted timesteps, pad rows ----
    pred_packed = pred_traj_rel.reshape(BK, pred_len * 2)             # row b*K+k
    pred_packed = jnp.pad(pred_packed, ((0, BK_pad - BK), (0, 0)))

    n_tiles = BK_pad // TILE
    full = lambda arr: pl.BlockSpec(arr.shape, lambda i: (0,) * arr.ndim)
    scores_slab = pl.pallas_call(
        decoder_kernel,
        out_shape=jax.ShapeDtypeStruct((BK_pad, 128), jnp.float32),
        grid=(n_tiles,),
        in_specs=[pl.BlockSpec((TILE, Hp), lambda i: (i, 0)),
                  pl.BlockSpec((TILE, Hp), lambda i: (i, 0)),
                  pl.BlockSpec((TILE, pred_len * 2), lambda i: (i, 0)),
                  full(pk["wy"]), full(pk["by"]),
                  full(pk["wih"]), full(pk["whh"]), full(pk["bg"]),
                  full(pk["w1"]), full(pk["b1"]),
                  full(pk["w2"]), full(pk["b2"])],
        out_specs=pl.BlockSpec((TILE, 128), lambda i: (i, 0)),
        compiler_params=pltpu.CompilerParams(dimension_semantics=("parallel",)),
    )(h0, c0, pred_packed,
      pk["wy"], pk["by"], pk["wih"], pk["whh"], pk["bg"],
      pk["w1"], pk["b1"], pk["w2"], pk["b2"])

    return scores_slab[:BK, 0].reshape(B, K)


# ----------------------------------------------------------------------------
# Pure-JAX f32 reference (mirrors the torch semantics) for validation
# ----------------------------------------------------------------------------
def reference_forward(params, obs_traj_rel, pred_traj_rel, first_history_index, K):
    B, obs_len, _ = obs_traj_rel.shape
    pred_len = pred_traj_rel.shape[2]
    H = params["whh"].shape[-1]

    def lstm_cell(e, h, c):
        def gate(k):
            return e @ params["wih"][k] + h @ params["whh"][k] + params["bg"][k]
        i = jax.nn.sigmoid(gate(0))
        f = jax.nn.sigmoid(gate(1))
        g = jnp.tanh(gate(2))
        o = jax.nn.sigmoid(gate(3))
        c_new = f * c + i * g
        return o * jnp.tanh(c_new), c_new

    t_idx = jnp.arange(obs_len)
    mask = (t_idx[None, :] >= first_history_index[:, None]).astype(jnp.float32)

    def enc_step(carry, inp):
        h, c = carry
        x, m = inp
        x = jnp.where(m > 0.5, x, 0.0)
        e = jax.nn.relu(x @ params["wx"] + params["bx"])
        h_new, c_new = lstm_cell(e, h, c)
        return (jnp.where(m > 0.5, h_new, h), jnp.where(m > 0.5, c_new, c)), None

    h0 = jnp.zeros((B, H), jnp.float32)
    (h_enc, c_enc), _ = jax.lax.scan(
        enc_step, (h0, h0),
        (jnp.transpose(obs_traj_rel, (1, 0, 2)),
         jnp.transpose(mask, (1, 0))[:, :, None]))

    h = jnp.repeat(h_enc, K, axis=0)
    c = jnp.repeat(c_enc, K, axis=0)
    pred_tm = jnp.transpose(pred_traj_rel.reshape(B * K, pred_len, 2), (1, 0, 2))

    def dec_step(carry, x):
        h, c = carry
        e = jax.nn.relu(x @ params["wy"] + params["by"])
        return lstm_cell(e, h, c), None

    (h, c), _ = jax.lax.scan(dec_step, (h, c), pred_tm)
    hid = jax.nn.relu(h @ params["w1"] + params["b1"])
    scores = hid @ params["w2"] + params["b2"]
    return scores.reshape(B, K)


# ----------------------------------------------------------------------------
if __name__ == "__main__":
    key = jax.random.PRNGKey(0)
    k_par, k_obs, k_pred, k_gt = jax.random.split(key, 4)

    obs_len, pred_len = 8, 8
    B, K = 2, 3
    params = init_params(k_par, embedding_dim=16, h_dim=48, mlp_dim=64)

    first_history_index = jnp.array([2, 0], dtype=jnp.int32)
    obs = jax.random.normal(k_obs, (B, obs_len, 6), jnp.float32)
    # NaN-pad the missing history prefix, as the torch data pipeline does.
    t_idx = jnp.arange(obs_len)
    nan_prefix = t_idx[None, :] < first_history_index[:, None]
    obs = jnp.where(nan_prefix[:, :, None], jnp.nan, obs)

    pred = jax.random.normal(k_pred, (B, K, pred_len, 2), jnp.float32)
    pred_gt = jax.random.normal(k_gt, (B, pred_len, 2), jnp.float32)

    scores = trajectory_discriminator_forward(
        params, obs, pred, pred_gt, first_history_index, K=K)
    scores = jax.block_until_ready(scores)

    ref = reference_forward(params, obs, pred, first_history_index, K)
    assert scores.shape == (B, K)
    assert np.all(np.isfinite(np.asarray(scores)))
    # bf16 MXU operands through a 16-step recurrence vs. an f32 reference:
    # loosened tolerance (gross bugs — wrong gates/masking/indexing — are O(1) off).
    assert np.allclose(np.asarray(scores), np.asarray(ref), rtol=5e-2, atol=5e-2), (
        np.asarray(scores), np.asarray(ref))
    print("KERNEL_OK")
</pallas_src>

<mosaic_0001>
module attributes {stable_mosaic.version = 11 : i64} {
  func.func @encoder_kernel(%arg0: memref<8x1xi32, #tpu.memory_space<vmem>>, %arg1: memref<64x6xf32, #tpu.memory_space<vmem>>, %arg2: memref<6x16xbf16, #tpu.memory_space<vmem>>, %arg3: memref<1x16xf32, #tpu.memory_space<vmem>>, %arg4: memref<16x512xbf16, #tpu.memory_space<vmem>>, %arg5: memref<128x512xbf16, #tpu.memory_space<vmem>>, %arg6: memref<1x512xf32, #tpu.memory_space<vmem>>, %arg7: memref<8x128xf32, #tpu.memory_space<vmem>>, %arg8: memref<8x128xf32, #tpu.memory_space<vmem>>, %arg9: memref<64x512xf32, #tpu.memory_space<vmem>>) attributes {dimension_semantics = [], scalar_prefetch = 0 : i64, scratch_operands = 1 : i64, tpu.core_type = #tpu.core_type<tc>} {
    %c0 = arith.constant 0 : index
    %c0_0 = arith.constant 0 : index
    %0 = vector.load %arg0[%c0, %c0_0] : memref<8x1xi32, #tpu.memory_space<vmem>>, vector<8x1xi32>
    %c0_1 = arith.constant 0 : index
    %c0_2 = arith.constant 0 : index
    %1 = vector.load %arg5[%c0_1, %c0_2] : memref<128x512xbf16, #tpu.memory_space<vmem>>, vector<128x512xbf16>
    %c0_3 = arith.constant 0 : index
    %c0_4 = arith.constant 0 : index
    %2 = vector.load %arg1[%c0_3, %c0_4] : memref<64x6xf32, #tpu.memory_space<vmem>>, vector<64x6xf32>
    %3 = arith.cmpf one, %2, %2 : vector<64x6xf32>
    %cst = arith.constant 0.000000e+00 : f32
    %4 = vector.broadcast %cst : f32 to vector<64x6xf32>
    %5 = arith.select %3, %4, %2 : vector<64x6xi1>, vector<64x6xf32>
    %6 = arith.truncf %5 : vector<64x6xf32> to vector<64x6xbf16>
    %c0_5 = arith.constant 0 : index
    %c0_6 = arith.constant 0 : index
    %7 = vector.load %arg2[%c0_5, %c0_6] : memref<6x16xbf16, #tpu.memory_space<vmem>>, vector<6x16xbf16>
    %cst_7 = arith.constant dense<0.000000e+00> : vector<64x16xf32>
    %8 = tpu.matmul %6, %7, %cst_7 {dimension_numbers = #tpu.dot_dimension_numbers<[1], [0], [0], [1], [0, 0, 1, 1], [], []>} : vector<64x6xbf16>, vector<6x16xbf16>, vector<64x16xf32> -> vector<64x16xf32>
    %c0_8 = arith.constant 0 : index
    %c0_9 = arith.constant 0 : index
    %9 = vector.load %arg3[%c0_8, %c0_9] : memref<1x16xf32, #tpu.memory_space<vmem>>, vector<1x16xf32>
    %10 = vector.broadcast %9 : vector<1x16xf32> to vector<64x16xf32>
    %11 = arith.addf %8, %10 : vector<64x16xf32>
    %cst_10 = arith.constant 0.000000e+00 : f32
    %12 = vector.broadcast %cst_10 : f32 to vector<64x16xf32>
    %13 = arith.maximumf %11, %12 : vector<64x16xf32>
    %14 = arith.truncf %13 : vector<64x16xf32> to vector<64x16xbf16>
    %c0_11 = arith.constant 0 : index
    %c0_12 = arith.constant 0 : index
    %15 = vector.load %arg4[%c0_11, %c0_12] : memref<16x512xbf16, #tpu.memory_space<vmem>>, vector<16x512xbf16>
    %cst_13 = arith.constant dense<0.000000e+00> : vector<64x512xf32>
    %16 = tpu.matmul %14, %15, %cst_13 {dimension_numbers = #tpu.dot_dimension_numbers<[1], [0], [0], [1], [0, 0, 1, 1], [], []>} : vector<64x16xbf16>, vector<16x512xbf16>, vector<64x512xf32> -> vector<64x512xf32>
    %c0_14 = arith.constant 0 : index
    %c0_15 = arith.constant 0 : index
    %17 = vector.load %arg6[%c0_14, %c0_15] : memref<1x512xf32, #tpu.memory_space<vmem>>, vector<1x512xf32>
    %18 = vector.broadcast %17 : vector<1x512xf32> to vector<64x512xf32>
    %19 = arith.addf %16, %18 : vector<64x512xf32>
    %c0_16 = arith.constant 0 : index
    %c0_17 = arith.constant 0 : index
    %20 = vector.load %arg9[%c0_16, %c0_17] : memref<64x512xf32, #tpu.memory_space<vmem>>, vector<64x512xf32>
    tpu.vector_store %arg9[%c0_16, %c0_17], %19 {strides = array<i32>} : memref<64x512xf32, #tpu.memory_space<vmem>>, vector<64x512xf32>,
    %cst_18 = arith.constant 0.000000e+00 : f32
    %21 = vector.broadcast %cst_18 : f32 to vector<8x128xf32>
    %cst_19 = arith.constant 0.000000e+00 : f32
    %22 = vector.broadcast %cst_19 : f32 to vector<8x128xf32>
    %c0_20 = arith.constant 0 : index
    %c0_21 = arith.constant 0 : index
    %23 = vector.load %arg9[%c0_20, %c0_21] : memref<64x512xf32, #tpu.memory_space<vmem>>, vector<8x512xf32>
    %24 = arith.truncf %21 : vector<8x128xf32> to vector<8x128xbf16>
    %cst_22 = arith.constant dense<0.000000e+00> : vector<8x512xf32>
    %25 = tpu.matmul %24, %1, %cst_22 {dimension_numbers = #tpu.dot_dimension_numbers<[1], [0], [0], [1], [0, 0, 1, 1], [], []>} : vector<8x128xbf16>, vector<128x512xbf16>, vector<8x512xf32> -> vector<8x512xf32>
    %26 = arith.addf %23, %25 : vector<8x512xf32>
    %27 = vector.extract_strided_slice %26 {offsets = [0, 0], sizes = [8, 128], strides = [1, 1]} : vector<8x512xf32> to vector<8x128xf32>
    %cst_23 = arith.constant 5.000000e-01 : f32
    %28 = vector.broadcast %cst_23 : f32 to vector<8x128xf32>
    %29 = arith.mulf %28, %27 : vector<8x128xf32>
    %30 = math.tanh %29 : vector<8x128xf32>
    %cst_24 = arith.constant 1.000000e+00 : f32
    %31 = vector.broadcast %cst_24 : f32 to vector<8x128xf32>
    %32 = arith.addf %30, %31 : vector<8x128xf32>
    %cst_25 = arith.constant 5.000000e-01 : f32
    %33 = vector.broadcast %cst_25 : f32 to vector<8x128xf32>
    %34 = arith.mulf %33, %32 : vector<8x128xf32>
    %35 = vector.extract_strided_slice %26 {offsets = [0, 128], sizes = [8, 128], strides = [1, 1]} : vector<8x512xf32> to vector<8x128xf32>
    %cst_26 = arith.constant 5.000000e-01 : f32
    %36 = vector.broadcast %cst_26 : f32 to vector<8x128xf32>
    %37 = arith.mulf %36, %35 : vector<8x128xf32>
    %38 = math.tanh %37 : vector<8x128xf32>
    %cst_27 = arith.constant 1.000000e+00 : f32
    %39 = vector.broadcast %cst_27 : f32 to vector<8x128xf32>
    %40 = arith.addf %38, %39 : vector<8x128xf32>
    %cst_28 = arith.constant 5.000000e-01 : f32
    %41 = vector.broadcast %cst_28 : f32 to vector<8x128xf32>
    %42 = arith.mulf %41, %40 : vector<8x128xf32>
    %43 = vector.extract_strided_slice %26 {offsets = [0, 256], sizes = [8, 128], strides = [1, 1]} : vector<8x512xf32> to vector<8x128xf32>
    %44 = math.tanh %43 : vector<8x128xf32>
    %45 = vector.extract_strided_slice %26 {offsets = [0, 384], sizes = [8, 128], strides = [1, 1]} : vector<8x512xf32> to vector<8x128xf32>
    %cst_29 = arith.constant 5.000000e-01 : f32
    %46 = vector.broadcast %cst_29 : f32 to vector<8x128xf32>
    %47 = arith.mulf %46, %45 : vector<8x128xf32>
    %48 = math.tanh %47 : vector<8x128xf32>
    %cst_30 = arith.constant 1.000000e+00 : f32
    %49 = vector.broadcast %cst_30 : f32 to vector<8x128xf32>
    %50 = arith.addf %48, %49 : vector<8x128xf32>
    %cst_31 = arith.constant 5.000000e-01 : f32
    %51 = vector.broadcast %cst_31 : f32 to vector<8x128xf32>
    %52 = arith.mulf %51, %50 : vector<8x128xf32>
    %53 = arith.mulf %42, %22 : vector<8x128xf32>
    %54 = arith.mulf %34, %44 : vector<8x128xf32>
    %55 = arith.addf %53, %54 : vector<8x128xf32>
    %56 = math.tanh %55 : vector<8x128xf32>
    %57 = arith.mulf %52, %56 : vector<8x128xf32>
    %c0_i32 = arith.constant 0 : i32
    %58 = vector.broadcast %c0_i32 : i32 to vector<8x1xi32>
    %59 = arith.cmpi sle, %0, %58 : vector<8x1xi32>
    %60 = vector.shape_cast %59 : vector<8x1xi1> to vector<8x1xi1>
    %61 = vector.broadcast %60 : vector<8x1xi1> to vector<8x128xi1>
    %62 = arith.select %61, %57, %21 : vector<8x128xi1>, vector<8x128xf32>
    %63 = vector.shape_cast %59 : vector<8x1xi1> to vector<8x1xi1>
    %64 = vector.broadcast %63 : vector<8x1xi1> to vector<8x128xi1>
    %65 = arith.select %64, %55, %22 : vector<8x128xi1>, vector<8x128xf32>
    %c8 = arith.constant 8 : index
    %c0_32 = arith.constant 0 : index
    %66 = vector.load %arg9[%c8, %c0_32] : memref<64x512xf32, #tpu.memory_space<vmem>>, vector<8x512xf32>
    %67 = arith.truncf %62 : vector<8x128xf32> to vector<8x128xbf16>
    %cst_33 = arith.constant dense<0.000000e+00> : vector<8x512xf32>
    %68 = tpu.matmul %67, %1, %cst_33 {dimension_numbers = #tpu.dot_dimension_numbers<[1], [0], [0], [1], [0, 0, 1, 1], [], []>} : vector<8x128xbf16>, vector<128x512xbf16>, vector<8x512xf32> -> vector<8x512xf32>
    %69 = arith.addf %66, %68 : vector<8x512xf32>
    %70 = vector.extract_strided_slice %69 {offsets = [0, 0], sizes = [8, 128], strides = [1, 1]} : vector<8x512xf32> to vector<8x128xf32>
    %cst_34 = arith.constant 5.000000e-01 : f32
    %71 = vector.broadcast %cst_34 : f32 to vector<8x128xf32>
    %72 = arith.mulf %71, %70 : vector<8x128xf32>
    %73 = math.tanh %72 : vector<8x128xf32>
    %cst_35 = arith.constant 1.000000e+00 : f32
    %74 = vector.broadcast %cst_35 : f32 to vector<8x128xf32>
    %75 = arith.addf %73, %74 : vector<8x128xf32>
    %cst_36 = arith.constant 5.000000e-01 : f32
    %76 = vector.broadcast %cst_36 : f32 to vector<8x128xf32>
    %77 = arith.mulf %76, %75 : vector<8x128xf32>
    %78 = vector.extract_strided_slice %69 {offsets = [0, 128], sizes = [8, 128], strides = [1, 1]} : vector<8x512xf32> to vector<8x128xf32>
    %cst_37 = arith.constant 5.000000e-01 : f32
    %79 = vector.broadcast %cst_37 : f32 to vector<8x128xf32>
    %80 = arith.mulf %79, %78 : vector<8x128xf32>
    %81 = math.tanh %80 : vector<8x128xf32>
    %cst_38 = arith.constant 1.000000e+00 : f32
    %82 = vector.broadcast %cst_38 : f32 to vector<8x128xf32>
    %83 = arith.addf %81, %82 : vector<8x128xf32>
    %cst_39 = arith.constant 5.000000e-01 : f32
    %84 = vector.broadcast %cst_39 : f32 to vector<8x128xf32>
    %85 = arith.mulf %84, %83 : vector<8x128xf32>
    %86 = vector.extract_strided_slice %69 {offsets = [0, 256], sizes = [8, 128], strides = [1, 1]} : vector<8x512xf32> to vector<8x128xf32>
    %87 = math.tanh %86 : vector<8x128xf32>
    %88 = vector.extract_strided_slice %69 {offsets = [0, 384], sizes = [8, 128], strides = [1, 1]} : vector<8x512xf32> to vector<8x128xf32>
    %cst_40 = arith.constant 5.000000e-01 : f32
    %89 = vector.broadcast %cst_40 : f32 to vector<8x128xf32>
    %90 = arith.mulf %89, %88 : vector<8x128xf32>
    %91 = math.tanh %90 : vector<8x128xf32>
    %cst_41 = arith.constant 1.000000e+00 : f32
    %92 = vector.broadcast %cst_41 : f32 to vector<8x128xf32>
    %93 = arith.addf %91, %92 : vector<8x128xf32>
    %cst_42 = arith.constant 5.000000e-01 : f32
    %94 = vector.broadcast %cst_42 : f32 to vector<8x128xf32>
    %95 = arith.mulf %94, %93 : vector<8x128xf32>
    %96 = arith.mulf %85, %65 : vector<8x128xf32>
    %97 = arith.mulf %77, %87 : vector<8x128xf32>
    %98 = arith.addf %96, %97 : vector<8x128xf32>
    %99 = math.tanh %98 : vector<8x128xf32>
    %100 = arith.mulf %95, %99 : vector<8x128xf32>
    %c1_i32 = arith.constant 1 : i32
    %101 = vector.broadcast %c1_i32 : i32 to vector<8x1xi32>
    %102 = arith.cmpi sle, %0, %101 : vector<8x1xi32>
    %103 = vector.shape_cast %102 : vector<8x1xi1> to vector<8x1xi1>
    %104 = vector.broadcast %103 : vector<8x1xi1> to vector<8x128xi1>
    %105 = arith.select %104, %100, %62 : vector<8x128xi1>, vector<8x128xf32>
    %106 = vector.shape_cast %102 : vector<8x1xi1> to vector<8x1xi1>
    %107 = vector.broadcast %106 : vector<8x1xi1> to vector<8x128xi1>
    %108 = arith.select %107, %98, %65 : vector<8x128xi1>, vector<8x128xf32>
    %c16 = arith.constant 16 : index
    %c0_43 = arith.constant 0 : index
    %109 = vector.load %arg9[%c16, %c0_43] : memref<64x512xf32, #tpu.memory_space<vmem>>, vector<8x512xf32>
    %110 = arith.truncf %105 : vector<8x128xf32> to vector<8x128xbf16>
    %cst_44 = arith.constant dense<0.000000e+00> : vector<8x512xf32>
    %111 = tpu.matmul %110, %1, %cst_44 {dimension_numbers = #tpu.dot_dimension_numbers<[1], [0], [0], [1], [0, 0, 1, 1], [], []>} : vector<8x128xbf16>, vector<128x512xbf16>, vector<8x512xf32> -> vector<8x512xf32>
    %112 = arith.addf %109, %111 : vector<8x512xf32>
    %113 = vector.extract_strided_slice %112 {offsets = [0, 0], sizes = [8, 128], strides = [1, 1]} : vector<8x512xf32> to vector<8x128xf32>
    %cst_45 = arith.constant 5.000000e-01 : f32
    %114 = vector.broadcast %cst_45 : f32 to vector<8x128xf32>
    %115 = arith.mulf %114, %113 : vector<8x128xf32>
    %116 = math.tanh %115 : vector<8x128xf32>
    %cst_46 = arith.constant 1.000000e+00 : f32
    %117 = vector.broadcast %cst_46 : f32 to vector<8x128xf32>
    %118 = arith.addf %116, %117 : vector<8x128xf32>
    %cst_47 = arith.constant 5.000000e-01 : f32
    %119 = vector.broadcast %cst_47 : f32 to vector<8x128xf32>
    %120 = arith.mulf %119, %118 : vector<8x128xf32>
    %121 = vector.extract_strided_slice %112 {offsets = [0, 128], sizes = [8, 128], strides = [1, 1]} : vector<8x512xf32> to vector<8x128xf32>
    %cst_48 = arith.constant 5.000000e-01 : f32
    %122 = vector.broadcast %cst_48 : f32 to vector<8x128xf32>
    %123 = arith.mulf %122, %121 : vector<8x128xf32>
    %124 = math.tanh %123 : vector<8x128xf32>
    %cst_49 = arith.constant 1.000000e+00 : f32
    %125 = vector.broadcast %cst_49 : f32 to vector<8x128xf32>
    %126 = arith.addf %124, %125 : vector<8x128xf32>
    %cst_50 = arith.constant 5.000000e-01 : f32
    %127 = vector.broadcast %cst_50 : f32 to vector<8x128xf32>
    %128 = arith.mulf %127, %126 : vector<8x128xf32>
    %129 = vector.extract_strided_slice %112 {offsets = [0, 256], sizes = [8, 128], strides = [1, 1]} : vector<8x512xf32> to vector<8x128xf32>
    %130 = math.tanh %129 : vector<8x128xf32>
    %131 = vector.extract_strided_slice %112 {offsets = [0, 384], sizes = [8, 128], strides = [1, 1]} : vector<8x512xf32> to vector<8x128xf32>
    %cst_51 = arith.constant 5.000000e-01 : f32
    %132 = vector.broadcast %cst_51 : f32 to vector<8x128xf32>
    %133 = arith.mulf %132, %131 : vector<8x128xf32>
    %134 = math.tanh %133 : vector<8x128xf32>
    %cst_52 = arith.constant 1.000000e+00 : f32
    %135 = vector.broadcast %cst_52 : f32 to vector<8x128xf32>
    %136 = arith.addf %134, %135 : vector<8x128xf32>
    %cst_53 = arith.constant 5.000000e-01 : f32
    %137 = vector.broadcast %cst_53 : f32 to vector<8x128xf32>
    %138 = arith.mulf %137, %136 : vector<8x128xf32>
    %139 = arith.mulf %128, %108 : vector<8x128xf32>
    %140 = arith.mulf %120, %130 : vector<8x128xf32>
    %141 = arith.addf %139, %140 : vector<8x128xf32>
    %142 = math.tanh %141 : vector<8x128xf32>
    %143 = arith.mulf %138, %142 : vector<8x128xf32>
    %c2_i32 = arith.constant 2 : i32
    %144 = vector.broadcast %c2_i32 : i32 to vector<8x1xi32>
    %145 = arith.cmpi sle, %0, %144 : vector<8x1xi32>
    %146 = vector.shape_cast %145 : vector<8x1xi1> to vector<8x1xi1>
    %147 = vector.broadcast %146 : vector<8x1xi1> to vector<8x128xi1>
    %148 = arith.select %147, %143, %105 : vector<8x128xi1>, vector<8x128xf32>
    %149 = vector.shape_cast %145 : vector<8x1xi1> to vector<8x1xi1>
    %150 = vector.broadcast %149 : vector<8x1xi1> to vector<8x128xi1>
    %151 = arith.select %150, %141, %108 : vector<8x128xi1>, vector<8x128xf32>
    %c24 = arith.constant 24 : index
    %c0_54 = arith.constant 0 : index
    %152 = vector.load %arg9[%c24, %c0_54] : memref<64x512xf32, #tpu.memory_space<vmem>>, vector<8x512xf32>
    %153 = arith.truncf %148 : vector<8x128xf32> to vector<8x128xbf16>
    %cst_55 = arith.constant dense<0.000000e+00> : vector<8x512xf32>
    %154 = tpu.matmul %153, %1, %cst_55 {dimension_numbers = #tpu.dot_dimension_numbers<[1], [0], [0], [1], [0, 0, 1, 1], [], []>} : vector<8x128xbf16>, vector<128x512xbf16>, vector<8x512xf32> -> vector<8x512xf32>
    %155 = arith.addf %152, %154 : vector<8x512xf32>
    %156 = vector.extract_strided_slice %155 {offsets = [0, 0], sizes = [8, 128], strides = [1, 1]} : vector<8x512xf32> to vector<8x128xf32>
    %cst_56 = arith.constant 5.000000e-01 : f32
    %157 = vector.broadcast %cst_56 : f32 to vector<8x128xf32>
    %158 = arith.mulf %157, %156 : vector<8x128xf32>
    %159 = math.tanh %158 : vector<8x128xf32>
    %cst_57 = arith.constant 1.000000e+00 : f32
    %160 = vector.broadcast %cst_57 : f32 to vector<8x128xf32>
    %161 = arith.addf %159, %160 : vector<8x128xf32>
    %cst_58 = arith.constant 5.000000e-01 : f32
    %162 = vector.broadcast %cst_58 : f32 to vector<8x128xf32>
    %163 = arith.mulf %162, %161 : vector<8x128xf32>
    %164 = vector.extract_strided_slice %155 {offsets = [0, 128], sizes = [8, 128], strides = [1, 1]} : vector<8x512xf32> to vector<8x128xf32>
    %cst_59 = arith.constant 5.000000e-01 : f32
    %165 = vector.broadcast %cst_59 : f32 to vector<8x128xf32>
    %166 = arith.mulf %165, %164 : vector<8x128xf32>
    %167 = math.tanh %166 : vector<8x128xf32>
    %cst_60 = arith.constant 1.000000e+00 : f32
    %168 = vector.broadcast %cst_60 : f32 to vector<8x128xf32>
    %169 = arith.addf %167, %168 : vector<8x128xf32>
    %cst_61 = arith.constant 5.000000e-01 : f32
    %170 = vector.broadcast %cst_61 : f32 to vector<8x128xf32>
    %171 = arith.mulf %170, %169 : vector<8x128xf32>
    %172 = vector.extract_strided_slice %155 {offsets = [0, 256], sizes = [8, 128], strides = [1, 1]} : vector<8x512xf32> to vector<8x128xf32>
    %173 = math.tanh %172 : vector<8x128xf32>
    %174 = vector.extract_strided_slice %155 {offsets = [0, 384], sizes = [8, 128], strides = [1, 1]} : vector<8x512xf32> to vector<8x128xf32>
    %cst_62 = arith.constant 5.000000e-01 : f32
    %175 = vector.broadcast %cst_62 : f32 to vector<8x128xf32>
    %176 = arith.mulf %175, %174 : vector<8x128xf32>
    %177 = math.tanh %176 : vector<8x128xf32>
    %cst_63 = arith.constant 1.000000e+00 : f32
    %178 = vector.broadcast %cst_63 : f32 to vector<8x128xf32>
    %179 = arith.addf %177, %178 : vector<8x128xf32>
    %cst_64 = arith.constant 5.000000e-01 : f32
    %180 = vector.broadcast %cst_64 : f32 to vector<8x128xf32>
    %181 = arith.mulf %180, %179 : vector<8x128xf32>
    %182 = arith.mulf %171, %151 : vector<8x128xf32>
    %183 = arith.mulf %163, %173 : vector<8x128xf32>
    %184 = arith.addf %182, %183 : vector<8x128xf32>
    %185 = math.tanh %184 : vector<8x128xf32>
    %186 = arith.mulf %181, %185 : vector<8x128xf32>
    %c3_i32 = arith.constant 3 : i32
    %187 = vector.broadcast %c3_i32 : i32 to vector<8x1xi32>
    %188 = arith.cmpi sle, %0, %187 : vector<8x1xi32>
    %189 = vector.shape_cast %188 : vector<8x1xi1> to vector<8x1xi1>
    %190 = vector.broadcast %189 : vector<8x1xi1> to vector<8x128xi1>
    %191 = arith.select %190, %186, %148 : vector<8x128xi1>, vector<8x128xf32>
    %192 = vector.shape_cast %188 : vector<8x1xi1> to vector<8x1xi1>
    %193 = vector.broadcast %192 : vector<8x1xi1> to vector<8x128xi1>
    %194 = arith.select %193, %184, %151 : vector<8x128xi1>, vector<8x128xf32>
    %c32 = arith.constant 32 : index
    %c0_65 = arith.constant 0 : index
    %195 = vector.load %arg9[%c32, %c0_65] : memref<64x512xf32, #tpu.memory_space<vmem>>, vector<8x512xf32>
    %196 = arith.truncf %191 : vector<8x128xf32> to vector<8x128xbf16>
    %cst_66 = arith.constant dense<0.000000e+00> : vector<8x512xf32>
    %197 = tpu.matmul %196, %1, %cst_66 {dimension_numbers = #tpu.dot_dimension_numbers<[1], [0], [0], [1], [0, 0, 1, 1], [], []>} : vector<8x128xbf16>, vector<128x512xbf16>, vector<8x512xf32> -> vector<8x512xf32>
    %198 = arith.addf %195, %197 : vector<8x512xf32>
    %199 = vector.extract_strided_slice %198 {offsets = [0, 0], sizes = [8, 128], strides = [1, 1]} : vector<8x512xf32> to vector<8x128xf32>
    %cst_67 = arith.constant 5.000000e-01 : f32
    %200 = vector.broadcast %cst_67 : f32 to vector<8x128xf32>
    %201 = arith.mulf %200, %199 : vector<8x128xf32>
    %202 = math.tanh %201 : vector<8x128xf32>
    %cst_68 = arith.constant 1.000000e+00 : f32
    %203 = vector.broadcast %cst_68 : f32 to vector<8x128xf32>
    %204 = arith.addf %202, %203 : vector<8x128xf32>
    %cst_69 = arith.constant 5.000000e-01 : f32
    %205 = vector.broadcast %cst_69 : f32 to vector<8x128xf32>
    %206 = arith.mulf %205, %204 : vector<8x128xf32>
    %207 = vector.extract_strided_slice %198 {offsets = [0, 128], sizes = [8, 128], strides = [1, 1]} : vector<8x512xf32> to vector<8x128xf32>
    %cst_70 = arith.constant 5.000000e-01 : f32
    %208 = vector.broadcast %cst_70 : f32 to vector<8x128xf32>
    %209 = arith.mulf %208, %207 : vector<8x128xf32>
    %210 = math.tanh %209 : vector<8x128xf32>
    %cst_71 = arith.constant 1.000000e+00 : f32
    %211 = vector.broadcast %cst_71 : f32 to vector<8x128xf32>
    %212 = arith.addf %210, %211 : vector<8x128xf32>
    %cst_72 = arith.constant 5.000000e-01 : f32
    %213 = vector.broadcast %cst_72 : f32 to vector<8x128xf32>
    %214 = arith.mulf %213, %212 : vector<8x128xf32>
    %215 = vector.extract_strided_slice %198 {offsets = [0, 256], sizes = [8, 128], strides = [1, 1]} : vector<8x512xf32> to vector<8x128xf32>
    %216 = math.tanh %215 : vector<8x128xf32>
    %217 = vector.extract_strided_slice %198 {offsets = [0, 384], sizes = [8, 128], strides = [1, 1]} : vector<8x512xf32> to vector<8x128xf32>
    %cst_73 = arith.constant 5.000000e-01 : f32
    %218 = vector.broadcast %cst_73 : f32 to vector<8x128xf32>
    %219 = arith.mulf %218, %217 : vector<8x128xf32>
    %220 = math.tanh %219 : vector<8x128xf32>
    %cst_74 = arith.constant 1.000000e+00 : f32
    %221 = vector.broadcast %cst_74 : f32 to vector<8x128xf32>
    %222 = arith.addf %220, %221 : vector<8x128xf32>
    %cst_75 = arith.constant 5.000000e-01 : f32
    %223 = vector.broadcast %cst_75 : f32 to vector<8x128xf32>
    %224 = arith.mulf %223, %222 : vector<8x128xf32>
    %225 = arith.mulf %214, %194 : vector<8x128xf32>
    %226 = arith.mulf %206, %216 : vector<8x128xf32>
    %227 = arith.addf %225, %226 : vector<8x128xf32>
    %228 = math.tanh %227 : vector<8x128xf32>
    %229 = arith.mulf %224, %228 : vector<8x128xf32>
    %c4_i32 = arith.constant 4 : i32
    %230 = vector.broadcast %c4_i32 : i32 to vector<8x1xi32>
    %231 = arith.cmpi sle, %0, %230 : vector<8x1xi32>
    %232 = vector.shape_cast %231 : vector<8x1xi1> to vector<8x1xi1>
    %233 = vector.broadcast %232 : vector<8x1xi1> to vector<8x128xi1>
    %234 = arith.select %233, %229, %191 : vector<8x128xi1>, vector<8x128xf32>
    %235 = vector.shape_cast %231 : vector<8x1xi1> to vector<8x1xi1>
    %236 = vector.broadcast %235 : vector<8x1xi1> to vector<8x128xi1>
    %237 = arith.select %236, %227, %194 : vector<8x128xi1>, vector<8x128xf32>
    %c40 = arith.constant 40 : index
    %c0_76 = arith.constant 0 : index
    %238 = vector.load %arg9[%c40, %c0_76] : memref<64x512xf32, #tpu.memory_space<vmem>>, vector<8x512xf32>
    %239 = arith.truncf %234 : vector<8x128xf32> to vector<8x128xbf16>
    %cst_77 = arith.constant dense<0.000000e+00> : vector<8x512xf32>
    %240 = tpu.matmul %239, %1, %cst_77 {dimension_numbers = #tpu.dot_dimension_numbers<[1], [0], [0], [1], [0, 0, 1, 1], [], []>} : vector<8x128xbf16>, vector<128x512xbf16>, vector<8x512xf32> -> vector<8x512xf32>
    %241 = arith.addf %238, %240 : vector<8x512xf32>
    %242 = vector.extract_strided_slice %241 {offsets = [0, 0], sizes = [8, 128], strides = [1, 1]} : vector<8x512xf32> to vector<8x128xf32>
    %cst_78 = arith.constant 5.000000e-01 : f32
    %243 = vector.broadcast %cst_78 : f32 to vector<8x128xf32>
    %244 = arith.mulf %243, %242 : vector<8x128xf32>
    %245 = math.tanh %244 : vector<8x128xf32>
    %cst_79 = arith.constant 1.000000e+00 : f32
    %246 = vector.broadcast %cst_79 : f32 to vector<8x128xf32>
    %247 = arith.addf %245, %246 : vector<8x128xf32>
    %cst_80 = arith.constant 5.000000e-01 : f32
    %248 = vector.broadcast %cst_80 : f32 to vector<8x128xf32>
    %249 = arith.mulf %248, %247 : vector<8x128xf32>
    %250 = vector.extract_strided_slice %241 {offsets = [0, 128], sizes = [8, 128], strides = [1, 1]} : vector<8x512xf32> to vector<8x128xf32>
    %cst_81 = arith.constant 5.000000e-01 : f32
    %251 = vector.broadcast %cst_81 : f32 to vector<8x128xf32>
    %252 = arith.mulf %251, %250 : vector<8x128xf32>
    %253 = math.tanh %252 : vector<8x128xf32>
    %cst_82 = arith.constant 1.000000e+00 : f32
    %254 = vector.broadcast %cst_82 : f32 to vector<8x128xf32>
    %255 = arith.addf %253, %254 : vector<8x128xf32>
    %cst_83 = arith.constant 5.000000e-01 : f32
    %256 = vector.broadcast %cst_83 : f32 to vector<8x128xf32>
    %257 = arith.mulf %256, %255 : vector<8x128xf32>
    %258 = vector.extract_strided_slice %241 {offsets = [0, 256], sizes = [8, 128], strides = [1, 1]} : vector<8x512xf32> to vector<8x128xf32>
    %259 = math.tanh %258 : vector<8x128xf32>
    %260 = vector.extract_strided_slice %241 {offsets = [0, 384], sizes = [8, 128], strides = [1, 1]} : vector<8x512xf32> to vector<8x128xf32>
    %cst_84 = arith.constant 5.000000e-01 : f32
    %261 = vector.broadcast %cst_84 : f32 to vector<8x128xf32>
    %262 = arith.mulf %261, %260 : vector<8x128xf32>
    %263 = math.tanh %262 : vector<8x128xf32>
    %cst_85 = arith.constant 1.000000e+00 : f32
    %264 = vector.broadcast %cst_85 : f32 to vector<8x128xf32>
    %265 = arith.addf %263, %264 : vector<8x128xf32>
    %cst_86 = arith.constant 5.000000e-01 : f32
    %266 = vector.broadcast %cst_86 : f32 to vector<8x128xf32>
    %267 = arith.mulf %266, %265 : vector<8x128xf32>
    %268 = arith.mulf %257, %237 : vector<8x128xf32>
    %269 = arith.mulf %249, %259 : vector<8x128xf32>
    %270 = arith.addf %268, %269 : vector<8x128xf32>
    %271 = math.tanh %270 : vector<8x128xf32>
    %272 = arith.mulf %267, %271 : vector<8x128xf32>
    %c5_i32 = arith.constant 5 : i32
    %273 = vector.broadcast %c5_i32 : i32 to vector<8x1xi32>
    %274 = arith.cmpi sle, %0, %273 : vector<8x1xi32>
    %275 = vector.shape_cast %274 : vector<8x1xi1> to vector<8x1xi1>
    %276 = vector.broadcast %275 : vector<8x1xi1> to vector<8x128xi1>
    %277 = arith.select %276, %272, %234 : vector<8x128xi1>, vector<8x128xf32>
    %278 = vector.shape_cast %274 : vector<8x1xi1> to vector<8x1xi1>
    %279 = vector.broadcast %278 : vector<8x1xi1> to vector<8x128xi1>
    %280 = arith.select %279, %270, %237 : vector<8x128xi1>, vector<8x128xf32>
    %c48 = arith.constant 48 : index
    %c0_87 = arith.constant 0 : index
    %281 = vector.load %arg9[%c48, %c0_87] : memref<64x512xf32, #tpu.memory_space<vmem>>, vector<8x512xf32>
    %282 = arith.truncf %277 : vector<8x128xf32> to vector<8x128xbf16>
    %cst_88 = arith.constant dense<0.000000e+00> : vector<8x512xf32>
    %283 = tpu.matmul %282, %1, %cst_88 {dimension_numbers = #tpu.dot_dimension_numbers<[1], [0], [0], [1], [0, 0, 1, 1], [], []>} : vector<8x128xbf16>, vector<128x512xbf16>, vector<8x512xf32> -> vector<8x512xf32>
    %284 = arith.addf %281, %283 : vector<8x512xf32>
    %285 = vector.extract_strided_slice %284 {offsets = [0, 0], sizes = [8, 128], strides = [1, 1]} : vector<8x512xf32> to vector<8x128xf32>
    %cst_89 = arith.constant 5.000000e-01 : f32
    %286 = vector.broadcast %cst_89 : f32 to vector<8x128xf32>
    %287 = arith.mulf %286, %285 : vector<8x128xf32>
    %288 = math.tanh %287 : vector<8x128xf32>
    %cst_90 = arith.constant 1.000000e+00 : f32
    %289 = vector.broadcast %cst_90 : f32 to vector<8x128xf32>
    %290 = arith.addf %288, %289 : vector<8x128xf32>
    %cst_91 = arith.constant 5.000000e-01 : f32
    %291 = vector.broadcast %cst_91 : f32 to vector<8x128xf32>
    %292 = arith.mulf %291, %290 : vector<8x128xf32>
    %293 = vector.extract_strided_slice %284 {offsets = [0, 128], sizes = [8, 128], strides = [1, 1]} : vector<8x512xf32> to vector<8x128xf32>
    %cst_92 = arith.constant 5.000000e-01 : f32
    %294 = vector.broadcast %cst_92 : f32 to vector<8x128xf32>
    %295 = arith.mulf %294, %293 : vector<8x128xf32>
    %296 = math.tanh %295 : vector<8x128xf32>
    %cst_93 = arith.constant 1.000000e+00 : f32
    %297 = vector.broadcast %cst_93 : f32 to vector<8x128xf32>
    %298 = arith.addf %296, %297 : vector<8x128xf32>
    %cst_94 = arith.constant 5.000000e-01 : f32
    %299 = vector.broadcast %cst_94 : f32 to vector<8x128xf32>
    %300 = arith.mulf %299, %298 : vector<8x128xf32>
    %301 = vector.extract_strided_slice %284 {offsets = [0, 256], sizes = [8, 128], strides = [1, 1]} : vector<8x512xf32> to vector<8x128xf32>
    %302 = math.tanh %301 : vector<8x128xf32>
    %303 = vector.extract_strided_slice %284 {offsets = [0, 384], sizes = [8, 128], strides = [1, 1]} : vector<8x512xf32> to vector<8x128xf32>
    %cst_95 = arith.constant 5.000000e-01 : f32
    %304 = vector.broadcast %cst_95 : f32 to vector<8x128xf32>
    %305 = arith.mulf %304, %303 : vector<8x128xf32>
    %306 = math.tanh %305 : vector<8x128xf32>
    %cst_96 = arith.constant 1.000000e+00 : f32
    %307 = vector.broadcast %cst_96 : f32 to vector<8x128xf32>
    %308 = arith.addf %306, %307 : vector<8x128xf32>
    %cst_97 = arith.constant 5.000000e-01 : f32
    %309 = vector.broadcast %cst_97 : f32 to vector<8x128xf32>
    %310 = arith.mulf %309, %308 : vector<8x128xf32>
    %311 = arith.mulf %300, %280 : vector<8x128xf32>
    %312 = arith.mulf %292, %302 : vector<8x128xf32>
    %313 = arith.addf %311, %312 : vector<8x128xf32>
    %314 = math.tanh %313 : vector<8x128xf32>
    %315 = arith.mulf %310, %314 : vector<8x128xf32>
    %c6_i32 = arith.constant 6 : i32
    %316 = vector.broadcast %c6_i32 : i32 to vector<8x1xi32>
    %317 = arith.cmpi sle, %0, %316 : vector<8x1xi32>
    %318 = vector.shape_cast %317 : vector<8x1xi1> to vector<8x1xi1>
    %319 = vector.broadcast %318 : vector<8x1xi1> to vector<8x128xi1>
    %320 = arith.select %319, %315, %277 : vector<8x128xi1>, vector<8x128xf32>
    %321 = vector.shape_cast %317 : vector<8x1xi1> to vector<8x1xi1>
    %322 = vector.broadcast %321 : vector<8x1xi1> to vector<8x128xi1>
    %323 = arith.select %322, %313, %280 : vector<8x128xi1>, vector<8x128xf32>
    %c56 = arith.constant 56 : index
    %c0_98 = arith.constant 0 : index
    %324 = vector.load %arg9[%c56, %c0_98] : memref<64x512xf32, #tpu.memory_space<vmem>>, vector<8x512xf32>
    %325 = arith.truncf %320 : vector<8x128xf32> to vector<8x128xbf16>
    %cst_99 = arith.constant dense<0.000000e+00> : vector<8x512xf32>
    %326 = tpu.matmul %325, %1, %cst_99 {dimension_numbers = #tpu.dot_dimension_numbers<[1], [0], [0], [1], [0, 0, 1, 1], [], []>} : vector<8x128xbf16>, vector<128x512xbf16>, vector<8x512xf32> -> vector<8x512xf32>
    %327 = arith.addf %324, %326 : vector<8x512xf32>
    %328 = vector.extract_strided_slice %327 {offsets = [0, 0], sizes = [8, 128], strides = [1, 1]} : vector<8x512xf32> to vector<8x128xf32>
    %cst_100 = arith.constant 5.000000e-01 : f32
    %329 = vector.broadcast %cst_100 : f32 to vector<8x128xf32>
    %330 = arith.mulf %329, %328 : vector<8x128xf32>
    %331 = math.tanh %330 : vector<8x128xf32>
    %cst_101 = arith.constant 1.000000e+00 : f32
    %332 = vector.broadcast %cst_101 : f32 to vector<8x128xf32>
    %333 = arith.addf %331, %332 : vector<8x128xf32>
    %cst_102 = arith.constant 5.000000e-01 : f32
    %334 = vector.broadcast %cst_102 : f32 to vector<8x128xf32>
    %335 = arith.mulf %334, %333 : vector<8x128xf32>
    %336 = vector.extract_strided_slice %327 {offsets = [0, 128], sizes = [8, 128], strides = [1, 1]} : vector<8x512xf32> to vector<8x128xf32>
    %cst_103 = arith.constant 5.000000e-01 : f32
    %337 = vector.broadcast %cst_103 : f32 to vector<8x128xf32>
    %338 = arith.mulf %337, %336 : vector<8x128xf32>
    %339 = math.tanh %338 : vector<8x128xf32>
    %cst_104 = arith.constant 1.000000e+00 : f32
    %340 = vector.broadcast %cst_104 : f32 to vector<8x128xf32>
    %341 = arith.addf %339, %340 : vector<8x128xf32>
    %cst_105 = arith.constant 5.000000e-01 : f32
    %342 = vector.broadcast %cst_105 : f32 to vector<8x128xf32>
    %343 = arith.mulf %342, %341 : vector<8x128xf32>
    %344 = vector.extract_strided_slice %327 {offsets = [0, 256], sizes = [8, 128], strides = [1, 1]} : vector<8x512xf32> to vector<8x128xf32>
    %345 = math.tanh %344 : vector<8x128xf32>
    %346 = vector.extract_strided_slice %327 {offsets = [0, 384], sizes = [8, 128], strides = [1, 1]} : vector<8x512xf32> to vector<8x128xf32>
    %cst_106 = arith.constant 5.000000e-01 : f32
    %347 = vector.broadcast %cst_106 : f32 to vector<8x128xf32>
    %348 = arith.mulf %347, %346 : vector<8x128xf32>
    %349 = math.tanh %348 : vector<8x128xf32>
    %cst_107 = arith.constant 1.000000e+00 : f32
    %350 = vector.broadcast %cst_107 : f32 to vector<8x128xf32>
    %351 = arith.addf %349, %350 : vector<8x128xf32>
    %cst_108 = arith.constant 5.000000e-01 : f32
    %352 = vector.broadcast %cst_108 : f32 to vector<8x128xf32>
    %353 = arith.mulf %352, %351 : vector<8x128xf32>
    %354 = arith.mulf %343, %323 : vector<8x128xf32>
    %355 = arith.mulf %335, %345 : vector<8x128xf32>
    %356 = arith.addf %354, %355 : vector<8x128xf32>
    %357 = math.tanh %356 : vector<8x128xf32>
    %358 = arith.mulf %353, %357 : vector<8x128xf32>
    %c7_i32 = arith.constant 7 : i32
    %359 = vector.broadcast %c7_i32 : i32 to vector<8x1xi32>
    %360 = arith.cmpi sle, %0, %359 : vector<8x1xi32>
    %361 = vector.shape_cast %360 : vector<8x1xi1> to vector<8x1xi1>
    %362 = vector.broadcast %361 : vector<8x1xi1> to vector<8x128xi1>
    %363 = arith.select %362, %358, %320 : vector<8x128xi1>, vector<8x128xf32>
    %364 = vector.shape_cast %360 : vector<8x1xi1> to vector<8x1xi1>
    %365 = vector.broadcast %364 : vector<8x1xi1> to vector<8x128xi1>
    %366 = arith.select %365, %356, %323 : vector<8x128xi1>, vector<8x128xf32>
    %c0_109 = arith.constant 0 : index
    %c0_110 = arith.constant 0 : index
    %367 = vector.load %arg7[%c0_109, %c0_110] : memref<8x128xf32, #tpu.memory_space<vmem>>, vector<8x128xf32>
    tpu.vector_store %arg7[%c0_109, %c0_110], %363 {strides = array<i32>} : memref<8x128xf32, #tpu.memory_space<vmem>>, vector<8x128xf32>,
    %c0_111 = arith.constant 0 : index
    %c0_112 = arith.constant 0 : index
    %368 = vector.load %arg8[%c0_111, %c0_112] : memref<8x128xf32, #tpu.memory_space<vmem>>, vector<8x128xf32>
    tpu.vector_store %arg8[%c0_111, %c0_112], %366 {strides = array<i32>} : memref<8x128xf32, #tpu.memory_space<vmem>>, vector<8x128xf32>,
    return
  }
}

module attributes {stable_mosaic.version = 11 : i64} {
  func.func @decoder_kernel(%arg0: i32, %arg1: memref<8x128xf32, #tpu.memory_space<vmem>>, %arg2: memref<8x128xf32, #tpu.memory_space<vmem>>, %arg3: memref<8x16xf32, #tpu.memory_space<vmem>>, %arg4: memref<2x16xbf16, #tpu.memory_space<vmem>>, %arg5: memref<1x16xf32, #tpu.memory_space<vmem>>, %arg6: memref<16x512xbf16, #tpu.memory_space<vmem>>, %arg7: memref<128x512xbf16, #tpu.memory_space<vmem>>, %arg8: memref<1x512xf32, #tpu.memory_space<vmem>>, %arg9: memref<128x64xbf16, #tpu.memory_space<vmem>>, %arg10: memref<1x64xf32, #tpu.memory_space<vmem>>, %arg11: memref<64x128xbf16, #tpu.memory_space<vmem>>, %arg12: memref<1x128xf32, #tpu.memory_space<vmem>>, %arg13: memref<8x128xf32, #tpu.memory_space<vmem>>) attributes {dimension_semantics = [#tpu.dimension_semantics<parallel>], iteration_bounds = array<i64: 1>, scalar_prefetch = 0 : i64, scratch_operands = 0 : i64, tpu.core_type = #tpu.core_type<tc>, window_params = [{transform_indices = @transform_0, window_bounds = array<i64: 8, 128>}, {transform_indices = @transform_1, window_bounds = array<i64: 8, 128>}, {transform_indices = @transform_2, window_bounds = array<i64: 8, 16>}, {pipeline_mode = #tpu.pipeline_mode<synchronous>, transform_indices = @transform_3, window_bounds = array<i64: 2, 16>}, {pipeline_mode = #tpu.pipeline_mode<synchronous>, transform_indices = @transform_4, window_bounds = array<i64: 1, 16>}, {pipeline_mode = #tpu.pipeline_mode<synchronous>, transform_indices = @transform_5, window_bounds = array<i64: 16, 512>}, {pipeline_mode = #tpu.pipeline_mode<synchronous>, transform_indices = @transform_6, window_bounds = array<i64: 128, 512>}, {pipeline_mode = #tpu.pipeline_mode<synchronous>, transform_indices = @transform_7, window_bounds = array<i64: 1, 512>}, {pipeline_mode = #tpu.pipeline_mode<synchronous>, transform_indices = @transform_8, window_bounds = array<i64: 128, 64>}, {pipeline_mode = #tpu.pipeline_mode<synchronous>, transform_indices = @transform_9, window_bounds = array<i64: 1, 64>}, {pipeline_mode = #tpu.pipeline_mode<synchronous>, transform_indices = @transform_10, window_bounds = array<i64: 64, 128>}, {pipeline_mode = #tpu.pipeline_mode<synchronous>, transform_indices = @transform_11, window_bounds = array<i64: 1, 128>}, {transform_indices = @transform_12, window_bounds = array<i64: 8, 128>}]} {
    %c0 = arith.constant 0 : index
    %c0_0 = arith.constant 0 : index
    %0 = vector.load %arg4[%c0, %c0_0] : memref<2x16xbf16, #tpu.memory_space<vmem>>, vector<2x16xbf16>
    %c0_1 = arith.constant 0 : index
    %c0_2 = arith.constant 0 : index
    %1 = vector.load %arg5[%c0_1, %c0_2] : memref<1x16xf32, #tpu.memory_space<vmem>>, vector<1x16xf32>
    %c0_3 = arith.constant 0 : index
    %c0_4 = arith.constant 0 : index
    %2 = vector.load %arg6[%c0_3, %c0_4] : memref<16x512xbf16, #tpu.memory_space<vmem>>, vector<16x512xbf16>
    %c0_5 = arith.constant 0 : index
    %c0_6 = arith.constant 0 : index
    %3 = vector.load %arg7[%c0_5, %c0_6] : memref<128x512xbf16, #tpu.memory_space<vmem>>, vector<128x512xbf16>
    %c0_7 = arith.constant 0 : index
    %c0_8 = arith.constant 0 : index
    %4 = vector.load %arg8[%c0_7, %c0_8] : memref<1x512xf32, #tpu.memory_space<vmem>>, vector<1x512xf32>
    %c0_9 = arith.constant 0 : index
    %c0_10 = arith.constant 0 : index
    %5 = vector.load %arg1[%c0_9, %c0_10] : memref<8x128xf32, #tpu.memory_space<vmem>>, vector<8x128xf32>
    %c0_11 = arith.constant 0 : index
    %c0_12 = arith.constant 0 : index
    %6 = vector.load %arg2[%c0_11, %c0_12] : memref<8x128xf32, #tpu.memory_space<vmem>>, vector<8x128xf32>
    %c0_13 = arith.constant 0 : index
    %c0_14 = arith.constant 0 : index
    %7 = vector.load %arg3[%c0_13, %c0_14] : memref<8x16xf32, #tpu.memory_space<vmem>>, vector<8x16xf32>
    %8 = vector.extract_strided_slice %7 {offsets = [0, 0], sizes = [8, 2], strides = [1, 1]} : vector<8x16xf32> to vector<8x2xf32>
    %9 = arith.truncf %8 : vector<8x2xf32> to vector<8x2xbf16>
    %cst = arith.constant dense<0.000000e+00> : vector<8x16xf32>
    %10 = tpu.matmul %9, %0, %cst {dimension_numbers = #tpu.dot_dimension_numbers<[1], [0], [0], [1], [0, 0, 1, 1], [], []>} : vector<8x2xbf16>, vector<2x16xbf16>, vector<8x16xf32> -> vector<8x16xf32>
    %11 = vector.broadcast %1 : vector<1x16xf32> to vector<8x16xf32>
    %12 = arith.addf %10, %11 : vector<8x16xf32>
    %cst_15 = arith.constant 0.000000e+00 : f32
    %13 = vector.broadcast %cst_15 : f32 to vector<8x16xf32>
    %14 = arith.maximumf %12, %13 : vector<8x16xf32>
    %15 = arith.truncf %14 : vector<8x16xf32> to vector<8x16xbf16>
    %cst_16 = arith.constant dense<0.000000e+00> : vector<8x512xf32>
    %16 = tpu.matmul %15, %2, %cst_16 {dimension_numbers = #tpu.dot_dimension_numbers<[1], [0], [0], [1], [0, 0, 1, 1], [], []>} : vector<8x16xbf16>, vector<16x512xbf16>, vector<8x512xf32> -> vector<8x512xf32>
    %17 = vector.broadcast %4 : vector<1x512xf32> to vector<8x512xf32>
    %18 = arith.addf %16, %17 : vector<8x512xf32>
    %19 = arith.truncf %5 : vector<8x128xf32> to vector<8x128xbf16>
    %cst_17 = arith.constant dense<0.000000e+00> : vector<8x512xf32>
    %20 = tpu.matmul %19, %3, %cst_17 {dimension_numbers = #tpu.dot_dimension_numbers<[1], [0], [0], [1], [0, 0, 1, 1], [], []>} : vector<8x128xbf16>, vector<128x512xbf16>, vector<8x512xf32> -> vector<8x512xf32>
    %21 = arith.addf %18, %20 : vector<8x512xf32>
    %22 = vector.extract_strided_slice %21 {offsets = [0, 0], sizes = [8, 128], strides = [1, 1]} : vector<8x512xf32> to vector<8x128xf32>
    %cst_18 = arith.constant 5.000000e-01 : f32
    %23 = vector.broadcast %cst_18 : f32 to vector<8x128xf32>
    %24 = arith.mulf %23, %22 : vector<8x128xf32>
    %25 = math.tanh %24 : vector<8x128xf32>
    %cst_19 = arith.constant 1.000000e+00 : f32
    %26 = vector.broadcast %cst_19 : f32 to vector<8x128xf32>
    %27 = arith.addf %25, %26 : vector<8x128xf32>
    %cst_20 = arith.constant 5.000000e-01 : f32
    %28 = vector.broadcast %cst_20 : f32 to vector<8x128xf32>
    %29 = arith.mulf %28, %27 : vector<8x128xf32>
    %30 = vector.extract_strided_slice %21 {offsets = [0, 128], sizes = [8, 128], strides = [1, 1]} : vector<8x512xf32> to vector<8x128xf32>
    %cst_21 = arith.constant 5.000000e-01 : f32
    %31 = vector.broadcast %cst_21 : f32 to vector<8x128xf32>
    %32 = arith.mulf %31, %30 : vector<8x128xf32>
    %33 = math.tanh %32 : vector<8x128xf32>
    %cst_22 = arith.constant 1.000000e+00 : f32
    %34 = vector.broadcast %cst_22 : f32 to vector<8x128xf32>
    %35 = arith.addf %33, %34 : vector<8x128xf32>
    %cst_23 = arith.constant 5.000000e-01 : f32
    %36 = vector.broadcast %cst_23 : f32 to vector<8x128xf32>
    %37 = arith.mulf %36, %35 : vector<8x128xf32>
    %38 = vector.extract_strided_slice %21 {offsets = [0, 256], sizes = [8, 128], strides = [1, 1]} : vector<8x512xf32> to vector<8x128xf32>
    %39 = math.tanh %38 : vector<8x128xf32>
    %40 = vector.extract_strided_slice %21 {offsets = [0, 384], sizes = [8, 128], strides = [1, 1]} : vector<8x512xf32> to vector<8x128xf32>
    %cst_24 = arith.constant 5.000000e-01 : f32
    %41 = vector.broadcast %cst_24 : f32 to vector<8x128xf32>
    %42 = arith.mulf %41, %40 : vector<8x128xf32>
    %43 = math.tanh %42 : vector<8x128xf32>
    %cst_25 = arith.constant 1.000000e+00 : f32
    %44 = vector.broadcast %cst_25 : f32 to vector<8x128xf32>
    %45 = arith.addf %43, %44 : vector<8x128xf32>
    %cst_26 = arith.constant 5.000000e-01 : f32
    %46 = vector.broadcast %cst_26 : f32 to vector<8x128xf32>
    %47 = arith.mulf %46, %45 : vector<8x128xf32>
    %48 = arith.mulf %37, %6 : vector<8x128xf32>
    %49 = arith.mulf %29, %39 : vector<8x128xf32>
    %50 = arith.addf %48, %49 : vector<8x128xf32>
    %51 = math.tanh %50 : vector<8x128xf32>
    %52 = arith.mulf %47, %51 : vector<8x128xf32>
    %53 = vector.extract_strided_slice %7 {offsets = [0, 2], sizes = [8, 2], strides = [1, 1]} : vector<8x16xf32> to vector<8x2xf32>
    %54 = arith.truncf %53 : vector<8x2xf32> to vector<8x2xbf16>
    %cst_27 = arith.constant dense<0.000000e+00> : vector<8x16xf32>
    %55 = tpu.matmul %54, %0, %cst_27 {dimension_numbers = #tpu.dot_dimension_numbers<[1], [0], [0], [1], [0, 0, 1, 1], [], []>} : vector<8x2xbf16>, vector<2x16xbf16>, vector<8x16xf32> -> vector<8x16xf32>
    %56 = vector.broadcast %1 : vector<1x16xf32> to vector<8x16xf32>
    %57 = arith.addf %55, %56 : vector<8x16xf32>
    %cst_28 = arith.constant 0.000000e+00 : f32
    %58 = vector.broadcast %cst_28 : f32 to vector<8x16xf32>
    %59 = arith.maximumf %57, %58 : vector<8x16xf32>
    %60 = arith.truncf %59 : vector<8x16xf32> to vector<8x16xbf16>
    %cst_29 = arith.constant dense<0.000000e+00> : vector<8x512xf32>
    %61 = tpu.matmul %60, %2, %cst_29 {dimension_numbers = #tpu.dot_dimension_numbers<[1], [0], [0], [1], [0, 0, 1, 1], [], []>} : vector<8x16xbf16>, vector<16x512xbf16>, vector<8x512xf32> -> vector<8x512xf32>
    %62 = vector.broadcast %4 : vector<1x512xf32> to vector<8x512xf32>
    %63 = arith.addf %61, %62 : vector<8x512xf32>
    %64 = arith.truncf %52 : vector<8x128xf32> to vector<8x128xbf16>
    %cst_30 = arith.constant dense<0.000000e+00> : vector<8x512xf32>
    %65 = tpu.matmul %64, %3, %cst_30 {dimension_numbers = #tpu.dot_dimension_numbers<[1], [0], [0], [1], [0, 0, 1, 1], [], []>} : vector<8x128xbf16>, vector<128x512xbf16>, vector<8x512xf32> -> vector<8x512xf32>
    %66 = arith.addf %63, %65 : vector<8x512xf32>
    %67 = vector.extract_strided_slice %66 {offsets = [0, 0], sizes = [8, 128], strides = [1, 1]} : vector<8x512xf32> to vector<8x128xf32>
    %cst_31 = arith.constant 5.000000e-01 : f32
    %68 = vector.broadcast %cst_31 : f32 to vector<8x128xf32>
    %69 = arith.mulf %68, %67 : vector<8x128xf32>
    %70 = math.tanh %69 : vector<8x128xf32>
    %cst_32 = arith.constant 1.000000e+00 : f32
    %71 = vector.broadcast %cst_32 : f32 to vector<8x128xf32>
    %72 = arith.addf %70, %71 : vector<8x128xf32>
    %cst_33 = arith.constant 5.000000e-01 : f32
    %73 = vector.broadcast %cst_33 : f32 to vector<8x128xf32>
    %74 = arith.mulf %73, %72 : vector<8x128xf32>
    %75 = vector.extract_strided_slice %66 {offsets = [0, 128], sizes = [8, 128], strides = [1, 1]} : vector<8x512xf32> to vector<8x128xf32>
    %cst_34 = arith.constant 5.000000e-01 : f32
    %76 = vector.broadcast %cst_34 : f32 to vector<8x128xf32>
    %77 = arith.mulf %76, %75 : vector<8x128xf32>
    %78 = math.tanh %77 : vector<8x128xf32>
    %cst_35 = arith.constant 1.000000e+00 : f32
    %79 = vector.broadcast %cst_35 : f32 to vector<8x128xf32>
    %80 = arith.addf %78, %79 : vector<8x128xf32>
    %cst_36 = arith.constant 5.000000e-01 : f32
    %81 = vector.broadcast %cst_36 : f32 to vector<8x128xf32>
    %82 = arith.mulf %81, %80 : vector<8x128xf32>
    %83 = vector.extract_strided_slice %66 {offsets = [0, 256], sizes = [8, 128], strides = [1, 1]} : vector<8x512xf32> to vector<8x128xf32>
    %84 = math.tanh %83 : vector<8x128xf32>
    %85 = vector.extract_strided_slice %66 {offsets = [0, 384], sizes = [8, 128], strides = [1, 1]} : vector<8x512xf32> to vector<8x128xf32>
    %cst_37 = arith.constant 5.000000e-01 : f32
    %86 = vector.broadcast %cst_37 : f32 to vector<8x128xf32>
    %87 = arith.mulf %86, %85 : vector<8x128xf32>
    %88 = math.tanh %87 : vector<8x128xf32>
    %cst_38 = arith.constant 1.000000e+00 : f32
    %89 = vector.broadcast %cst_38 : f32 to vector<8x128xf32>
    %90 = arith.addf %88, %89 : vector<8x128xf32>
    %cst_39 = arith.constant 5.000000e-01 : f32
    %91 = vector.broadcast %cst_39 : f32 to vector<8x128xf32>
    %92 = arith.mulf %91, %90 : vector<8x128xf32>
    %93 = arith.mulf %82, %50 : vector<8x128xf32>
    %94 = arith.mulf %74, %84 : vector<8x128xf32>
    %95 = arith.addf %93, %94 : vector<8x128xf32>
    %96 = math.tanh %95 : vector<8x128xf32>
    %97 = arith.mulf %92, %96 : vector<8x128xf32>
    %98 = vector.extract_strided_slice %7 {offsets = [0, 4], sizes = [8, 2], strides = [1, 1]} : vector<8x16xf32> to vector<8x2xf32>
    %99 = arith.truncf %98 : vector<8x2xf32> to vector<8x2xbf16>
    %cst_40 = arith.constant dense<0.000000e+00> : vector<8x16xf32>
    %100 = tpu.matmul %99, %0, %cst_40 {dimension_numbers = #tpu.dot_dimension_numbers<[1], [0], [0], [1], [0, 0, 1, 1], [], []>} : vector<8x2xbf16>, vector<2x16xbf16>, vector<8x16xf32> -> vector<8x16xf32>
    %101 = vector.broadcast %1 : vector<1x16xf32> to vector<8x16xf32>
    %102 = arith.addf %100, %101 : vector<8x16xf32>
    %cst_41 = arith.constant 0.000000e+00 : f32
    %103 = vector.broadcast %cst_41 : f32 to vector<8x16xf32>
    %104 = arith.maximumf %102, %103 : vector<8x16xf32>
    %105 = arith.truncf %104 : vector<8x16xf32> to vector<8x16xbf16>
    %cst_42 = arith.constant dense<0.000000e+00> : vector<8x512xf32>
    %106 = tpu.matmul %105, %2, %cst_42 {dimension_numbers = #tpu.dot_dimension_numbers<[1], [0], [0], [1], [0, 0, 1, 1], [], []>} : vector<8x16xbf16>, vector<16x512xbf16>, vector<8x512xf32> -> vector<8x512xf32>
    %107 = vector.broadcast %4 : vector<1x512xf32> to vector<8x512xf32>
    %108 = arith.addf %106, %107 : vector<8x512xf32>
    %109 = arith.truncf %97 : vector<8x128xf32> to vector<8x128xbf16>
    %cst_43 = arith.constant dense<0.000000e+00> : vector<8x512xf32>
    %110 = tpu.matmul %109, %3, %cst_43 {dimension_numbers = #tpu.dot_dimension_numbers<[1], [0], [0], [1], [0, 0, 1, 1], [], []>} : vector<8x128xbf16>, vector<128x512xbf16>, vector<8x512xf32> -> vector<8x512xf32>
    %111 = arith.addf %108, %110 : vector<8x512xf32>
    %112 = vector.extract_strided_slice %111 {offsets = [0, 0], sizes = [8, 128], strides = [1, 1]} : vector<8x512xf32> to vector<8x128xf32>
    %cst_44 = arith.constant 5.000000e-01 : f32
    %113 = vector.broadcast %cst_44 : f32 to vector<8x128xf32>
    %114 = arith.mulf %113, %112 : vector<8x128xf32>
    %115 = math.tanh %114 : vector<8x128xf32>
    %cst_45 = arith.constant 1.000000e+00 : f32
    %116 = vector.broadcast %cst_45 : f32 to vector<8x128xf32>
    %117 = arith.addf %115, %116 : vector<8x128xf32>
    %cst_46 = arith.constant 5.000000e-01 : f32
    %118 = vector.broadcast %cst_46 : f32 to vector<8x128xf32>
    %119 = arith.mulf %118, %117 : vector<8x128xf32>
    %120 = vector.extract_strided_slice %111 {offsets = [0, 128], sizes = [8, 128], strides = [1, 1]} : vector<8x512xf32> to vector<8x128xf32>
    %cst_47 = arith.constant 5.000000e-01 : f32
    %121 = vector.broadcast %cst_47 : f32 to vector<8x128xf32>
    %122 = arith.mulf %121, %120 : vector<8x128xf32>
    %123 = math.tanh %122 : vector<8x128xf32>
    %cst_48 = arith.constant 1.000000e+00 : f32
    %124 = vector.broadcast %cst_48 : f32 to vector<8x128xf32>
    %125 = arith.addf %123, %124 : vector<8x128xf32>
    %cst_49 = arith.constant 5.000000e-01 : f32
    %126 = vector.broadcast %cst_49 : f32 to vector<8x128xf32>
    %127 = arith.mulf %126, %125 : vector<8x128xf32>
    %128 = vector.extract_strided_slice %111 {offsets = [0, 256], sizes = [8, 128], strides = [1, 1]} : vector<8x512xf32> to vector<8x128xf32>
    %129 = math.tanh %128 : vector<8x128xf32>
    %130 = vector.extract_strided_slice %111 {offsets = [0, 384], sizes = [8, 128], strides = [1, 1]} : vector<8x512xf32> to vector<8x128xf32>
    %cst_50 = arith.constant 5.000000e-01 : f32
    %131 = vector.broadcast %cst_50 : f32 to vector<8x128xf32>
    %132 = arith.mulf %131, %130 : vector<8x128xf32>
    %133 = math.tanh %132 : vector<8x128xf32>
    %cst_51 = arith.constant 1.000000e+00 : f32
    %134 = vector.broadcast %cst_51 : f32 to vector<8x128xf32>
    %135 = arith.addf %133, %134 : vector<8x128xf32>
    %cst_52 = arith.constant 5.000000e-01 : f32
    %136 = vector.broadcast %cst_52 : f32 to vector<8x128xf32>
    %137 = arith.mulf %136, %135 : vector<8x128xf32>
    %138 = arith.mulf %127, %95 : vector<8x128xf32>
    %139 = arith.mulf %119, %129 : vector<8x128xf32>
    %140 = arith.addf %138, %139 : vector<8x128xf32>
    %141 = math.tanh %140 : vector<8x128xf32>
    %142 = arith.mulf %137, %141 : vector<8x128xf32>
    %143 = vector.extract_strided_slice %7 {offsets = [0, 6], sizes = [8, 2], strides = [1, 1]} : vector<8x16xf32> to vector<8x2xf32>
    %144 = arith.truncf %143 : vector<8x2xf32> to vector<8x2xbf16>
    %cst_53 = arith.constant dense<0.000000e+00> : vector<8x16xf32>
    %145 = tpu.matmul %144, %0, %cst_53 {dimension_numbers = #tpu.dot_dimension_numbers<[1], [0], [0], [1], [0, 0, 1, 1], [], []>} : vector<8x2xbf16>, vector<2x16xbf16>, vector<8x16xf32> -> vector<8x16xf32>
    %146 = vector.broadcast %1 : vector<1x16xf32> to vector<8x16xf32>
    %147 = arith.addf %145, %146 : vector<8x16xf32>
    %cst_54 = arith.constant 0.000000e+00 : f32
    %148 = vector.broadcast %cst_54 : f32 to vector<8x16xf32>
    %149 = arith.maximumf %147, %148 : vector<8x16xf32>
    %150 = arith.truncf %149 : vector<8x16xf32> to vector<8x16xbf16>
    %cst_55 = arith.constant dense<0.000000e+00> : vector<8x512xf32>
    %151 = tpu.matmul %150, %2, %cst_55 {dimension_numbers = #tpu.dot_dimension_numbers<[1], [0], [0], [1], [0, 0, 1, 1], [], []>} : vector<8x16xbf16>, vector<16x512xbf16>, vector<8x512xf32> -> vector<8x512xf32>
    %152 = vector.broadcast %4 : vector<1x512xf32> to vector<8x512xf32>
    %153 = arith.addf %151, %152 : vector<8x512xf32>
    %154 = arith.truncf %142 : vector<8x128xf32> to vector<8x128xbf16>
    %cst_56 = arith.constant dense<0.000000e+00> : vector<8x512xf32>
    %155 = tpu.matmul %154, %3, %cst_56 {dimension_numbers = #tpu.dot_dimension_numbers<[1], [0], [0], [1], [0, 0, 1, 1], [], []>} : vector<8x128xbf16>, vector<128x512xbf16>, vector<8x512xf32> -> vector<8x512xf32>
    %156 = arith.addf %153, %155 : vector<8x512xf32>
    %157 = vector.extract_strided_slice %156 {offsets = [0, 0], sizes = [8, 128], strides = [1, 1]} : vector<8x512xf32> to vector<8x128xf32>
    %cst_57 = arith.constant 5.000000e-01 : f32
    %158 = vector.broadcast %cst_57 : f32 to vector<8x128xf32>
    %159 = arith.mulf %158, %157 : vector<8x128xf32>
    %160 = math.tanh %159 : vector<8x128xf32>
    %cst_58 = arith.constant 1.000000e+00 : f32
    %161 = vector.broadcast %cst_58 : f32 to vector<8x128xf32>
    %162 = arith.addf %160, %161 : vector<8x128xf32>
    %cst_59 = arith.constant 5.000000e-01 : f32
    %163 = vector.broadcast %cst_59 : f32 to vector<8x128xf32>
    %164 = arith.mulf %163, %162 : vector<8x128xf32>
    %165 = vector.extract_strided_slice %156 {offsets = [0, 128], sizes = [8, 128], strides = [1, 1]} : vector<8x512xf32> to vector<8x128xf32>
    %cst_60 = arith.constant 5.000000e-01 : f32
    %166 = vector.broadcast %cst_60 : f32 to vector<8x128xf32>
    %167 = arith.mulf %166, %165 : vector<8x128xf32>
    %168 = math.tanh %167 : vector<8x128xf32>
    %cst_61 = arith.constant 1.000000e+00 : f32
    %169 = vector.broadcast %cst_61 : f32 to vector<8x128xf32>
    %170 = arith.addf %168, %169 : vector<8x128xf32>
    %cst_62 = arith.constant 5.000000e-01 : f32
    %171 = vector.broadcast %cst_62 : f32 to vector<8x128xf32>
    %172 = arith.mulf %171, %170 : vector<8x128xf32>
    %173 = vector.extract_strided_slice %156 {offsets = [0, 256], sizes = [8, 128], strides = [1, 1]} : vector<8x512xf32> to vector<8x128xf32>
    %174 = math.tanh %173 : vector<8x128xf32>
    %175 = vector.extract_strided_slice %156 {offsets = [0, 384], sizes = [8, 128], strides = [1, 1]} : vector<8x512xf32> to vector<8x128xf32>
    %cst_63 = arith.constant 5.000000e-01 : f32
    %176 = vector.broadcast %cst_63 : f32 to vector<8x128xf32>
    %177 = arith.mulf %176, %175 : vector<8x128xf32>
    %178 = math.tanh %177 : vector<8x128xf32>
    %cst_64 = arith.constant 1.000000e+00 : f32
    %179 = vector.broadcast %cst_64 : f32 to vector<8x128xf32>
    %180 = arith.addf %178, %179 : vector<8x128xf32>
    %cst_65 = arith.constant 5.000000e-01 : f32
    %181 = vector.broadcast %cst_65 : f32 to vector<8x128xf32>
    %182 = arith.mulf %181, %180 : vector<8x128xf32>
    %183 = arith.mulf %172, %140 : vector<8x128xf32>
    %184 = arith.mulf %164, %174 : vector<8x128xf32>
    %185 = arith.addf %183, %184 : vector<8x128xf32>
    %186 = math.tanh %185 : vector<8x128xf32>
    %187 = arith.mulf %182, %186 : vector<8x128xf32>
    %188 = vector.extract_strided_slice %7 {offsets = [0, 8], sizes = [8, 2], strides = [1, 1]} : vector<8x16xf32> to vector<8x2xf32>
    %189 = arith.truncf %188 : vector<8x2xf32> to vector<8x2xbf16>
    %cst_66 = arith.constant dense<0.000000e+00> : vector<8x16xf32>
    %190 = tpu.matmul %189, %0, %cst_66 {dimension_numbers = #tpu.dot_dimension_numbers<[1], [0], [0], [1], [0, 0, 1, 1], [], []>} : vector<8x2xbf16>, vector<2x16xbf16>, vector<8x16xf32> -> vector<8x16xf32>
    %191 = vector.broadcast %1 : vector<1x16xf32> to vector<8x16xf32>
    %192 = arith.addf %190, %191 : vector<8x16xf32>
    %cst_67 = arith.constant 0.000000e+00 : f32
    %193 = vector.broadcast %cst_67 : f32 to vector<8x16xf32>
    %194 = arith.maximumf %192, %193 : vector<8x16xf32>
    %195 = arith.truncf %194 : vector<8x16xf32> to vector<8x16xbf16>
    %cst_68 = arith.constant dense<0.000000e+00> : vector<8x512xf32>
    %196 = tpu.matmul %195, %2, %cst_68 {dimension_numbers = #tpu.dot_dimension_numbers<[1], [0], [0], [1], [0, 0, 1, 1], [], []>} : vector<8x16xbf16>, vector<16x512xbf16>, vector<8x512xf32> -> vector<8x512xf32>
    %197 = vector.broadcast %4 : vector<1x512xf32> to vector<8x512xf32>
    %198 = arith.addf %196, %197 : vector<8x512xf32>
    %199 = arith.truncf %187 : vector<8x128xf32> to vector<8x128xbf16>
    %cst_69 = arith.constant dense<0.000000e+00> : vector<8x512xf32>
    %200 = tpu.matmul %199, %3, %cst_69 {dimension_numbers = #tpu.dot_dimension_numbers<[1], [0], [0], [1], [0, 0, 1, 1], [], []>} : vector<8x128xbf16>, vector<128x512xbf16>, vector<8x512xf32> -> vector<8x512xf32>
    %201 = arith.addf %198, %200 : vector<8x512xf32>
    %202 = vector.extract_strided_slice %201 {offsets = [0, 0], sizes = [8, 128], strides = [1, 1]} : vector<8x512xf32> to vector<8x128xf32>
    %cst_70 = arith.constant 5.000000e-01 : f32
    %203 = vector.broadcast %cst_70 : f32 to vector<8x128xf32>
    %204 = arith.mulf %203, %202 : vector<8x128xf32>
    %205 = math.tanh %204 : vector<8x128xf32>
    %cst_71 = arith.constant 1.000000e+00 : f32
    %206 = vector.broadcast %cst_71 : f32 to vector<8x128xf32>
    %207 = arith.addf %205, %206 : vector<8x128xf32>
    %cst_72 = arith.constant 5.000000e-01 : f32
    %208 = vector.broadcast %cst_72 : f32 to vector<8x128xf32>
    %209 = arith.mulf %208, %207 : vector<8x128xf32>
    %210 = vector.extract_strided_slice %201 {offsets = [0, 128], sizes = [8, 128], strides = [1, 1]} : vector<8x512xf32> to vector<8x128xf32>
    %cst_73 = arith.constant 5.000000e-01 : f32
    %211 = vector.broadcast %cst_73 : f32 to vector<8x128xf32>
    %212 = arith.mulf %211, %210 : vector<8x128xf32>
    %213 = math.tanh %212 : vector<8x128xf32>
    %cst_74 = arith.constant 1.000000e+00 : f32
    %214 = vector.broadcast %cst_74 : f32 to vector<8x128xf32>
    %215 = arith.addf %213, %214 : vector<8x128xf32>
    %cst_75 = arith.constant 5.000000e-01 : f32
    %216 = vector.broadcast %cst_75 : f32 to vector<8x128xf32>
    %217 = arith.mulf %216, %215 : vector<8x128xf32>
    %218 = vector.extract_strided_slice %201 {offsets = [0, 256], sizes = [8, 128], strides = [1, 1]} : vector<8x512xf32> to vector<8x128xf32>
    %219 = math.tanh %218 : vector<8x128xf32>
    %220 = vector.extract_strided_slice %201 {offsets = [0, 384], sizes = [8, 128], strides = [1, 1]} : vector<8x512xf32> to vector<8x128xf32>
    %cst_76 = arith.constant 5.000000e-01 : f32
    %221 = vector.broadcast %cst_76 : f32 to vector<8x128xf32>
    %222 = arith.mulf %221, %220 : vector<8x128xf32>
    %223 = math.tanh %222 : vector<8x128xf32>
    %cst_77 = arith.constant 1.000000e+00 : f32
    %224 = vector.broadcast %cst_77 : f32 to vector<8x128xf32>
    %225 = arith.addf %223, %224 : vector<8x128xf32>
    %cst_78 = arith.constant 5.000000e-01 : f32
    %226 = vector.broadcast %cst_78 : f32 to vector<8x128xf32>
    %227 = arith.mulf %226, %225 : vector<8x128xf32>
    %228 = arith.mulf %217, %185 : vector<8x128xf32>
    %229 = arith.mulf %209, %219 : vector<8x128xf32>
    %230 = arith.addf %228, %229 : vector<8x128xf32>
    %231 = math.tanh %230 : vector<8x128xf32>
    %232 = arith.mulf %227, %231 : vector<8x128xf32>
    %233 = vector.extract_strided_slice %7 {offsets = [0, 10], sizes = [8, 2], strides = [1, 1]} : vector<8x16xf32> to vector<8x2xf32>
    %234 = arith.truncf %233 : vector<8x2xf32> to vector<8x2xbf16>
    %cst_79 = arith.constant dense<0.000000e+00> : vector<8x16xf32>
    %235 = tpu.matmul %234, %0, %cst_79 {dimension_numbers = #tpu.dot_dimension_numbers<[1], [0], [0], [1], [0, 0, 1, 1], [], []>} : vector<8x2xbf16>, vector<2x16xbf16>, vector<8x16xf32> -> vector<8x16xf32>
    %236 = vector.broadcast %1 : vector<1x16xf32> to vector<8x16xf32>
    %237 = arith.addf %235, %236 : vector<8x16xf32>
    %cst_80 = arith.constant 0.000000e+00 : f32
    %238 = vector.broadcast %cst_80 : f32 to vector<8x16xf32>
    %239 = arith.maximumf %237, %238 : vector<8x16xf32>
    %240 = arith.truncf %239 : vector<8x16xf32> to vector<8x16xbf16>
    %cst_81 = arith.constant dense<0.000000e+00> : vector<8x512xf32>
    %241 = tpu.matmul %240, %2, %cst_81 {dimension_numbers = #tpu.dot_dimension_numbers<[1], [0], [0], [1], [0, 0, 1, 1], [], []>} : vector<8x16xbf16>, vector<16x512xbf16>, vector<8x512xf32> -> vector<8x512xf32>
    %242 = vector.broadcast %4 : vector<1x512xf32> to vector<8x512xf32>
    %243 = arith.addf %241, %242 : vector<8x512xf32>
    %244 = arith.truncf %232 : vector<8x128xf32> to vector<8x128xbf16>
    %cst_82 = arith.constant dense<0.000000e+00> : vector<8x512xf32>
    %245 = tpu.matmul %244, %3, %cst_82 {dimension_numbers = #tpu.dot_dimension_numbers<[1], [0], [0], [1], [0, 0, 1, 1], [], []>} : vector<8x128xbf16>, vector<128x512xbf16>, vector<8x512xf32> -> vector<8x512xf32>
    %246 = arith.addf %243, %245 : vector<8x512xf32>
    %247 = vector.extract_strided_slice %246 {offsets = [0, 0], sizes = [8, 128], strides = [1, 1]} : vector<8x512xf32> to vector<8x128xf32>
    %cst_83 = arith.constant 5.000000e-01 : f32
    %248 = vector.broadcast %cst_83 : f32 to vector<8x128xf32>
    %249 = arith.mulf %248, %247 : vector<8x128xf32>
    %250 = math.tanh %249 : vector<8x128xf32>
    %cst_84 = arith.constant 1.000000e+00 : f32
    %251 = vector.broadcast %cst_84 : f32 to vector<8x128xf32>
    %252 = arith.addf %250, %251 : vector<8x128xf32>
    %cst_85 = arith.constant 5.000000e-01 : f32
    %253 = vector.broadcast %cst_85 : f32 to vector<8x128xf32>
    %254 = arith.mulf %253, %252 : vector<8x128xf32>
    %255 = vector.extract_strided_slice %246 {offsets = [0, 128], sizes = [8, 128], strides = [1, 1]} : vector<8x512xf32> to vector<8x128xf32>
    %cst_86 = arith.constant 5.000000e-01 : f32
    %256 = vector.broadcast %cst_86 : f32 to vector<8x128xf32>
    %257 = arith.mulf %256, %255 : vector<8x128xf32>
    %258 = math.tanh %257 : vector<8x128xf32>
    %cst_87 = arith.constant 1.000000e+00 : f32
    %259 = vector.broadcast %cst_87 : f32 to vector<8x128xf32>
    %260 = arith.addf %258, %259 : vector<8x128xf32>
    %cst_88 = arith.constant 5.000000e-01 : f32
    %261 = vector.broadcast %cst_88 : f32 to vector<8x128xf32>
    %262 = arith.mulf %261, %260 : vector<8x128xf32>
    %263 = vector.extract_strided_slice %246 {offsets = [0, 256], sizes = [8, 128], strides = [1, 1]} : vector<8x512xf32> to vector<8x128xf32>
    %264 = math.tanh %263 : vector<8x128xf32>
    %265 = vector.extract_strided_slice %246 {offsets = [0, 384], sizes = [8, 128], strides = [1, 1]} : vector<8x512xf32> to vector<8x128xf32>
    %cst_89 = arith.constant 5.000000e-01 : f32
    %266 = vector.broadcast %cst_89 : f32 to vector<8x128xf32>
    %267 = arith.mulf %266, %265 : vector<8x128xf32>
    %268 = math.tanh %267 : vector<8x128xf32>
    %cst_90 = arith.constant 1.000000e+00 : f32
    %269 = vector.broadcast %cst_90 : f32 to vector<8x128xf32>
    %270 = arith.addf %268, %269 : vector<8x128xf32>
    %cst_91 = arith.constant 5.000000e-01 : f32
    %271 = vector.broadcast %cst_91 : f32 to vector<8x128xf32>
    %272 = arith.mulf %271, %270 : vector<8x128xf32>
    %273 = arith.mulf %262, %230 : vector<8x128xf32>
    %274 = arith.mulf %254, %264 : vector<8x128xf32>
    %275 = arith.addf %273, %274 : vector<8x128xf32>
    %276 = math.tanh %275 : vector<8x128xf32>
    %277 = arith.mulf %272, %276 : vector<8x128xf32>
    %278 = vector.extract_strided_slice %7 {offsets = [0, 12], sizes = [8, 2], strides = [1, 1]} : vector<8x16xf32> to vector<8x2xf32>
    %279 = arith.truncf %278 : vector<8x2xf32> to vector<8x2xbf16>
    %cst_92 = arith.constant dense<0.000000e+00> : vector<8x16xf32>
    %280 = tpu.matmul %279, %0, %cst_92 {dimension_numbers = #tpu.dot_dimension_numbers<[1], [0], [0], [1], [0, 0, 1, 1], [], []>} : vector<8x2xbf16>, vector<2x16xbf16>, vector<8x16xf32> -> vector<8x16xf32>
    %281 = vector.broadcast %1 : vector<1x16xf32> to vector<8x16xf32>
    %282 = arith.addf %280, %281 : vector<8x16xf32>
    %cst_93 = arith.constant 0.000000e+00 : f32
    %283 = vector.broadcast %cst_93 : f32 to vector<8x16xf32>
    %284 = arith.maximumf %282, %283 : vector<8x16xf32>
    %285 = arith.truncf %284 : vector<8x16xf32> to vector<8x16xbf16>
    %cst_94 = arith.constant dense<0.000000e+00> : vector<8x512xf32>
    %286 = tpu.matmul %285, %2, %cst_94 {dimension_numbers = #tpu.dot_dimension_numbers<[1], [0], [0], [1], [0, 0, 1, 1], [], []>} : vector<8x16xbf16>, vector<16x512xbf16>, vector<8x512xf32> -> vector<8x512xf32>
    %287 = vector.broadcast %4 : vector<1x512xf32> to vector<8x512xf32>
    %288 = arith.addf %286, %287 : vector<8x512xf32>
    %289 = arith.truncf %277 : vector<8x128xf32> to vector<8x128xbf16>
    %cst_95 = arith.constant dense<0.000000e+00> : vector<8x512xf32>
    %290 = tpu.matmul %289, %3, %cst_95 {dimension_numbers = #tpu.dot_dimension_numbers<[1], [0], [0], [1], [0, 0, 1, 1], [], []>} : vector<8x128xbf16>, vector<128x512xbf16>, vector<8x512xf32> -> vector<8x512xf32>
    %291 = arith.addf %288, %290 : vector<8x512xf32>
    %292 = vector.extract_strided_slice %291 {offsets = [0, 0], sizes = [8, 128], strides = [1, 1]} : vector<8x512xf32> to vector<8x128xf32>
    %cst_96 = arith.constant 5.000000e-01 : f32
    %293 = vector.broadcast %cst_96 : f32 to vector<8x128xf32>
    %294 = arith.mulf %293, %292 : vector<8x128xf32>
    %295 = math.tanh %294 : vector<8x128xf32>
    %cst_97 = arith.constant 1.000000e+00 : f32
    %296 = vector.broadcast %cst_97 : f32 to vector<8x128xf32>
    %297 = arith.addf %295, %296 : vector<8x128xf32>
    %cst_98 = arith.constant 5.000000e-01 : f32
    %298 = vector.broadcast %cst_98 : f32 to vector<8x128xf32>
    %299 = arith.mulf %298, %297 : vector<8x128xf32>
    %300 = vector.extract_strided_slice %291 {offsets = [0, 128], sizes = [8, 128], strides = [1, 1]} : vector<8x512xf32> to vector<8x128xf32>
    %cst_99 = arith.constant 5.000000e-01 : f32
    %301 = vector.broadcast %cst_99 : f32 to vector<8x128xf32>
    %302 = arith.mulf %301, %300 : vector<8x128xf32>
    %303 = math.tanh %302 : vector<8x128xf32>
    %cst_100 = arith.constant 1.000000e+00 : f32
    %304 = vector.broadcast %cst_100 : f32 to vector<8x128xf32>
    %305 = arith.addf %303, %304 : vector<8x128xf32>
    %cst_101 = arith.constant 5.000000e-01 : f32
    %306 = vector.broadcast %cst_101 : f32 to vector<8x128xf32>
    %307 = arith.mulf %306, %305 : vector<8x128xf32>
    %308 = vector.extract_strided_slice %291 {offsets = [0, 256], sizes = [8, 128], strides = [1, 1]} : vector<8x512xf32> to vector<8x128xf32>
    %309 = math.tanh %308 : vector<8x128xf32>
    %310 = vector.extract_strided_slice %291 {offsets = [0, 384], sizes = [8, 128], strides = [1, 1]} : vector<8x512xf32> to vector<8x128xf32>
    %cst_102 = arith.constant 5.000000e-01 : f32
    %311 = vector.broadcast %cst_102 : f32 to vector<8x128xf32>
    %312 = arith.mulf %311, %310 : vector<8x128xf32>
    %313 = math.tanh %312 : vector<8x128xf32>
    %cst_103 = arith.constant 1.000000e+00 : f32
    %314 = vector.broadcast %cst_103 : f32 to vector<8x128xf32>
    %315 = arith.addf %313, %314 : vector<8x128xf32>
    %cst_104 = arith.constant 5.000000e-01 : f32
    %316 = vector.broadcast %cst_104 : f32 to vector<8x128xf32>
    %317 = arith.mulf %316, %315 : vector<8x128xf32>
    %318 = arith.mulf %307, %275 : vector<8x128xf32>
    %319 = arith.mulf %299, %309 : vector<8x128xf32>
    %320 = arith.addf %318, %319 : vector<8x128xf32>
    %321 = math.tanh %320 : vector<8x128xf32>
    %322 = arith.mulf %317, %321 : vector<8x128xf32>
    %323 = vector.extract_strided_slice %7 {offsets = [0, 14], sizes = [8, 2], strides = [1, 1]} : vector<8x16xf32> to vector<8x2xf32>
    %324 = arith.truncf %323 : vector<8x2xf32> to vector<8x2xbf16>
    %cst_105 = arith.constant dense<0.000000e+00> : vector<8x16xf32>
    %325 = tpu.matmul %324, %0, %cst_105 {dimension_numbers = #tpu.dot_dimension_numbers<[1], [0], [0], [1], [0, 0, 1, 1], [], []>} : vector<8x2xbf16>, vector<2x16xbf16>, vector<8x16xf32> -> vector<8x16xf32>
    %326 = vector.broadcast %1 : vector<1x16xf32> to vector<8x16xf32>
    %327 = arith.addf %325, %326 : vector<8x16xf32>
    %cst_106 = arith.constant 0.000000e+00 : f32
    %328 = vector.broadcast %cst_106 : f32 to vector<8x16xf32>
    %329 = arith.maximumf %327, %328 : vector<8x16xf32>
    %330 = arith.truncf %329 : vector<8x16xf32> to vector<8x16xbf16>
    %cst_107 = arith.constant dense<0.000000e+00> : vector<8x512xf32>
    %331 = tpu.matmul %330, %2, %cst_107 {dimension_numbers = #tpu.dot_dimension_numbers<[1], [0], [0], [1], [0, 0, 1, 1], [], []>} : vector<8x16xbf16>, vector<16x512xbf16>, vector<8x512xf32> -> vector<8x512xf32>
    %332 = vector.broadcast %4 : vector<1x512xf32> to vector<8x512xf32>
    %333 = arith.addf %331, %332 : vector<8x512xf32>
    %334 = arith.truncf %322 : vector<8x128xf32> to vector<8x128xbf16>
    %cst_108 = arith.constant dense<0.000000e+00> : vector<8x512xf32>
    %335 = tpu.matmul %334, %3, %cst_108 {dimension_numbers = #tpu.dot_dimension_numbers<[1], [0], [0], [1], [0, 0, 1, 1], [], []>} : vector<8x128xbf16>, vector<128x512xbf16>, vector<8x512xf32> -> vector<8x512xf32>
    %336 = arith.addf %333, %335 : vector<8x512xf32>
    %337 = vector.extract_strided_slice %336 {offsets = [0, 0], sizes = [8, 128], strides = [1, 1]} : vector<8x512xf32> to vector<8x128xf32>
    %cst_109 = arith.constant 5.000000e-01 : f32
    %338 = vector.broadcast %cst_109 : f32 to vector<8x128xf32>
    %339 = arith.mulf %338, %337 : vector<8x128xf32>
    %340 = math.tanh %339 : vector<8x128xf32>
    %cst_110 = arith.constant 1.000000e+00 : f32
    %341 = vector.broadcast %cst_110 : f32 to vector<8x128xf32>
    %342 = arith.addf %340, %341 : vector<8x128xf32>
    %cst_111 = arith.constant 5.000000e-01 : f32
    %343 = vector.broadcast %cst_111 : f32 to vector<8x128xf32>
    %344 = arith.mulf %343, %342 : vector<8x128xf32>
    %345 = vector.extract_strided_slice %336 {offsets = [0, 128], sizes = [8, 128], strides = [1, 1]} : vector<8x512xf32> to vector<8x128xf32>
    %cst_112 = arith.constant 5.000000e-01 : f32
    %346 = vector.broadcast %cst_112 : f32 to vector<8x128xf32>
    %347 = arith.mulf %346, %345 : vector<8x128xf32>
    %348 = math.tanh %347 : vector<8x128xf32>
    %cst_113 = arith.constant 1.000000e+00 : f32
    %349 = vector.broadcast %cst_113 : f32 to vector<8x128xf32>
    %350 = arith.addf %348, %349 : vector<8x128xf32>
    %cst_114 = arith.constant 5.000000e-01 : f32
    %351 = vector.broadcast %cst_114 : f32 to vector<8x128xf32>
    %352 = arith.mulf %351, %350 : vector<8x128xf32>
    %353 = vector.extract_strided_slice %336 {offsets = [0, 256], sizes = [8, 128], strides = [1, 1]} : vector<8x512xf32> to vector<8x128xf32>
    %354 = math.tanh %353 : vector<8x128xf32>
    %355 = vector.extract_strided_slice %336 {offsets = [0, 384], sizes = [8, 128], strides = [1, 1]} : vector<8x512xf32> to vector<8x128xf32>
    %cst_115 = arith.constant 5.000000e-01 : f32
    %356 = vector.broadcast %cst_115 : f32 to vector<8x128xf32>
    %357 = arith.mulf %356, %355 : vector<8x128xf32>
    %358 = math.tanh %357 : vector<8x128xf32>
    %cst_116 = arith.constant 1.000000e+00 : f32
    %359 = vector.broadcast %cst_116 : f32 to vector<8x128xf32>
    %360 = arith.addf %358, %359 : vector<8x128xf32>
    %cst_117 = arith.constant 5.000000e-01 : f32
    %361 = vector.broadcast %cst_117 : f32 to vector<8x128xf32>
    %362 = arith.mulf %361, %360 : vector<8x128xf32>
    %363 = arith.mulf %352, %320 : vector<8x128xf32>
    %364 = arith.mulf %344, %354 : vector<8x128xf32>
    %365 = arith.addf %363, %364 : vector<8x128xf32>
    %366 = math.tanh %365 : vector<8x128xf32>
    %367 = arith.mulf %362, %366 : vector<8x128xf32>
    %368 = arith.truncf %367 : vector<8x128xf32> to vector<8x128xbf16>
    %c0_118 = arith.constant 0 : index
    %c0_119 = arith.constant 0 : index
    %369 = vector.load %arg9[%c0_118, %c0_119] : memref<128x64xbf16, #tpu.memory_space<vmem>>, vector<128x64xbf16>
    %cst_120 = arith.constant dense<0.000000e+00> : vector<8x64xf32>
    %370 = tpu.matmul %368, %369, %cst_120 {dimension_numbers = #tpu.dot_dimension_numbers<[1], [0], [0], [1], [0, 0, 1, 1], [], []>} : vector<8x128xbf16>, vector<128x64xbf16>, vector<8x64xf32> -> vector<8x64xf32>
    %c0_121 = arith.constant 0 : index
    %c0_122 = arith.constant 0 : index
    %371 = vector.load %arg10[%c0_121, %c0_122] : memref<1x64xf32, #tpu.memory_space<vmem>>, vector<1x64xf32>
    %372 = vector.broadcast %371 : vector<1x64xf32> to vector<8x64xf32>
    %373 = arith.addf %370, %372 : vector<8x64xf32>
    %cst_123 = arith.constant 0.000000e+00 : f32
    %374 = vector.broadcast %cst_123 : f32 to vector<8x64xf32>
    %375 = arith.maximumf %373, %374 : vector<8x64xf32>
    %376 = arith.truncf %375 : vector<8x64xf32> to vector<8x64xbf16>
    %c0_124 = arith.constant 0 : index
    %c0_125 = arith.constant 0 : index
    %377 = vector.load %arg11[%c0_124, %c0_125] : memref<64x128xbf16, #tpu.memory_space<vmem>>, vector<64x128xbf16>
    %cst_126 = arith.constant dense<0.000000e+00> : vector<8x128xf32>
    %378 = tpu.matmul %376, %377, %cst_126 {dimension_numbers = #tpu.dot_dimension_numbers<[1], [0], [0], [1], [0, 0, 1, 1], [], []>} : vector<8x64xbf16>, vector<64x128xbf16>, vector<8x128xf32> -> vector<8x128xf32>
    %c0_127 = arith.constant 0 : index
    %c0_128 = arith.constant 0 : index
    %379 = vector.load %arg12[%c0_127, %c0_128] : memref<1x128xf32, #tpu.memory_space<vmem>>, vector<1x128xf32>
    %380 = vector.broadcast %379 : vector<1x128xf32> to vector<8x128xf32>
    %381 = arith.addf %378, %380 : vector<8x128xf32>
    %c0_129 = arith.constant 0 : index
    %c0_130 = arith.constant 0 : index
    %382 = vector.load %arg13[%c0_129, %c0_130] : memref<8x128xf32, #tpu.memory_space<vmem>>, vector<8x128xf32>
    tpu.vector_store %arg13[%c0_129, %c0_130], %381 {strides = array<i32>} : memref<8x128xf32, #tpu.memory_space<vmem>>, vector<8x128xf32>,
    return
  }
  func.func @transform_0(%arg0: i32) -> (i32, i32) {
    %c0_i32 = arith.constant 0 : i32
    %c0_i32_0 = arith.constant 0 : i32
    return %arg0, %c0_i32 : i32, i32
  }
  func.func @transform_1(%arg0: i32) -> (i32, i32) {
    %c0_i32 = arith.constant 0 : i32
    %c0_i32_0 = arith.constant 0 : i32
    return %arg0, %c0_i32 : i32, i32
  }
  func.func @transform_2(%arg0: i32) -> (i32, i32) {
    %c0_i32 = arith.constant 0 : i32
    %c0_i32_0 = arith.constant 0 : i32
    return %arg0, %c0_i32 : i32, i32
  }
  func.func @transform_3(%arg0: i32) -> (i32, i32) {
    %c0_i32 = arith.constant 0 : i32
    %c0_i32_0 = arith.constant 0 : i32
    %c0_i32_1 = arith.constant 0 : i32
    return %c0_i32, %c0_i32_0 : i32, i32
  }
  func.func @transform_4(%arg0: i32) -> (i32, i32) {
    %c0_i32 = arith.constant 0 : i32
    %c0_i32_0 = arith.constant 0 : i32
    %c0_i32_1 = arith.constant 0 : i32
    return %c0_i32, %c0_i32_0 : i32, i32
  }
  func.func @transform_5(%arg0: i32) -> (i32, i32) {
    %c0_i32 = arith.constant 0 : i32
    %c0_i32_0 = arith.constant 0 : i32
    %c0_i32_1 = arith.constant 0 : i32
    return %c0_i32, %c0_i32_0 : i32, i32
  }
  func.func @transform_6(%arg0: i32) -> (i32, i32) {
    %c0_i32 = arith.constant 0 : i32
    %c0_i32_0 = arith.constant 0 : i32
    %c0_i32_1 = arith.constant 0 : i32
    return %c0_i32, %c0_i32_0 : i32, i32
  }
  func.func @transform_7(%arg0: i32) -> (i32, i32) {
    %c0_i32 = arith.constant 0 : i32
    %c0_i32_0 = arith.constant 0 : i32
    %c0_i32_1 = arith.constant 0 : i32
    return %c0_i32, %c0_i32_0 : i32, i32
  }
  func.func @transform_8(%arg0: i32) -> (i32, i32) {
    %c0_i32 = arith.constant 0 : i32
    %c0_i32_0 = arith.constant 0 : i32
    %c0_i32_1 = arith.constant 0 : i32
    return %c0_i32, %c0_i32_0 : i32, i32
  }
  func.func @transform_9(%arg0: i32) -> (i32, i32) {
    %c0_i32 = arith.constant 0 : i32
    %c0_i32_0 = arith.constant 0 : i32
    %c0_i32_1 = arith.constant 0 : i32
    return %c0_i32, %c0_i32_0 : i32, i32
  }
  func.func @transform_10(%arg0: i32) -> (i32, i32) {
    %c0_i32 = arith.constant 0 : i32
    %c0_i32_0 = arith.constant 0 : i32
    %c0_i32_1 = arith.constant 0 : i32
    return %c0_i32, %c0_i32_0 : i32, i32
  }
  func.func @transform_11(%arg0: i32) -> (i32, i32) {
    %c0_i32 = arith.constant 0 : i32
    %c0_i32_0 = arith.constant 0 : i32
    %c0_i32_1 = arith.constant 0 : i32
    return %c0_i32, %c0_i32_0 : i32, i32
  }
  func.func @transform_12(%arg0: i32) -> (i32, i32) {
    %c0_i32 = arith.constant 0 : i32
    %c0_i32_0 = arith.constant 0 : i32
    return %arg0, %c0_i32 : i32, i32
  }
}

</mosaic_0001>

<bundles_post_ra>
// kernel: squeeze.25
= control target key start
LH: loop header
LB: loop body
LE: loop exit
PB: predicated region body
PF: predicated region fallthrough
CT: control target
= control target key end

     0   :  { %s80_s0 = inlined_call_operand.vmem [shape: f32[6], index: 0, kind: input, shape index: {}]   ;;  %s81_s1 = inlined_call_operand.hbm [shape: f32[2,3], index: 1, kind: output, shape index: {}]  }
   0x1   :  { %v5_v0 = vld [vmem:[%s80_s0] sm:$0x1] }
   0x2   :  { %2 = vsyncpa [#allocation1], 0  ;;  %6 = vst [vmem:[#allocation3] sm:$0x1] %v5_v0  ;;  %vm8_vm0 = vcmask 23552   ;;  %s62_s0 = smov 125  }
   0x3   :  { %s63_s8 = smov [#allocation0]   ;;  %s27_s1 = sshll.u32 %s81_s1, 4  ;;  %s28_s1 = int_to_ptr.hbm [resolvable:$true] %s27_s1 }
   0x4   :  { %s25_s9 = sshll.u32 %s63_s8, 4  ;;  %s26_s9 = int_to_ptr.vmem [resolvable:$true] %s25_s9 }
   0x9   :  { %v10_v1 = vld [vmem:[#allocation3] sm:$0x1]  }
   0xa   :  { %v7_v2 = vld [vmem:[#allocation3] sm:$0x1]   ;;  %11 = vrot.lane.b32.xlu0 %v10_v1, %s62_s0 }
   0xb   :  { %9 = vst.msk [vmem:[#allocation2] sm:$0x1] %vm8_vm0, %v7_v2  }
  0x7c   :  { %v12_v3 = vpop.permute.xlu0 %11  }
  0x7d   :  { %15 = vst.msk [vmem:[#allocation2 + $0x1] sm:$0x1] %vm8_vm0, %v12_v3  }
  0x84   :  { %v18_v4 = vld [vmem:[#allocation2] sm:$0x3] }
  0x85   :  { %21 = vst [vmem:[#allocation0] sm:$0x3] %v18_v4 }
  0x86   :  { %30 = dma.vmem_to_hbm [thread:$0]  %s26_s9, 32, %s28_s1, [#allocation1]  }
  0x87   :  { %60 = dma.done.wait [#allocation1], 32  }
  0x88   :  { %61 = vsyncadd [#allocation1], 4294967264 }
  0x89   :  { %33 = vsyncpa [#allocation1], 1 }

// kernel: trajectory_discriminator_forward.3
= control target key start
LH: loop header
LB: loop body
LE: loop exit
PB: predicated region body
PF: predicated region fallthrough
CT: control target
= control target key end

     0   :  { %vm92_vm0 = vcmask 1040384   ;;  %vm88_vm1 = vcmask 15360   ;;  %s1996_s17 = smov 126   ;;  %vm140_vm2 = vcmask 130048   ;;  %s2000_s30 = smov 118   ;;  %vm1602_vm3 = vcmask 523264   ;;  %s2850_s3 = inlined_call_operand.vmem [shape: bf16[2,16], index: 3, kind: input, shape index: {}]   ;;  %s2851_s2 = inlined_call_operand.vmem [shape: f32[8,16], index: 2, kind: input, shape index: {}]   ;;  %s2852_s5 = inlined_call_operand.vmem [shape: bf16[16,512], index: 5, kind: input, shape index: {}]   ;;  %s2853_s6 = inlined_call_operand.vmem [shape: bf16[128,512], index: 6, kind: input, shape index: {}]   ;;  %s2854_s4 = inlined_call_operand.vmem [shape: f32[1,16], index: 4, kind: input, shape index: {}]   ;;  %s2855_s0 = inlined_call_operand.vmem [shape: f32[8,128], index: 0, kind: input, shape index: {}]   ;;  %s2856_s7 = inlined_call_operand.vmem [shape: f32[1,512], index: 7, kind: input, shape index: {}]   ;;  %s2857_s1 = inlined_call_operand.vmem [shape: f32[8,128], index: 1, kind: input, shape index: {}]   ;;  %s2858_s9 = inlined_call_operand.vmem [shape: f32[1,64], index: 9, kind: input, shape index: {}]   ;;  %s2859_s8 = inlined_call_operand.vmem [shape: bf16[128,64], index: 8, kind: input, shape index: {}]   ;;  %s2860_s10 = inlined_call_operand.vmem [shape: bf16[64,128], index: 10, kind: input, shape index: {}]   ;;  %s2861_s11 = inlined_call_operand.vmem [shape: f32[1,128], index: 11, kind: input, shape index: {}]   ;;  %s2862_s12 = inlined_call_operand.vmem [shape: f32[8,128], index: 12, kind: output, shape index: {}]  }
   0x1   :  { %v42_v0 = vld [vmem:[%s2850_s3] sm:$0x1]  ;;  %v1859_v5 = vld [vmem:[%s2852_s5 + $0xc] sm:$0xf0]  ;;  %v1857_v6 = vld [vmem:[%s2852_s5 + $0x4] sm:$0xf] }
   0x2   :  { %v83_v1 = vld [vmem:[%s2851_s2] sm:$0xff]  ;;  %v2077_v3 = vsel %vm92_vm0, %v42_v0, 0  ;;  %v1629_v8 = vld [vmem:[%s2852_s5 + $0x10] sm:$0xf0]  ;;  %v1635_v9 = vld [vmem:[%s2852_s5 + $0x8] sm:$0xf] }
   0x3   :  { %v1627_v2 = vld [vmem:[%s2852_s5] sm:$0xf]  ;;  %v2079_v4 = vpack.c.bf16 %v83_v1, %v83_v1  ;;  %103 = vmatpush.bf16.msra.mxu2 %v2077_v3  ;;  %v1860_v10 = vld [vmem:[%s2852_s5 + $0x14] sm:$0xf0]  ;;  %v2100_v11 = vor.u32 %v1857_v6, %v1629_v8  ;;  %v1858_v13 = vld [vmem:[%s2852_s5 + $0xc] sm:$0xf] }
   0x4   :  { %v2088_v7 = vor.u32 %v1859_v5, %v1627_v2  ;;  %v2102_v12 = vor.u32 %v1860_v10, %v1635_v9  ;;  %v1637_v14 = vld [vmem:[%s2852_s5 + $0x18] sm:$0xf0]  ;;  %v1759_v15 = vld [vmem:[%s2853_s6 + $0xe0] sm:$0xf]  ;;  %v1891_v17 = vld [vmem:[%s2853_s6 + $0xec] sm:$0xf0] }
   0x5   :  { %2872 = vst [vmem:[#allocation2_spill] sm:$0xff] %v2079_v4  ;;  %432 = vrot.lane.b32.xlu0 %v2079_v4, %s1996_s17  ;;  %v2114_v16 = vor.u32 %v1858_v13, %v1637_v14  ;;  %v1889_v18 = vld [vmem:[%s2853_s6 + $0xe4] sm:$0xf]  ;;  %v1761_v19 = vld [vmem:[%s2853_s6 + $0xf0] sm:$0xf0]  ;;  %v2128_v20 = vor.u32 %v1891_v17, %v1759_v15  ;;  %s1997_s3 = smov 124  }
   0x6   :  { %151 = vmatpush.bf16.msra.mxu1 %v2088_v7  ;;  %1624 = vmatmul.msk.bf16.vlgmr.msra.gmra.mxu2 %vm88_vm1, %v2079_v4  ;;  %v2130_v21 = vor.u32 %v1889_v18, %v1761_v19  ;;  %v1767_v22 = vld [vmem:[%s2853_s6 + $0xe8] sm:$0xf]  ;;  %v1892_v23 = vld [vmem:[%s2853_s6 + $0xf4] sm:$0xf0]  ;;  %v1890_v24 = vld [vmem:[%s2853_s6 + $0xec] sm:$0xf] }
   0x7   :  { %177 = vmatpush.bf16.msra.mxu3 %v2102_v12  ;;  %164 = vmatpush.bf16.msrb.mxu2 %v2100_v11  ;;  %v2143_v25 = vor.u32 %v1892_v23, %v1767_v22  ;;  %v1769_v26 = vld [vmem:[%s2853_s6 + $0xf8] sm:$0xf0]  ;;  %v1743_v27 = vld [vmem:[%s2853_s6 + $0xc0] sm:$0xf]  ;;  %v1887_v28 = vld [vmem:[%s2853_s6 + $0xcc] sm:$0xf0] }
   0x8   :  { %190 = vmatpush.bf16.msra.mxu0 %v2114_v16  ;;  %v2156_v29 = vor.u32 %v1890_v24, %v1769_v26  ;;  %v2158_v30 = vor.u32 %v1887_v28, %v1743_v27  ;;  %v1885_v31 = vld [vmem:[%s2853_s6 + $0xc4] sm:$0xf]  ;;  %v1745_v32 = vld [vmem:[%s2853_s6 + $0xd0] sm:$0xf0]  ;;  %v1751_v33 = vld [vmem:[%s2853_s6 + $0xc8] sm:$0xf] }
   0x9   :  { %v2170_v34 = vor.u32 %v1885_v31, %v1745_v32  ;;  %v1888_v35 = vld [vmem:[%s2853_s6 + $0xd4] sm:$0xf0]  ;;  %v1886_v36 = vld [vmem:[%s2853_s6 + $0xcc] sm:$0xf]  ;;  %v1753_v37 = vld [vmem:[%s2853_s6 + $0xd8] sm:$0xf0] }
   0xa   :  { %357 = vmatpush.bf16.msrb.mxu1 %v2128_v20  ;;  %v2182_v38 = vor.u32 %v1888_v35, %v1751_v33  ;;  %v2184_v39 = vor.u32 %v1886_v36, %v1753_v37  ;;  %v1727_v40 = vld [vmem:[%s2853_s6 + $0xa0] sm:$0xf]  ;;  %v1883_v41 = vld [vmem:[%s2853_s6 + $0xac] sm:$0xf0]  ;;  %v1881_v42 = vld [vmem:[%s2853_s6 + $0xa4] sm:$0xf] }
   0xb   :  { %370 = vmatpush.bf16.msra.mxu2 %v2130_v21  ;;  %383 = vmatpush.bf16.msrb.mxu3 %v2143_v25  ;;  %v2200_v43 = vor.u32 %v1883_v41, %v1727_v40  ;;  %v1729_v44 = vld [vmem:[%s2853_s6 + $0xb0] sm:$0xf0]  ;;  %v1735_v45 = vld [vmem:[%s2853_s6 + $0xa8] sm:$0xf]  ;;  %v1884_v46 = vld [vmem:[%s2853_s6 + $0xb4] sm:$0xf0] }
   0xc   :  { %396 = vmatpush.bf16.msrb.mxu0 %v2156_v29  ;;  %v2211_v47 = vor.u32 %v1881_v42, %v1729_v44  ;;  %v2213_v48 = vor.u32 %v1884_v46, %v1735_v45  ;;  %v1882_v49 = vld [vmem:[%s2853_s6 + $0xac] sm:$0xf]  ;;  %v1737_v50 = vld [vmem:[%s2853_s6 + $0xb8] sm:$0xf0]  ;;  %v1711_v52 = vld [vmem:[%s2853_s6 + $0x80] sm:$0xf] }
   0xd   :  { %582 = vrot.lane.b32.xlu0 %v2079_v4, %s1997_s3  ;;  %v2222_v51 = vor.u32 %v1882_v49, %v1737_v50  ;;  %v1879_v53 = vld [vmem:[%s2853_s6 + $0x8c] sm:$0xf0]  ;;  %v1877_v54 = vld [vmem:[%s2853_s6 + $0x84] sm:$0xf]  ;;  %v1713_v56 = vld [vmem:[%s2853_s6 + $0x90] sm:$0xf0] }
   0xe   :  { %358 = vmatpush.bf16.msrb.mxu1 %v2158_v30  ;;  %v2236_v55 = vor.u32 %v1879_v53, %v1711_v52  ;;  %v1719_v57 = vld [vmem:[%s2853_s6 + $0x88] sm:$0xf]  ;;  %v1880_v58 = vld [vmem:[%s2853_s6 + $0x94] sm:$0xf0]  ;;  %v2247_v59 = vor.u32 %v1877_v54, %v1713_v56  ;;  %v1878_v61 = vld [vmem:[%s2853_s6 + $0x8c] sm:$0xf] }
   0xf   :  { %371 = vmatpush.bf16.msra.mxu2 %v2170_v34  ;;  %384 = vmatpush.bf16.msrb.mxu3 %v2182_v38  ;;  %v2249_v60 = vor.u32 %v1880_v58, %v1719_v57  ;;  %v1721_v62 = vld [vmem:[%s2853_s6 + $0x98] sm:$0xf0]  ;;  %v1695_v0 = vld [vmem:[%s2853_s6 + $0x60] sm:$0xf]  ;;  %v1875_v1 = vld [vmem:[%s2853_s6 + $0x6c] sm:$0xf0] }
  0x10   :  { %397 = vmatpush.bf16.msrb.mxu0 %v2184_v39  ;;  %v2258_v63 = vor.u32 %v1878_v61, %v1721_v62  ;;  %v1873_v2 = vld [vmem:[%s2853_s6 + $0x64] sm:$0xf]  ;;  %v2272_v5 = vor.u32 %v1875_v1, %v1695_v0  ;;  %v1697_v6 = vld [vmem:[%s2853_s6 + $0x70] sm:$0xf0]  ;;  %v1703_v8 = vld [vmem:[%s2853_s6 + $0x68] sm:$0xf] }
  0x11   :  { %v1876_v9 = vld [vmem:[%s2853_s6 + $0x74] sm:$0xf0]  ;;  %v2283_v10 = vor.u32 %v1873_v2, %v1697_v6  ;;  %v1874_v14 = vld [vmem:[%s2853_s6 + $0x6c] sm:$0xf]  ;;  %v1705_v15 = vld [vmem:[%s2853_s6 + $0x78] sm:$0xf0] }
  0x12   :  { %359 = vmatpush.bf16.msrb.mxu1 %v2200_v43  ;;  %v2285_v13 = vor.u32 %v1876_v9, %v1703_v8  ;;  %v1679_v17 = vld [vmem:[%s2853_s6 + $0x40] sm:$0xf]  ;;  %v2297_v18 = vor.u32 %v1874_v14, %v1705_v15  ;;  %v1871_v19 = vld [vmem:[%s2853_s6 + $0x4c] sm:$0xf0]  ;;  %v1869_v22 = vld [vmem:[%s2853_s6 + $0x44] sm:$0xf] }
  0x13   :  { %372 = vmatpush.bf16.msra.mxu2 %v2211_v47  ;;  %385 = vmatpush.bf16.msrb.mxu3 %v2213_v48  ;;  %v1681_v23 = vld [vmem:[%s2853_s6 + $0x50] sm:$0xf0]  ;;  %v2310_v24 = vor.u32 %v1871_v19, %v1679_v17  ;;  %v1687_v27 = vld [vmem:[%s2853_s6 + $0x48] sm:$0xf]  ;;  %v1872_v28 = vld [vmem:[%s2853_s6 + $0x54] sm:$0xf0] }
  0x14   :  { %398 = vmatpush.bf16.msrb.mxu0 %v2222_v51  ;;  %v2312_v26 = vor.u32 %v1869_v22, %v1681_v23  ;;  %v1870_v31 = vld [vmem:[%s2853_s6 + $0x4c] sm:$0xf]  ;;  %v2324_v32 = vor.u32 %v1872_v28, %v1687_v27  ;;  %v1689_v33 = vld [vmem:[%s2853_s6 + $0x58] sm:$0xf0]  ;;  %v1663_v35 = vld [vmem:[%s2853_s6 + $0x20] sm:$0xf] }
  0x15   :  { %v1867_v36 = vld [vmem:[%s2853_s6 + $0x2c] sm:$0xf0]  ;;  %v2335_v37 = vor.u32 %v1870_v31, %v1689_v33  ;;  %v1865_v40 = vld [vmem:[%s2853_s6 + $0x24] sm:$0xf]  ;;  %v1665_v41 = vld [vmem:[%s2853_s6 + $0x30] sm:$0xf0] }
  0x16   :  { %360 = vmatpush.bf16.msrb.mxu1 %v2236_v55  ;;  %v1671_v42 = vld [vmem:[%s2853_s6 + $0x28] sm:$0xf]  ;;  %v2347_v44 = vor.u32 %v1867_v36, %v1663_v35  ;;  %v1868_v45 = vld [vmem:[%s2853_s6 + $0x34] sm:$0xf0]  ;;  %v1866_v46 = vld [vmem:[%s2853_s6 + $0x2c] sm:$0xf]  ;;  %v2360_v50 = vor.u32 %v1865_v40, %v1665_v41 }
  0x17   :  { %373 = vmatpush.bf16.msra.mxu2 %v2247_v59  ;;  %386 = vmatpush.bf16.msrb.mxu3 %v2249_v60  ;;  %v1673_v49 = vld [vmem:[%s2853_s6 + $0x38] sm:$0xf0]  ;;  %v2362_v52 = vor.u32 %v1868_v45, %v1671_v42  ;;  %v1647_v53 = vld [vmem:[%s2853_s6] sm:$0xf]  ;;  %v1863_v54 = vld [vmem:[%s2853_s6 + $0xc] sm:$0xf0] }
  0x18   :  { %399 = vmatpush.bf16.msrb.mxu0 %v2258_v63  ;;  %v1861_v56 = vld [vmem:[%s2853_s6 + $0x4] sm:$0xf]  ;;  %v2374_v57 = vor.u32 %v1866_v46, %v1673_v49  ;;  %v1649_v58 = vld [vmem:[%s2853_s6 + $0x10] sm:$0xf0]  ;;  %v1655_v61 = vld [vmem:[%s2853_s6 + $0x8] sm:$0xf]  ;;  %v2392_v2 = vor.u32 %v1863_v54, %v1647_v53 }
  0x19   :  { %v1864_v62 = vld [vmem:[%s2853_s6 + $0x14] sm:$0xf0]  ;;  %v1862_v0 = vld [vmem:[%s2853_s6 + $0xc] sm:$0xf]  ;;  %v1657_v1 = vld [vmem:[%s2853_s6 + $0x18] sm:$0xf0]  ;;  %v2396_v6 = vor.u32 %v1861_v56, %v1649_v58 }
  0x1a   :  { %361 = vmatpush.bf16.msrb.mxu1 %v2272_v5  ;;  %v2398_v8 = vor.u32 %v1864_v62, %v1655_v61  ;;  %v2401_v9 = vor.u32 %v1862_v0, %v1657_v1  ;;  %v2410_v14 = vld [vmem:[%s2854_s4] ss:$0 sm:$0xff]  ;;  %s2001_s2 = smov 116   ;;  %s2002_s3 = smov 114  }
  0x1b   :  { %374 = vmatpush.bf16.msra.mxu2 %v2283_v10  ;;  %387 = vmatpush.bf16.msrb.mxu3 %v2285_v13  ;;  %v81_v27 = vld [vmem:[%s2855_s0] sm:$0xff]  ;;  %s1998_s0 = smov 122  }
  0x1c   :  { %400 = vmatpush.bf16.msrb.mxu0 %v2297_v18  ;;  %v196_v28 = vpack.c.bf16 %v81_v27, %v81_v27  ;;  %732 = vrot.lane.b32.xlu1 %v2079_v4, %s1998_s0  ;;  %v80_v41 = vld [vmem:[%s2856_s7] sm:$0xf] }
  0x1d   :  { %v2462_v46 = vperm.slane %v80_v41, 0  ;;  %v2465_v58 = vperm.slane %v80_v41, 1  ;;  %v2467_v0 = vperm.slane %v80_v41, 2 }
  0x1e   :  { %362 = vmatpush.bf16.msrb.mxu1 %v2310_v24 }
  0x1f   :  { %375 = vmatpush.bf16.msra.mxu2 %v2312_v26  ;;  %388 = vmatpush.bf16.msrb.mxu3 %v2324_v32  ;;  %2873 = vst [vmem:[#allocation3_spill] sm:$0xff] %v2462_v46 }
  0x20   :  { %401 = vmatpush.bf16.msrb.mxu0 %v2335_v37  ;;  %2874 = vst [vmem:[#allocation4_spill] sm:$0xff] %v2465_v58 }
  0x21   :  { %2875 = vst [vmem:[#allocation5_spill] sm:$0xff] %v2467_v0 }
  0x22   :  { %363 = vmatpush.bf16.msrb.mxu1 %v2347_v44 }
  0x23   :  { %376 = vmatpush.bf16.msra.mxu2 %v2360_v50  ;;  %389 = vmatpush.bf16.msrb.mxu3 %v2362_v52 }
  0x24   :  { %402 = vmatpush.bf16.msrb.mxu0 %v2374_v57 }
  0x26   :  { %364 = vmatpush.bf16.msrb.mxu1 %v2392_v2 }
  0x27   :  { %377 = vmatpush.bf16.msra.mxu2 %v2396_v6  ;;  %390 = vmatpush.bf16.msrb.mxu3 %v2398_v8 }
  0x28   :  { %403 = vmatpush.bf16.msrb.mxu0 %v2401_v9 }
  0x77   :  { %v433_v31 = vpop.permute.xlu0 %432 }
  0x89   :  { %v105_v15 = vpop.f32.mrf.mxu2 }
  0x8a   :  { %v106_v17 = vadd.f32 %v2410_v14, %v105_v15  ;;  %v2469_v15 = vperm.slane %v80_v41, 3 }
  0x8c   :  { %v109_v19 = vmax.f32 %v106_v17, 0.0 }
  0x8e   :  { %v110_v22 = vpack.c.bf16 %v109_v19, %v109_v19 }
  0x90   :  { %1641 = vmatmul.msk.bf16.vlgmr.msra.gmra.mxu1 %vm140_vm2, %v110_v22  ;;  %1642 = vmatmul.msk.bf16.vlgmr.msrb.gmra.mxu2 %vm140_vm2, %v110_v22 }
  0x91   :  { %1643 = vmatmul.msk.bf16.vlgmr.msra.gmra.mxu3 %vm140_vm2, %v110_v22  ;;  %1644 = vmatmul.msk.bf16.vlgmr.msra.gmra.mxu0 %vm140_vm2, %v110_v22  ;;  %v107_v23 = vpop.f32.mrf.mxu2 }
  0x92   :  { %444 = vmatpush.bf16.msra.mxu1 %v2077_v3  ;;  %462 = vmatpush.bf16.msrb.mxu2 %v2088_v7 }
  0x93   :  { %475 = vmatpush.bf16.msra.mxu3 %v2100_v11  ;;  %488 = vmatpush.bf16.msra.mxu0 %v2102_v12 }
  0xa0   :  { %365 = vmatmul.bf16.vlgmr.msrb.gmra.mxu1 %v196_v28  ;;  %378 = vmatmul.bf16.vlgmr.msra.gmra.mxu2 %v196_v28 }
  0xa1   :  { %391 = vmatmul.bf16.vlgmr.msrb.gmra.mxu3 %v196_v28  ;;  %404 = vmatmul.bf16.vlgmr.msrb.gmra.mxu0 %v196_v28 }
  0xa2   :  { %501 = vmatpush.bf16.msrb.mxu1 %v2114_v16  ;;  %508 = vmatpush.bf16.msra.mxu2 %v2128_v20 }
  0xa3   :  { %521 = vmatpush.bf16.msrb.mxu3 %v2130_v21  ;;  %534 = vmatpush.bf16.msrb.mxu0 %v2143_v25 }
  0xa6   :  { %509 = vmatpush.bf16.msra.mxu2 %v2158_v30 }
  0xa7   :  { %522 = vmatpush.bf16.msrb.mxu3 %v2170_v34  ;;  %535 = vmatpush.bf16.msrb.mxu0 %v2182_v38 }
  0xaa   :  { %510 = vmatpush.bf16.msra.mxu2 %v2200_v43 }
  0xab   :  { %523 = vmatpush.bf16.msrb.mxu3 %v2211_v47  ;;  %536 = vmatpush.bf16.msrb.mxu0 %v2213_v48 }
  0xae   :  { %511 = vmatpush.bf16.msra.mxu2 %v2236_v55 }
  0xaf   :  { %524 = vmatpush.bf16.msrb.mxu3 %v2247_v59  ;;  %537 = vmatpush.bf16.msrb.mxu0 %v2249_v60 }
  0xb0   :  { %1773 = vmatmul.msk.bf16.vlgmr.msra.gmra.mxu1 %vm88_vm1, %v433_v31 }
  0xb1   :  { %547 = vmatpush.bf16.msra.mxu1 %v2156_v29 }
  0xb2   :  { %512 = vmatpush.bf16.msra.mxu2 %v2272_v5 }
  0xb3   :  { %525 = vmatpush.bf16.msrb.mxu3 %v2283_v10  ;;  %538 = vmatpush.bf16.msrb.mxu0 %v2285_v13 }
  0xb5   :  { %548 = vmatpush.bf16.msra.mxu1 %v2184_v39 }
  0xb6   :  { %513 = vmatpush.bf16.msra.mxu2 %v2310_v24 }
  0xb7   :  { %526 = vmatpush.bf16.msrb.mxu3 %v2312_v26  ;;  %539 = vmatpush.bf16.msrb.mxu0 %v2324_v32 }
  0xb9   :  { %549 = vmatpush.bf16.msra.mxu1 %v2222_v51 }
  0xba   :  { %514 = vmatpush.bf16.msra.mxu2 %v2347_v44 }
  0xbb   :  { %527 = vmatpush.bf16.msrb.mxu3 %v2360_v50  ;;  %540 = vmatpush.bf16.msrb.mxu0 %v2362_v52 }
  0xbd   :  { %550 = vmatpush.bf16.msra.mxu1 %v2258_v63 }
  0xbe   :  { %515 = vmatpush.bf16.msra.mxu2 %v2392_v2 }
  0xbf   :  { %528 = vmatpush.bf16.msrb.mxu3 %v2396_v6  ;;  %541 = vmatpush.bf16.msrb.mxu0 %v2398_v8 }
  0xc1   :  { %551 = vmatpush.bf16.msra.mxu1 %v2297_v18 }
  0xc5   :  { %552 = vmatpush.bf16.msra.mxu1 %v2335_v37 }
  0xc9   :  { %553 = vmatpush.bf16.msra.mxu1 %v2374_v57 }
  0xcd   :  { %554 = vmatpush.bf16.msra.mxu1 %v2401_v9 }
 0x10d   :  { %v153_v33 = vpop.f32.mrf.mxu1 }
 0x10e   :  { %v192_v35 = vpop.f32.mrf.mxu0  ;;  %v154_v53 = vadd.f32 %v153_v33, %v2462_v46 }
 0x10f   :  { %v193_v28 = vadd.f32 %v192_v35, %v2469_v15 }
 0x113   :  { %v166_v36 = vpop.f32.mrf.mxu2 }
 0x114   :  { %v179_v40 = vpop.f32.mrf.mxu3  ;;  %v167_v17 = vadd.f32 %v166_v36, %v2465_v58 }
 0x115   :  { %v155_v42 = vpop.f32.mrf.mxu1  ;;  %v180_v22 = vadd.f32 %v179_v40, %v2467_v0 }
 0x116   :  { %v194_v45 = vpop.f32.mrf.mxu0 }
 0x11b   :  { %v168_v49 = vpop.f32.mrf.mxu2 }
 0x11c   :  { %v181_v54 = vpop.f32.mrf.mxu3 }
 0x11d   :  { %v366_v56 = vpop.f32.mrf.mxu1 }
 0x11e   :  { %v409_v61 = vadd.f32 %v366_v56, %v154_v53  ;;  %v405_v62 = vpop.f32.mrf.mxu0 }
 0x11f   :  { %v412_v49 = vadd.f32 %v405_v62, %v193_v28 }
 0x120   :  { %v413_v1 = vmul.f32 0.5, %v409_v61 }
 0x121   :  { %v422_v54 = vmul.f32 0.5, %v412_v49 }
 0x122   :  { %1915 = vtanh.f32 %v413_v1 }
 0x123   :  { %v379_v19 = vpop.f32.mrf.mxu2 }
 0x124   :  { %v410_v23 = vadd.f32 %v379_v19, %v167_v17  ;;  %v392_v27 = vpop.f32.mrf.mxu3 }
 0x125   :  { %v368_v31 = vpop.f32.mrf.mxu1  ;;  %v411_v42 = vadd.f32 %v392_v27, %v180_v22  ;;  %v82_v22 = vld [vmem:[%s2857_s1] sm:$0xff]  ;;  %s1999_s1 = smov 120  }
 0x126   :  { %v417_v33 = vmul.f32 0.5, %v410_v23  ;;  %v407_v45 = vpop.f32.mrf.mxu0  ;;  %882 = vrot.lane.b32.xlu1 %v2079_v4, %s1999_s1 }
 0x128   :  { %v1916_v53 = vpop.eup %1915  ;;  %1917 = vtanh.f32 %v417_v33 }
 0x129   :  { %1919 = vtanh.f32 %v411_v42  ;;  %v415_v41 = vadd.f32 1.0, %v1916_v53 }
 0x12a   :  { %1921 = vtanh.f32 %v422_v54 }
 0x12b   :  { %v381_v56 = vpop.f32.mrf.mxu2  ;;  %v416_v17 = vmul.f32 0.5, %v415_v41 }
 0x12c   :  { %v394_v36 = vpop.f32.mrf.mxu3 }
 0x12d   :  { %v446_v61 = vpop.f32.mrf.mxu1  ;;  %v583_v36 = vpop.permute.xlu0 %582 }
 0x12e   :  { %v1918_v1 = vpop.eup %1917  ;;  %v447_v40 = vadd.f32 %v2410_v14, %v446_v61 }
 0x12f   :  { %v419_v19 = vadd.f32 1.0, %v1918_v1  ;;  %v1920_v35 = vpop.eup %1919 }
 0x130   :  { %v450_v62 = vmax.f32 %v447_v40, 0.0  ;;  %v427_v31 = vmul.f32 %v1920_v35, %v416_v17  ;;  %v1922_v33 = vpop.eup %1921 }
 0x131   :  { %v420_v23 = vmul.f32 0.5, %v419_v19  ;;  %v424_v49 = vadd.f32 1.0, %v1922_v33 }
 0x132   :  { %v451_v27 = vpack.c.bf16 %v450_v62, %v450_v62 }
 0x133   :  { %v426_v28 = vmul.f32 %v420_v23, %v82_v22  ;;  %v425_v53 = vmul.f32 0.5, %v424_v49 }
 0x134   :  { %1774 = vmatmul.msk.bf16.vlgmr.msrb.gmra.mxu2 %vm140_vm2, %v451_v27  ;;  %1775 = vmatmul.msk.bf16.vlgmr.msra.gmra.mxu3 %vm140_vm2, %v451_v27 }
 0x135   :  { %v2480_v42 = vadd.f32 %v427_v31, %v426_v28  ;;  %1776 = vmatmul.msk.bf16.vlgmr.msra.gmra.mxu0 %vm140_vm2, %v451_v27  ;;  %1777 = vmatmul.msk.bf16.vlgmr.msrb.gmra.mxu1 %vm140_vm2, %v451_v27  ;;  %v448_v45 = vpop.f32.mrf.mxu1 }
 0x136   :  { %594 = vmatpush.bf16.msrb.mxu2 %v2077_v3  ;;  %612 = vmatpush.bf16.msra.mxu3 %v2088_v7 }
 0x137   :  { %1923 = vtanh.f32 %v2480_v42  ;;  %625 = vmatpush.bf16.msra.mxu0 %v2100_v11  ;;  %638 = vmatpush.bf16.msrb.mxu1 %v2102_v12 }
 0x13d   :  { %v1924_v41 = vpop.eup %1923 }
 0x13e   :  { %v430_v54 = vmul.f32 %v1924_v41, %v425_v53 }
 0x140   :  { %v507_v56 = vpack.c.bf16 %v430_v54, %v430_v54 }
 0x144   :  { %516 = vmatmul.bf16.vlgmr.msra.gmra.mxu2 %v507_v56  ;;  %529 = vmatmul.bf16.vlgmr.msrb.gmra.mxu3 %v507_v56 }
 0x145   :  { %542 = vmatmul.bf16.vlgmr.msrb.gmra.mxu0 %v507_v56  ;;  %555 = vmatmul.bf16.vlgmr.msra.gmra.mxu1 %v507_v56 }
 0x146   :  { %651 = vmatpush.bf16.msra.mxu2 %v2114_v16  ;;  %658 = vmatpush.bf16.msrb.mxu3 %v2128_v20 }
 0x147   :  { %671 = vmatpush.bf16.msrb.mxu0 %v2130_v21  ;;  %684 = vmatpush.bf16.msra.mxu1 %v2143_v25 }
 0x14a   :  { %659 = vmatpush.bf16.msrb.mxu3 %v2158_v30 }
 0x14b   :  { %672 = vmatpush.bf16.msrb.mxu0 %v2170_v34  ;;  %685 = vmatpush.bf16.msra.mxu1 %v2182_v38 }
 0x14e   :  { %660 = vmatpush.bf16.msrb.mxu3 %v2200_v43 }
 0x14f   :  { %673 = vmatpush.bf16.msrb.mxu0 %v2211_v47  ;;  %686 = vmatpush.bf16.msra.mxu1 %v2213_v48 }
 0x152   :  { %661 = vmatpush.bf16.msrb.mxu3 %v2236_v55 }
 0x153   :  { %674 = vmatpush.bf16.msrb.mxu0 %v2247_v59  ;;  %687 = vmatpush.bf16.msra.mxu1 %v2249_v60 }
 0x154   :  { %1778 = vmatmul.msk.bf16.vlgmr.msrb.gmra.mxu2 %vm88_vm1, %v583_v36 }
 0x155   :  { %697 = vmatpush.bf16.msrb.mxu2 %v2156_v29 }
 0x156   :  { %662 = vmatpush.bf16.msrb.mxu3 %v2272_v5 }
 0x157   :  { %675 = vmatpush.bf16.msrb.mxu0 %v2283_v10  ;;  %688 = vmatpush.bf16.msra.mxu1 %v2285_v13 }
 0x159   :  { %698 = vmatpush.bf16.msrb.mxu2 %v2184_v39 }
 0x15a   :  { %663 = vmatpush.bf16.msrb.mxu3 %v2310_v24 }
 0x15b   :  { %676 = vmatpush.bf16.msrb.mxu0 %v2312_v26  ;;  %689 = vmatpush.bf16.msra.mxu1 %v2324_v32 }
 0x15d   :  { %699 = vmatpush.bf16.msrb.mxu2 %v2222_v51 }
 0x15e   :  { %664 = vmatpush.bf16.msrb.mxu3 %v2347_v44 }
 0x15f   :  { %677 = vmatpush.bf16.msrb.mxu0 %v2360_v50  ;;  %690 = vmatpush.bf16.msra.mxu1 %v2362_v52 }
 0x161   :  { %700 = vmatpush.bf16.msrb.mxu2 %v2258_v63 }
 0x162   :  { %665 = vmatpush.bf16.msrb.mxu3 %v2392_v2 }
 0x163   :  { %678 = vmatpush.bf16.msrb.mxu0 %v2396_v6  ;;  %691 = vmatpush.bf16.msra.mxu1 %v2398_v8 }
 0x165   :  { %701 = vmatpush.bf16.msrb.mxu2 %v2297_v18 }
 0x169   :  { %702 = vmatpush.bf16.msrb.mxu2 %v2335_v37 }
 0x16d   :  { %703 = vmatpush.bf16.msrb.mxu2 %v2374_v57 }
 0x171   :  { %704 = vmatpush.bf16.msrb.mxu2 %v2401_v9 }
 0x1b2   :  { %v490_v61 = vpop.f32.mrf.mxu0  ;;  %v503_v1 = vpop.f32.mrf.mxu1 }
 0x1b3   :  { %v491_v41 = vadd.f32 %v490_v61, %v2467_v0 }
 0x1b7   :  { %v464_v40 = vpop.f32.mrf.mxu2  ;;  %v477_v17 = vpop.f32.mrf.mxu3 }
 0x1b8   :  { %v465_v28 = vadd.f32 %v464_v40, %v2462_v46  ;;  %v478_v31 = vadd.f32 %v477_v17, %v2465_v58 }
 0x1ba   :  { %v492_v19 = vpop.f32.mrf.mxu0  ;;  %v505_v35 = vpop.f32.mrf.mxu1 }
 0x1bb   :  { %v504_v35 = vadd.f32 %v503_v1, %v2469_v15 }
 0x1bf   :  { %v466_v22 = vpop.f32.mrf.mxu2  ;;  %v479_v62 = vpop.f32.mrf.mxu3 }
 0x1c2   :  { %v543_v23 = vpop.f32.mrf.mxu0  ;;  %v556_v27 = vpop.f32.mrf.mxu1 }
 0x1c3   :  { %v562_v19 = vadd.f32 %v543_v23, %v491_v41  ;;  %v563_v40 = vadd.f32 %v556_v27, %v504_v35  ;;  %v733_v35 = vpop.permute.xlu1 %732 }
 0x1c7   :  { %v517_v33 = vpop.f32.mrf.mxu2  ;;  %v530_v45 = vpop.f32.mrf.mxu3 }
 0x1c8   :  { %v560_v49 = vadd.f32 %v517_v33, %v465_v28  ;;  %v561_v53 = vadd.f32 %v530_v45, %v478_v31  ;;  %v573_v31 = vmul.f32 0.5, %v563_v40 }
 0x1ca   :  { %v564_v54 = vmul.f32 0.5, %v560_v49  ;;  %v568_v56 = vmul.f32 0.5, %v561_v53  ;;  %v545_v36 = vpop.f32.mrf.mxu0  ;;  %v558_v4 = vpop.f32.mrf.mxu1 }
 0x1cc   :  { %1925 = vtanh.f32 %v564_v54 }
 0x1cd   :  { %1927 = vtanh.f32 %v568_v56 }
 0x1ce   :  { %1929 = vtanh.f32 %v562_v19 }
 0x1cf   :  { %v519_v22 = vpop.f32.mrf.mxu2  ;;  %v532_v62 = vpop.f32.mrf.mxu3  ;;  %1931 = vtanh.f32 %v573_v31 }
 0x1d0   :  { %v2876_v22 = vld [vmem:[#allocation2_spill] sm:$0xff] }
 0x1d1   :  { %1032 = vrot.lane.b32.xlu2 %v2876_v22, %s2000_s30  ;;  %1332 = vrot.lane.b32.xlu0 %v2876_v22, %s2002_s3 }
 0x1d2   :  { %v1926_v17 = vpop.eup %1925 }
 0x1d3   :  { %v1928_v46 = vpop.eup %1927  ;;  %v566_v58 = vadd.f32 1.0, %v1926_v17 }
 0x1d4   :  { %v570_v28 = vadd.f32 1.0, %v1928_v46  ;;  %v1930_v61 = vpop.eup %1929 }
 0x1d5   :  { %v567_v33 = vmul.f32 0.5, %v566_v58  ;;  %v1932_v46 = vpop.eup %1931 }
 0x1d6   :  { %v571_v45 = vmul.f32 0.5, %v570_v28 }
 0x1d7   :  { %v578_v49 = vmul.f32 %v1930_v61, %v567_v33  ;;  %v596_v53 = vpop.f32.mrf.mxu2 }
 0x1d8   :  { %v577_v4 = vmul.f32 %v571_v45, %v2480_v42  ;;  %v597_v23 = vadd.f32 %v2410_v14, %v596_v53  ;;  %v575_v42 = vadd.f32 1.0, %v1932_v46  ;;  %v2877_v45 = vld [vmem:[#allocation4_spill] sm:$0xff]  ;;  %v2878_v46 = vld [vmem:[#allocation3_spill] sm:$0xff] }
 0x1d9   :  { %1182 = vrot.lane.b32.xlu2 %v2876_v22, %s2001_s2 }
 0x1da   :  { %v600_v1 = vmax.f32 %v597_v23, 0.0  ;;  %v2530_v41 = vadd.f32 %v578_v49, %v577_v4  ;;  %v576_v56 = vmul.f32 0.5, %v575_v42 }
 0x1dc   :  { %v601_v54 = vpack.c.bf16 %v600_v1, %v600_v1  ;;  %1933 = vtanh.f32 %v2530_v41 }
 0x1de   :  { %1779 = vmatmul.msk.bf16.vlgmr.msra.gmra.mxu3 %vm140_vm2, %v601_v54  ;;  %1780 = vmatmul.msk.bf16.vlgmr.msra.gmra.mxu0 %vm140_vm2, %v601_v54 }
 0x1df   :  { %1781 = vmatmul.msk.bf16.vlgmr.msrb.gmra.mxu1 %vm140_vm2, %v601_v54  ;;  %1782 = vmatmul.msk.bf16.vlgmr.msra.gmra.mxu2 %vm140_vm2, %v601_v54  ;;  %v598_v58 = vpop.f32.mrf.mxu2 }
 0x1e0   :  { %744 = vmatpush.bf16.msra.mxu3 %v2077_v3  ;;  %762 = vmatpush.bf16.msra.mxu0 %v2088_v7 }
 0x1e1   :  { %775 = vmatpush.bf16.msrb.mxu1 %v2100_v11  ;;  %788 = vmatpush.bf16.msra.mxu2 %v2102_v12 }
 0x1e2   :  { %v1934_v27 = vpop.eup %1933 }
 0x1e3   :  { %v581_v36 = vmul.f32 %v1934_v27, %v576_v56 }
 0x1e5   :  { %v657_v19 = vpack.c.bf16 %v581_v36, %v581_v36 }
 0x1ee   :  { %666 = vmatmul.bf16.vlgmr.msrb.gmra.mxu3 %v657_v19  ;;  %679 = vmatmul.bf16.vlgmr.msrb.gmra.mxu0 %v657_v19 }
 0x1ef   :  { %692 = vmatmul.bf16.vlgmr.msra.gmra.mxu1 %v657_v19  ;;  %705 = vmatmul.bf16.vlgmr.msrb.gmra.mxu2 %v657_v19 }
 0x1f0   :  { %801 = vmatpush.bf16.msrb.mxu3 %v2114_v16  ;;  %808 = vmatpush.bf16.msrb.mxu0 %v2128_v20 }
 0x1f1   :  { %821 = vmatpush.bf16.msra.mxu1 %v2130_v21  ;;  %834 = vmatpush.bf16.msrb.mxu2 %v2143_v25 }
 0x1f4   :  { %809 = vmatpush.bf16.msrb.mxu0 %v2158_v30 }
 0x1f5   :  { %822 = vmatpush.bf16.msra.mxu1 %v2170_v34  ;;  %835 = vmatpush.bf16.msrb.mxu2 %v2182_v38 }
 0x1f8   :  { %810 = vmatpush.bf16.msrb.mxu0 %v2200_v43 }
 0x1f9   :  { %823 = vmatpush.bf16.msra.mxu1 %v2211_v47  ;;  %836 = vmatpush.bf16.msrb.mxu2 %v2213_v48 }
 0x1fc   :  { %811 = vmatpush.bf16.msrb.mxu0 %v2236_v55 }
 0x1fd   :  { %824 = vmatpush.bf16.msra.mxu1 %v2247_v59  ;;  %837 = vmatpush.bf16.msrb.mxu2 %v2249_v60 }
 0x1fe   :  { %1783 = vmatmul.msk.bf16.vlgmr.msra.gmra.mxu3 %vm88_vm1, %v733_v35 }
 0x1ff   :  { %847 = vmatpush.bf16.msra.mxu3 %v2156_v29 }
 0x200   :  { %812 = vmatpush.bf16.msrb.mxu0 %v2272_v5 }
 0x201   :  { %825 = vmatpush.bf16.msra.mxu1 %v2283_v10  ;;  %838 = vmatpush.bf16.msrb.mxu2 %v2285_v13 }
 0x203   :  { %848 = vmatpush.bf16.msra.mxu3 %v2184_v39 }
 0x204   :  { %813 = vmatpush.bf16.msrb.mxu0 %v2310_v24 }
 0x205   :  { %826 = vmatpush.bf16.msra.mxu1 %v2312_v26  ;;  %839 = vmatpush.bf16.msrb.mxu2 %v2324_v32 }
 0x207   :  { %849 = vmatpush.bf16.msra.mxu3 %v2222_v51 }
 0x208   :  { %814 = vmatpush.bf16.msrb.mxu0 %v2347_v44 }
 0x209   :  { %827 = vmatpush.bf16.msra.mxu1 %v2360_v50  ;;  %840 = vmatpush.bf16.msrb.mxu2 %v2362_v52 }
 0x20b   :  { %850 = vmatpush.bf16.msra.mxu3 %v2258_v63 }
 0x20c   :  { %815 = vmatpush.bf16.msrb.mxu0 %v2392_v2 }
 0x20d   :  { %828 = vmatpush.bf16.msra.mxu1 %v2396_v6  ;;  %841 = vmatpush.bf16.msrb.mxu2 %v2398_v8 }
 0x20f   :  { %851 = vmatpush.bf16.msra.mxu3 %v2297_v18 }
 0x213   :  { %852 = vmatpush.bf16.msra.mxu3 %v2335_v37 }
 0x217   :  { %853 = vmatpush.bf16.msra.mxu3 %v2374_v57 }
 0x21b   :  { %854 = vmatpush.bf16.msra.mxu3 %v2401_v9 }
 0x25b   :  { %v627_v62 = vpop.f32.mrf.mxu0 }
 0x25c   :  { %v640_v40 = vpop.f32.mrf.mxu1  ;;  %v628_v49 = vadd.f32 %v627_v62, %v2877_v45 }
 0x25d   :  { %v641_v19 = vadd.f32 %v640_v40, %v2467_v0 }
 0x261   :  { %v614_v17 = vpop.f32.mrf.mxu3 }
 0x262   :  { %v653_v28 = vpop.f32.mrf.mxu2  ;;  %v615_v58 = vadd.f32 %v614_v17, %v2878_v46 }
 0x263   :  { %v629_v31 = vpop.f32.mrf.mxu0  ;;  %v654_v62 = vadd.f32 %v653_v28, %v2469_v15 }
 0x264   :  { %v642_v33 = vpop.f32.mrf.mxu1 }
 0x269   :  { %v616_v61 = vpop.f32.mrf.mxu3 }
 0x26a   :  { %v655_v53 = vpop.f32.mrf.mxu2 }
 0x26b   :  { %v680_v4 = vpop.f32.mrf.mxu0 }
 0x26c   :  { %v711_v23 = vadd.f32 %v680_v4, %v628_v49  ;;  %v693_v1 = vpop.f32.mrf.mxu1 }
 0x26d   :  { %v712_v33 = vadd.f32 %v693_v1, %v641_v19 }
 0x26e   :  { %v718_v54 = vmul.f32 0.5, %v711_v23 }
 0x270   :  { %1935 = vtanh.f32 %v718_v54 }
 0x271   :  { %v667_v42 = vpop.f32.mrf.mxu3 }
 0x272   :  { %v710_v27 = vadd.f32 %v667_v42, %v615_v58  ;;  %v706_v56 = vpop.f32.mrf.mxu2 }
 0x273   :  { %v682_v36 = vpop.f32.mrf.mxu0  ;;  %v713_v23 = vadd.f32 %v706_v56, %v654_v62  ;;  %v883_v62 = vpop.permute.xlu1 %882 }
 0x274   :  { %v714_v35 = vmul.f32 0.5, %v710_v27  ;;  %v695_v31 = vpop.f32.mrf.mxu1 }
 0x275   :  { %v723_v42 = vmul.f32 0.5, %v713_v23 }
 0x276   :  { %1937 = vtanh.f32 %v714_v35  ;;  %v1936_v61 = vpop.eup %1935 }
 0x277   :  { %1939 = vtanh.f32 %v712_v33  ;;  %v720_v4 = vadd.f32 1.0, %v1936_v61 }
 0x278   :  { %1941 = vtanh.f32 %v723_v42 }
 0x279   :  { %v669_v53 = vpop.f32.mrf.mxu3  ;;  %v721_v54 = vmul.f32 0.5, %v720_v4 }
 0x27a   :  { %v708_v49 = vpop.f32.mrf.mxu2 }
 0x27b   :  { %v727_v1 = vmul.f32 %v721_v54, %v2530_v41 }
 0x27c   :  { %v1938_v17 = vpop.eup %1937 }
 0x27d   :  { %v716_v45 = vadd.f32 1.0, %v1938_v17  ;;  %v1940_v36 = vpop.eup %1939 }
 0x27e   :  { %v1942_v56 = vpop.eup %1941 }
 0x27f   :  { %v717_v58 = vmul.f32 0.5, %v716_v45  ;;  %v725_v41 = vadd.f32 1.0, %v1942_v56 }
 0x281   :  { %v728_v46 = vmul.f32 %v1940_v36, %v717_v58  ;;  %v746_v40 = vpop.f32.mrf.mxu3  ;;  %v726_v31 = vmul.f32 0.5, %v725_v41  ;;  %v2879_v58 = vld [vmem:[#allocation3_spill] sm:$0xff]  ;;  %v2880_v36 = vld [vmem:[#allocation4_spill] sm:$0xff] }
 0x282   :  { %v747_v27 = vadd.f32 %v2410_v14, %v746_v40 }
 0x283   :  { %v2582_v28 = vadd.f32 %v728_v46, %v727_v1 }
 0x284   :  { %v750_v19 = vmax.f32 %v747_v27, 0.0 }
 0x285   :  { %1943 = vtanh.f32 %v2582_v28 }
 0x286   :  { %v751_v35 = vpack.c.bf16 %v750_v19, %v750_v19 }
 0x288   :  { %1784 = vmatmul.msk.bf16.vlgmr.msra.gmra.mxu0 %vm140_vm2, %v751_v35  ;;  %1785 = vmatmul.msk.bf16.vlgmr.msrb.gmra.mxu1 %vm140_vm2, %v751_v35 }
 0x289   :  { %1786 = vmatmul.msk.bf16.vlgmr.msra.gmra.mxu2 %vm140_vm2, %v751_v35  ;;  %1787 = vmatmul.msk.bf16.vlgmr.msrb.gmra.mxu3 %vm140_vm2, %v751_v35  ;;  %v748_v45 = vpop.f32.mrf.mxu3 }
 0x28a   :  { %894 = vmatpush.bf16.msra.mxu0 %v2077_v3  ;;  %912 = vmatpush.bf16.msrb.mxu1 %v2088_v7 }
 0x28b   :  { %925 = vmatpush.bf16.msra.mxu2 %v2100_v11  ;;  %938 = vmatpush.bf16.msrb.mxu3 %v2102_v12  ;;  %v1944_v46 = vpop.eup %1943 }
 0x28c   :  { %v731_v33 = vmul.f32 %v1944_v46, %v726_v31 }
 0x28e   :  { %v807_v61 = vpack.c.bf16 %v731_v33, %v731_v33 }
 0x298   :  { %816 = vmatmul.bf16.vlgmr.msrb.gmra.mxu0 %v807_v61  ;;  %829 = vmatmul.bf16.vlgmr.msra.gmra.mxu1 %v807_v61 }
 0x299   :  { %842 = vmatmul.bf16.vlgmr.msrb.gmra.mxu2 %v807_v61  ;;  %855 = vmatmul.bf16.vlgmr.msra.gmra.mxu3 %v807_v61 }
 0x29a   :  { %951 = vmatpush.bf16.msrb.mxu0 %v2114_v16  ;;  %958 = vmatpush.bf16.msra.mxu1 %v2128_v20 }
 0x29b   :  { %971 = vmatpush.bf16.msrb.mxu2 %v2130_v21  ;;  %984 = vmatpush.bf16.msra.mxu3 %v2143_v25 }
 0x29e   :  { %959 = vmatpush.bf16.msra.mxu1 %v2158_v30 }
 0x29f   :  { %972 = vmatpush.bf16.msrb.mxu2 %v2170_v34  ;;  %985 = vmatpush.bf16.msra.mxu3 %v2182_v38 }
 0x2a2   :  { %960 = vmatpush.bf16.msra.mxu1 %v2200_v43 }
 0x2a3   :  { %973 = vmatpush.bf16.msrb.mxu2 %v2211_v47  ;;  %986 = vmatpush.bf16.msra.mxu3 %v2213_v48 }
 0x2a6   :  { %961 = vmatpush.bf16.msra.mxu1 %v2236_v55 }
 0x2a7   :  { %974 = vmatpush.bf16.msrb.mxu2 %v2247_v59  ;;  %987 = vmatpush.bf16.msra.mxu3 %v2249_v60 }
 0x2a8   :  { %1788 = vmatmul.msk.bf16.vlgmr.msra.gmra.mxu0 %vm88_vm1, %v883_v62 }
 0x2a9   :  { %997 = vmatpush.bf16.msra.mxu0 %v2156_v29 }
 0x2aa   :  { %962 = vmatpush.bf16.msra.mxu1 %v2272_v5 }
 0x2ab   :  { %975 = vmatpush.bf16.msrb.mxu2 %v2283_v10  ;;  %988 = vmatpush.bf16.msra.mxu3 %v2285_v13 }
 0x2ad   :  { %998 = vmatpush.bf16.msra.mxu0 %v2184_v39 }
 0x2ae   :  { %963 = vmatpush.bf16.msra.mxu1 %v2310_v24 }
 0x2af   :  { %976 = vmatpush.bf16.msrb.mxu2 %v2312_v26  ;;  %989 = vmatpush.bf16.msra.mxu3 %v2324_v32 }
 0x2b1   :  { %999 = vmatpush.bf16.msra.mxu0 %v2222_v51 }
 0x2b2   :  { %964 = vmatpush.bf16.msra.mxu1 %v2347_v44 }
 0x2b3   :  { %977 = vmatpush.bf16.msrb.mxu2 %v2360_v50  ;;  %990 = vmatpush.bf16.msra.mxu3 %v2362_v52 }
 0x2b5   :  { %1000 = vmatpush.bf16.msra.mxu0 %v2258_v63 }
 0x2b6   :  { %965 = vmatpush.bf16.msra.mxu1 %v2392_v2 }
 0x2b7   :  { %978 = vmatpush.bf16.msrb.mxu2 %v2396_v6  ;;  %991 = vmatpush.bf16.msra.mxu3 %v2398_v8 }
 0x2b9   :  { %1001 = vmatpush.bf16.msra.mxu0 %v2297_v18 }
 0x2bd   :  { %1002 = vmatpush.bf16.msra.mxu0 %v2335_v37 }
 0x2c1   :  { %1003 = vmatpush.bf16.msra.mxu0 %v2374_v57 }
 0x2c5   :  { %1004 = vmatpush.bf16.msra.mxu0 %v2401_v9 }
 0x305   :  { %v764_v53 = vpop.f32.mrf.mxu0  ;;  %v777_v49 = vpop.f32.mrf.mxu1 }
 0x306   :  { %v765_v42 = vadd.f32 %v764_v53, %v2879_v58  ;;  %v778_v40 = vadd.f32 %v777_v49, %v2880_v36 }
 0x30c   :  { %v790_v4 = vpop.f32.mrf.mxu2  ;;  %v803_v23 = vpop.f32.mrf.mxu3 }
 0x30d   :  { %v766_v17 = vpop.f32.mrf.mxu0  ;;  %v779_v54 = vpop.f32.mrf.mxu1  ;;  %v791_v31 = vadd.f32 %v790_v4, %v2467_v0  ;;  %v804_v62 = vadd.f32 %v803_v23, %v2469_v15 }
 0x314   :  { %v792_v27 = vpop.f32.mrf.mxu2  ;;  %v805_v1 = vpop.f32.mrf.mxu3 }
 0x315   :  { %v817_v19 = vpop.f32.mrf.mxu0  ;;  %v830_v35 = vpop.f32.mrf.mxu1 }
 0x316   :  { %v860_v56 = vadd.f32 %v817_v19, %v765_v42  ;;  %v861_v45 = vadd.f32 %v830_v35, %v778_v40 }
 0x318   :  { %v864_v41 = vmul.f32 0.5, %v860_v56  ;;  %v868_v46 = vmul.f32 0.5, %v861_v45 }
 0x31a   :  { %1945 = vtanh.f32 %v864_v41 }
 0x31b   :  { %1947 = vtanh.f32 %v868_v46 }
 0x31c   :  { %v843_v33 = vpop.f32.mrf.mxu2  ;;  %v856_v61 = vpop.f32.mrf.mxu3 }
 0x31d   :  { %v862_v17 = vadd.f32 %v843_v33, %v791_v31  ;;  %v819_v53 = vpop.f32.mrf.mxu0  ;;  %v832_v54 = vpop.f32.mrf.mxu1  ;;  %v863_v49 = vadd.f32 %v856_v61, %v804_v62 }
 0x31f   :  { %1949 = vtanh.f32 %v862_v17  ;;  %v873_v19 = vmul.f32 0.5, %v863_v49  ;;  %v1033_v49 = vpop.permute.xlu2 %1032 }
 0x320   :  { %v1946_v27 = vpop.eup %1945 }
 0x321   :  { %v1948_v1 = vpop.eup %1947  ;;  %v866_v36 = vadd.f32 1.0, %v1946_v27  ;;  %1951 = vtanh.f32 %v873_v19 }
 0x322   :  { %v870_v42 = vadd.f32 1.0, %v1948_v1 }
 0x323   :  { %v867_v40 = vmul.f32 0.5, %v866_v36 }
 0x324   :  { %v871_v35 = vmul.f32 0.5, %v870_v42  ;;  %v845_v56 = vpop.f32.mrf.mxu2  ;;  %v858_v45 = vpop.f32.mrf.mxu3 }
 0x325   :  { %v1950_v4 = vpop.eup %1949  ;;  %v896_v41 = vpop.f32.mrf.mxu0 }
 0x326   :  { %v877_v46 = vmul.f32 %v871_v35, %v2582_v28  ;;  %v878_v0 = vmul.f32 %v1950_v4, %v867_v40  ;;  %v897_v23 = vadd.f32 %v2410_v14, %v896_v41 }
 0x327   :  { %v1952_v36 = vpop.eup %1951 }
 0x328   :  { %v900_v31 = vmax.f32 %v897_v23, 0.0  ;;  %v2634_v33 = vadd.f32 %v878_v0, %v877_v46  ;;  %v875_v0 = vadd.f32 1.0, %v1952_v36 }
 0x32a   :  { %v901_v61 = vpack.c.bf16 %v900_v31, %v900_v31  ;;  %1953 = vtanh.f32 %v2634_v33  ;;  %v876_v17 = vmul.f32 0.5, %v875_v0  ;;  %v2882_v0 = vld [vmem:[#allocation5_spill] sm:$0xff] }
 0x32c   :  { %1789 = vmatmul.msk.bf16.vlgmr.msrb.gmra.mxu1 %vm140_vm2, %v901_v61  ;;  %1790 = vmatmul.msk.bf16.vlgmr.msra.gmra.mxu2 %vm140_vm2, %v901_v61 }
 0x32d   :  { %1791 = vmatmul.msk.bf16.vlgmr.msrb.gmra.mxu3 %vm140_vm2, %v901_v61  ;;  %1792 = vmatmul.msk.bf16.vlgmr.msrb.gmra.mxu0 %vm140_vm2, %v901_v61  ;;  %v898_v28 = vpop.f32.mrf.mxu0  ;;  %v2881_v61 = vld [vmem:[#allocation4_spill] sm:$0xff] }
 0x32e   :  { %1044 = vmatpush.bf16.msrb.mxu1 %v2077_v3  ;;  %1062 = vmatpush.bf16.msra.mxu2 %v2088_v7 }
 0x32f   :  { %1075 = vmatpush.bf16.msrb.mxu3 %v2100_v11  ;;  %1088 = vmatpush.bf16.msrb.mxu0 %v2102_v12 }
 0x330   :  { %v1954_v62 = vpop.eup %1953 }
 0x331   :  { %v881_v53 = vmul.f32 %v1954_v62, %v876_v17 }
 0x333   :  { %v957_v54 = vpack.c.bf16 %v881_v53, %v881_v53 }
 0x33c   :  { %966 = vmatmul.bf16.vlgmr.msra.gmra.mxu1 %v957_v54  ;;  %979 = vmatmul.bf16.vlgmr.msrb.gmra.mxu2 %v957_v54 }
 0x33d   :  { %992 = vmatmul.bf16.vlgmr.msra.gmra.mxu3 %v957_v54  ;;  %1005 = vmatmul.bf16.vlgmr.msra.gmra.mxu0 %v957_v54 }
 0x33e   :  { %1101 = vmatpush.bf16.msra.mxu1 %v2114_v16  ;;  %1108 = vmatpush.bf16.msrb.mxu2 %v2128_v20 }
 0x33f   :  { %1121 = vmatpush.bf16.msra.mxu3 %v2130_v21  ;;  %1134 = vmatpush.bf16.msra.mxu0 %v2143_v25 }
 0x342   :  { %1109 = vmatpush.bf16.msrb.mxu2 %v2158_v30 }
 0x343   :  { %1122 = vmatpush.bf16.msra.mxu3 %v2170_v34  ;;  %1135 = vmatpush.bf16.msra.mxu0 %v2182_v38 }
 0x346   :  { %1110 = vmatpush.bf16.msrb.mxu2 %v2200_v43 }
 0x347   :  { %1123 = vmatpush.bf16.msra.mxu3 %v2211_v47  ;;  %1136 = vmatpush.bf16.msra.mxu0 %v2213_v48 }
 0x34a   :  { %1111 = vmatpush.bf16.msrb.mxu2 %v2236_v55 }
 0x34b   :  { %1124 = vmatpush.bf16.msra.mxu3 %v2247_v59  ;;  %1137 = vmatpush.bf16.msra.mxu0 %v2249_v60 }
 0x34c   :  { %1793 = vmatmul.msk.bf16.vlgmr.msrb.gmra.mxu1 %vm88_vm1, %v1033_v49 }
 0x34d   :  { %1147 = vmatpush.bf16.msrb.mxu1 %v2156_v29 }
 0x34e   :  { %1112 = vmatpush.bf16.msrb.mxu2 %v2272_v5 }
 0x34f   :  { %1125 = vmatpush.bf16.msra.mxu3 %v2283_v10  ;;  %1138 = vmatpush.bf16.msra.mxu0 %v2285_v13 }
 0x351   :  { %1148 = vmatpush.bf16.msrb.mxu1 %v2184_v39 }
 0x352   :  { %1113 = vmatpush.bf16.msrb.mxu2 %v2310_v24 }
 0x353   :  { %1126 = vmatpush.bf16.msra.mxu3 %v2312_v26  ;;  %1139 = vmatpush.bf16.msra.mxu0 %v2324_v32 }
 0x355   :  { %1149 = vmatpush.bf16.msrb.mxu1 %v2222_v51 }
 0x356   :  { %1114 = vmatpush.bf16.msrb.mxu2 %v2347_v44 }
 0x357   :  { %1127 = vmatpush.bf16.msra.mxu3 %v2360_v50  ;;  %1140 = vmatpush.bf16.msra.mxu0 %v2362_v52 }
 0x359   :  { %1150 = vmatpush.bf16.msrb.mxu1 %v2258_v63 }
 0x35a   :  { %1115 = vmatpush.bf16.msrb.mxu2 %v2392_v2 }
 0x35b   :  { %1128 = vmatpush.bf16.msra.mxu3 %v2396_v6  ;;  %1141 = vmatpush.bf16.msra.mxu0 %v2398_v8 }
 0x35d   :  { %1151 = vmatpush.bf16.msrb.mxu1 %v2297_v18 }
 0x361   :  { %1152 = vmatpush.bf16.msrb.mxu1 %v2335_v37 }
 0x365   :  { %1153 = vmatpush.bf16.msrb.mxu1 %v2374_v57 }
 0x369   :  { %1154 = vmatpush.bf16.msrb.mxu1 %v2401_v9 }
 0x3a9   :  { %v914_v27 = vpop.f32.mrf.mxu1 }
 0x3aa   :  { %v953_v1 = vpop.f32.mrf.mxu0  ;;  %v915_v45 = vadd.f32 %v914_v27, %v2879_v58 }
 0x3ab   :  { %v954_v53 = vadd.f32 %v953_v1, %v2469_v15 }
 0x3af   :  { %v927_v42 = vpop.f32.mrf.mxu2 }
 0x3b0   :  { %v940_v40 = vpop.f32.mrf.mxu3  ;;  %v928_v36 = vadd.f32 %v927_v42, %v2881_v61 }
 0x3b1   :  { %v916_v19 = vpop.f32.mrf.mxu1  ;;  %v941_v22 = vadd.f32 %v940_v40, %v2882_v0 }
 0x3b2   :  { %v955_v35 = vpop.f32.mrf.mxu0 }
 0x3b7   :  { %v929_v56 = vpop.f32.mrf.mxu2 }
 0x3b8   :  { %v942_v4 = vpop.f32.mrf.mxu3 }
 0x3b9   :  { %v967_v41 = vpop.f32.mrf.mxu1 }
 0x3ba   :  { %v1010_v46 = vadd.f32 %v967_v41, %v915_v45  ;;  %v1006_v23 = vpop.f32.mrf.mxu0 }
 0x3bb   :  { %v1013_v27 = vadd.f32 %v1006_v23, %v954_v53 }
 0x3bc   :  { %v1014_v31 = vmul.f32 0.5, %v1010_v46 }
 0x3bd   :  { %v1023_v4 = vmul.f32 0.5, %v1013_v27 }
 0x3be   :  { %1955 = vtanh.f32 %v1014_v31 }
 0x3bf   :  { %v980_v28 = vpop.f32.mrf.mxu2 }
 0x3c0   :  { %v1011_v62 = vadd.f32 %v980_v28, %v928_v36  ;;  %v993_v17 = vpop.f32.mrf.mxu3 }
 0x3c1   :  { %v969_v54 = vpop.f32.mrf.mxu1  ;;  %v1012_v19 = vadd.f32 %v993_v17, %v941_v22 }
 0x3c2   :  { %v1018_v49 = vmul.f32 0.5, %v1011_v62  ;;  %v1008_v35 = vpop.f32.mrf.mxu0 }
 0x3c4   :  { %v1956_v56 = vpop.eup %1955  ;;  %1957 = vtanh.f32 %v1018_v49 }
 0x3c5   :  { %1959 = vtanh.f32 %v1012_v19  ;;  %v1016_v45 = vadd.f32 1.0, %v1956_v56 }
 0x3c6   :  { %1961 = vtanh.f32 %v1023_v4 }
 0x3c7   :  { %v982_v41 = vpop.f32.mrf.mxu2  ;;  %v1017_v36 = vmul.f32 0.5, %v1016_v45  ;;  %v1183_v45 = vpop.permute.xlu2 %1182 }
 0x3c8   :  { %v995_v42 = vpop.f32.mrf.mxu3 }
 0x3c9   :  { %v1046_v46 = vpop.f32.mrf.mxu1 }
 0x3ca   :  { %v1958_v31 = vpop.eup %1957  ;;  %v1047_v40 = vadd.f32 %v2410_v14, %v1046_v46 }
 0x3cb   :  { %v1020_v28 = vadd.f32 1.0, %v1958_v31  ;;  %v1960_v1 = vpop.eup %1959 }
 0x3cc   :  { %v1050_v54 = vmax.f32 %v1047_v40, 0.0  ;;  %v1028_v17 = vmul.f32 %v1960_v1, %v1017_v36  ;;  %v1962_v53 = vpop.eup %1961 }
 0x3cd   :  { %v1021_v62 = vmul.f32 0.5, %v1020_v28 }
 0x3ce   :  { %v1051_v22 = vpack.c.bf16 %v1050_v54, %v1050_v54 }
 0x3cf   :  { %v1027_v23 = vmul.f32 %v1021_v62, %v2634_v33  ;;  %v1025_v33 = vadd.f32 1.0, %v1962_v53 }
 0x3d0   :  { %1794 = vmatmul.msk.bf16.vlgmr.msra.gmra.mxu2 %vm140_vm2, %v1051_v22  ;;  %1795 = vmatmul.msk.bf16.vlgmr.msrb.gmra.mxu3 %vm140_vm2, %v1051_v22 }
 0x3d1   :  { %v2688_v49 = vadd.f32 %v1028_v17, %v1027_v23  ;;  %1796 = vmatmul.msk.bf16.vlgmr.msrb.gmra.mxu0 %vm140_vm2, %v1051_v22  ;;  %1797 = vmatmul.msk.bf16.vlgmr.msra.gmra.mxu1 %vm140_vm2, %v1051_v22  ;;  %v1048_v14 = vpop.f32.mrf.mxu1  ;;  %v1026_v19 = vmul.f32 0.5, %v1025_v33 }
 0x3d2   :  { %1194 = vmatpush.bf16.msra.mxu2 %v2077_v3  ;;  %1212 = vmatpush.bf16.msrb.mxu3 %v2088_v7 }
 0x3d3   :  { %1963 = vtanh.f32 %v2688_v49  ;;  %1225 = vmatpush.bf16.msrb.mxu0 %v2100_v11  ;;  %1238 = vmatpush.bf16.msra.mxu1 %v2102_v12 }
 0x3d9   :  { %v1964_v35 = vpop.eup %1963 }
 0x3da   :  { %v1031_v27 = vmul.f32 %v1964_v35, %v1026_v19 }
 0x3dc   :  { %v1107_v56 = vpack.c.bf16 %v1031_v27, %v1031_v27 }
 0x3e0   :  { %1116 = vmatmul.bf16.vlgmr.msrb.gmra.mxu2 %v1107_v56  ;;  %1129 = vmatmul.bf16.vlgmr.msra.gmra.mxu3 %v1107_v56 }
 0x3e1   :  { %1142 = vmatmul.bf16.vlgmr.msra.gmra.mxu0 %v1107_v56  ;;  %1155 = vmatmul.bf16.vlgmr.msrb.gmra.mxu1 %v1107_v56 }
 0x3e2   :  { %1251 = vmatpush.bf16.msrb.mxu2 %v2114_v16  ;;  %1258 = vmatpush.bf16.msra.mxu3 %v2128_v20 }
 0x3e3   :  { %1271 = vmatpush.bf16.msra.mxu0 %v2130_v21  ;;  %1284 = vmatpush.bf16.msrb.mxu1 %v2143_v25 }
 0x3e6   :  { %1259 = vmatpush.bf16.msra.mxu3 %v2158_v30 }
 0x3e7   :  { %1272 = vmatpush.bf16.msra.mxu0 %v2170_v34  ;;  %1285 = vmatpush.bf16.msrb.mxu1 %v2182_v38 }
 0x3ea   :  { %1260 = vmatpush.bf16.msra.mxu3 %v2200_v43 }
 0x3eb   :  { %1273 = vmatpush.bf16.msra.mxu0 %v2211_v47  ;;  %1286 = vmatpush.bf16.msrb.mxu1 %v2213_v48 }
 0x3ee   :  { %1261 = vmatpush.bf16.msra.mxu3 %v2236_v55 }
 0x3ef   :  { %1274 = vmatpush.bf16.msra.mxu0 %v2247_v59  ;;  %1287 = vmatpush.bf16.msrb.mxu1 %v2249_v60 }
 0x3f0   :  { %1798 = vmatmul.msk.bf16.vlgmr.msra.gmra.mxu2 %vm88_vm1, %v1183_v45 }
 0x3f1   :  { %1297 = vmatpush.bf16.msra.mxu2 %v2156_v29 }
 0x3f2   :  { %1262 = vmatpush.bf16.msra.mxu3 %v2272_v5 }
 0x3f3   :  { %1275 = vmatpush.bf16.msra.mxu0 %v2283_v10  ;;  %1288 = vmatpush.bf16.msrb.mxu1 %v2285_v13 }
 0x3f5   :  { %1298 = vmatpush.bf16.msra.mxu2 %v2184_v39 }
 0x3f6   :  { %1263 = vmatpush.bf16.msra.mxu3 %v2310_v24 }
 0x3f7   :  { %1276 = vmatpush.bf16.msra.mxu0 %v2312_v26  ;;  %1289 = vmatpush.bf16.msrb.mxu1 %v2324_v32 }
 0x3f9   :  { %1299 = vmatpush.bf16.msra.mxu2 %v2222_v51 }
 0x3fa   :  { %1264 = vmatpush.bf16.msra.mxu3 %v2347_v44 }
 0x3fb   :  { %1277 = vmatpush.bf16.msra.mxu0 %v2360_v50  ;;  %1290 = vmatpush.bf16.msrb.mxu1 %v2362_v52 }
 0x3fd   :  { %1300 = vmatpush.bf16.msra.mxu2 %v2258_v63 }
 0x3fe   :  { %1265 = vmatpush.bf16.msra.mxu3 %v2392_v2 }
 0x3ff   :  { %1278 = vmatpush.bf16.msra.mxu0 %v2396_v6  ;;  %1291 = vmatpush.bf16.msrb.mxu1 %v2398_v8 }
 0x401   :  { %1301 = vmatpush.bf16.msra.mxu2 %v2297_v18 }
 0x405   :  { %1302 = vmatpush.bf16.msra.mxu2 %v2335_v37 }
 0x409   :  { %1303 = vmatpush.bf16.msra.mxu2 %v2374_v57 }
 0x40d   :  { %1304 = vmatpush.bf16.msra.mxu2 %v2401_v9 }
 0x44e   :  { %v1090_v4 = vpop.f32.mrf.mxu0  ;;  %v1103_v41 = vpop.f32.mrf.mxu1 }
 0x44f   :  { %v1091_v33 = vadd.f32 %v1090_v4, %v2882_v0 }
 0x453   :  { %v1064_v42 = vpop.f32.mrf.mxu2  ;;  %v1077_v46 = vpop.f32.mrf.mxu3 }
 0x454   :  { %v1065_v62 = vadd.f32 %v1064_v42, %v2879_v58  ;;  %v1078_v22 = vadd.f32 %v1077_v46, %v2881_v61 }
 0x456   :  { %v1092_v31 = vpop.f32.mrf.mxu0  ;;  %v1105_v40 = vpop.f32.mrf.mxu1 }
 0x457   :  { %v1104_v31 = vadd.f32 %v1103_v41, %v2469_v15  ;;  %v2739_v41 = vld [vmem:[%s2854_s4] ss:$0 sm:$0xff] }
 0x45b   :  { %v1066_v36 = vpop.f32.mrf.mxu2  ;;  %v1079_v28 = vpop.f32.mrf.mxu3 }
 0x45e   :  { %v1143_v1 = vpop.f32.mrf.mxu0  ;;  %v1156_v54 = vpop.f32.mrf.mxu1 }
 0x45f   :  { %v1162_v45 = vadd.f32 %v1143_v1, %v1091_v33  ;;  %v1163_v42 = vadd.f32 %v1156_v54, %v1104_v31 }
 0x463   :  { %v1117_v23 = vpop.f32.mrf.mxu2  ;;  %v1130_v17 = vpop.f32.mrf.mxu3 }
 0x464   :  { %v1160_v53 = vadd.f32 %v1117_v23, %v1065_v62  ;;  %v1161_v14 = vadd.f32 %v1130_v17, %v1078_v22  ;;  %v1173_v22 = vmul.f32 0.5, %v1163_v42 }
 0x466   :  { %v1164_v19 = vmul.f32 0.5, %v1160_v53  ;;  %v1168_v35 = vmul.f32 0.5, %v1161_v14  ;;  %v1145_v27 = vpop.f32.mrf.mxu0  ;;  %v1158_v56 = vpop.f32.mrf.mxu1 }
 0x468   :  { %1965 = vtanh.f32 %v1164_v19 }
 0x469   :  { %1967 = vtanh.f32 %v1168_v35 }
 0x46a   :  { %1969 = vtanh.f32 %v1162_v45 }
 0x46b   :  { %v1119_v40 = vpop.f32.mrf.mxu2  ;;  %v1132_v36 = vpop.f32.mrf.mxu3  ;;  %1971 = vtanh.f32 %v1173_v22 }
 0x46e   :  { %v1966_v46 = vpop.eup %1965 }
 0x46f   :  { %v1968_v28 = vpop.eup %1967  ;;  %v1166_v58 = vadd.f32 1.0, %v1966_v46 }
 0x470   :  { %v1170_v62 = vadd.f32 1.0, %v1968_v28  ;;  %v1970_v4 = vpop.eup %1969 }
 0x471   :  { %v1167_v23 = vmul.f32 0.5, %v1166_v58  ;;  %v1972_v58 = vpop.eup %1971 }
 0x472   :  { %v1171_v17 = vmul.f32 0.5, %v1170_v62  ;;  %v1175_v27 = vadd.f32 1.0, %v1972_v58  ;;  %v1896_v58 = vld [vmem:[%s2859_s8 + $0x18] sm:$0xff] }
 0x473   :  { %v1178_v53 = vmul.f32 %v1970_v4, %v1167_v23  ;;  %v1196_v14 = vpop.f32.mrf.mxu2 }
 0x474   :  { %v1177_v1 = vmul.f32 %v1171_v17, %v2688_v49  ;;  %v1197_v33 = vadd.f32 %v2739_v41, %v1196_v14  ;;  %v1176_v45 = vmul.f32 0.5, %v1175_v27 }
 0x476   :  { %v1200_v54 = vmax.f32 %v1197_v33, 0.0  ;;  %v2742_v19 = vadd.f32 %v1178_v53, %v1177_v1  ;;  %v1900_v33 = vld [vmem:[%s2859_s8 + $0x38] sm:$0xff] }
 0x478   :  { %v1201_v35 = vpack.c.bf16 %v1200_v54, %v1200_v54  ;;  %1973 = vtanh.f32 %v2742_v19  ;;  %v1899_v54 = vld [vmem:[%s2859_s8 + $0x30] sm:$0xff] }
 0x47a   :  { %1799 = vmatmul.msk.bf16.vlgmr.msrb.gmra.mxu3 %vm140_vm2, %v1201_v35  ;;  %1800 = vmatmul.msk.bf16.vlgmr.msrb.gmra.mxu0 %vm140_vm2, %v1201_v35 }
 0x47b   :  { %1801 = vmatmul.msk.bf16.vlgmr.msra.gmra.mxu1 %vm140_vm2, %v1201_v35  ;;  %1802 = vmatmul.msk.bf16.vlgmr.msrb.gmra.mxu2 %vm140_vm2, %v1201_v35  ;;  %v1198_v49 = vpop.f32.mrf.mxu2  ;;  %v1897_v35 = vld [vmem:[%s2859_s8 + $0x20] sm:$0xff] }
 0x47c   :  { %1344 = vmatpush.bf16.msrb.mxu3 %v2077_v3  ;;  %1362 = vmatpush.bf16.msrb.mxu0 %v2088_v7  ;;  %v1333_v3 = vpop.permute.xlu0 %1332 }
 0x47d   :  { %1375 = vmatpush.bf16.msra.mxu1 %v2100_v11  ;;  %1388 = vmatpush.bf16.msrb.mxu2 %v2102_v12 }
 0x47e   :  { %v1974_v56 = vpop.eup %1973 }
 0x47f   :  { %v1181_v31 = vmul.f32 %v1974_v56, %v1176_v45  ;;  %v1895_v56 = vld [vmem:[%s2859_s8 + $0x10] sm:$0xff] }
 0x481   :  { %v1257_v40 = vpack.c.bf16 %v1181_v31, %v1181_v31 }
 0x48a   :  { %1266 = vmatmul.bf16.vlgmr.msra.gmra.mxu3 %v1257_v40  ;;  %1279 = vmatmul.bf16.vlgmr.msra.gmra.mxu0 %v1257_v40 }
 0x48b   :  { %1292 = vmatmul.bf16.vlgmr.msrb.gmra.mxu1 %v1257_v40  ;;  %1305 = vmatmul.bf16.vlgmr.msra.gmra.mxu2 %v1257_v40  ;;  %v1894_v40 = vld [vmem:[%s2859_s8 + $0x8] sm:$0xff] }
 0x48c   :  { %1401 = vmatpush.bf16.msra.mxu3 %v2114_v16  ;;  %1408 = vmatpush.bf16.msra.mxu0 %v2128_v20 }
 0x48d   :  { %1421 = vmatpush.bf16.msrb.mxu1 %v2130_v21  ;;  %1434 = vmatpush.bf16.msra.mxu2 %v2143_v25 }
 0x490   :  { %1409 = vmatpush.bf16.msra.mxu0 %v2158_v30 }
 0x491   :  { %1422 = vmatpush.bf16.msrb.mxu1 %v2170_v34  ;;  %1435 = vmatpush.bf16.msra.mxu2 %v2182_v38 }
 0x494   :  { %1410 = vmatpush.bf16.msra.mxu0 %v2200_v43 }
 0x495   :  { %1423 = vmatpush.bf16.msrb.mxu1 %v2211_v47  ;;  %1436 = vmatpush.bf16.msra.mxu2 %v2213_v48  ;;  %v2883_v47 = vld [vmem:[#allocation3_spill] sm:$0xff] }
 0x498   :  { %1411 = vmatpush.bf16.msra.mxu0 %v2236_v55 }
 0x499   :  { %1424 = vmatpush.bf16.msrb.mxu1 %v2247_v59  ;;  %1437 = vmatpush.bf16.msra.mxu2 %v2249_v60 }
 0x49a   :  { %1803 = vmatmul.msk.bf16.vlgmr.msrb.gmra.mxu3 %vm88_vm1, %v1333_v3 }
 0x49b   :  { %1447 = vmatpush.bf16.msrb.mxu3 %v2156_v29 }
 0x49c   :  { %1412 = vmatpush.bf16.msra.mxu0 %v2272_v5 }
 0x49d   :  { %1425 = vmatpush.bf16.msrb.mxu1 %v2283_v10  ;;  %1438 = vmatpush.bf16.msra.mxu2 %v2285_v13 }
 0x49f   :  { %1448 = vmatpush.bf16.msrb.mxu3 %v2184_v39 }
 0x4a0   :  { %1413 = vmatpush.bf16.msra.mxu0 %v2310_v24 }
 0x4a1   :  { %1426 = vmatpush.bf16.msrb.mxu1 %v2312_v26  ;;  %1439 = vmatpush.bf16.msra.mxu2 %v2324_v32 }
 0x4a3   :  { %1449 = vmatpush.bf16.msrb.mxu3 %v2222_v51 }
 0x4a4   :  { %1414 = vmatpush.bf16.msra.mxu0 %v2347_v44 }
 0x4a5   :  { %1427 = vmatpush.bf16.msrb.mxu1 %v2360_v50  ;;  %1440 = vmatpush.bf16.msra.mxu2 %v2362_v52 }
 0x4a7   :  { %1450 = vmatpush.bf16.msrb.mxu3 %v2258_v63 }
 0x4a8   :  { %1415 = vmatpush.bf16.msra.mxu0 %v2392_v2 }
 0x4a9   :  { %1428 = vmatpush.bf16.msrb.mxu1 %v2396_v6  ;;  %1441 = vmatpush.bf16.msra.mxu2 %v2398_v8 }
 0x4ab   :  { %1451 = vmatpush.bf16.msrb.mxu3 %v2297_v18 }
 0x4af   :  { %1452 = vmatpush.bf16.msrb.mxu3 %v2335_v37 }
 0x4b3   :  { %1453 = vmatpush.bf16.msrb.mxu3 %v2374_v57 }
 0x4b7   :  { %1454 = vmatpush.bf16.msrb.mxu3 %v2401_v9 }
 0x4f7   :  { %v1227_v7 = vpop.f32.mrf.mxu0 }
 0x4f8   :  { %v1240_v11 = vpop.f32.mrf.mxu1  ;;  %v1228_v29 = vadd.f32 %v1227_v7, %v2881_v61 }
 0x4f9   :  { %v1241_v63 = vadd.f32 %v1240_v11, %v2882_v0  ;;  %v1893_v11 = vld [vmem:[%s2859_s8] sm:$0xff] }
 0x4fd   :  { %v1214_v12 = vpop.f32.mrf.mxu3 }
 0x4fe   :  { %v1253_v16 = vpop.f32.mrf.mxu2  ;;  %v1215_v48 = vadd.f32 %v1214_v12, %v2883_v47 }
 0x4ff   :  { %v1229_v20 = vpop.f32.mrf.mxu0  ;;  %v1254_v24 = vadd.f32 %v1253_v16, %v2469_v15 }
 0x500   :  { %v1242_v21 = vpop.f32.mrf.mxu1 }
 0x505   :  { %v1216_v25 = vpop.f32.mrf.mxu3 }
 0x506   :  { %v1255_v30 = vpop.f32.mrf.mxu2 }
 0x507   :  { %v1280_v34 = vpop.f32.mrf.mxu0  ;;  %v1904_v30 = vld [vmem:[%s2860_s10 + $0x18] sm:$0xff] }
 0x508   :  { %v1311_v38 = vadd.f32 %v1280_v34, %v1228_v29  ;;  %v1293_v39 = vpop.f32.mrf.mxu1 }
 0x509   :  { %v1312_v13 = vadd.f32 %v1293_v39, %v1241_v63  ;;  %v1903_v39 = vld [vmem:[%s2860_s10 + $0x10] sm:$0xff] }
 0x50a   :  { %v1318_v43 = vmul.f32 0.5, %v1311_v38 }
 0x50c   :  { %1975 = vtanh.f32 %v1318_v43 }
 0x50d   :  { %v1267_v51 = vpop.f32.mrf.mxu3 }
 0x50e   :  { %v1310_v55 = vadd.f32 %v1267_v51, %v1215_v48  ;;  %v1306_v59 = vpop.f32.mrf.mxu2  ;;  %v1902_v51 = vld [vmem:[%s2860_s10 + $0x8] sm:$0xff] }
 0x50f   :  { %v1282_v60 = vpop.f32.mrf.mxu0  ;;  %v1313_v44 = vadd.f32 %v1306_v59, %v1254_v24 }
 0x510   :  { %v1314_v5 = vmul.f32 0.5, %v1310_v55  ;;  %v1295_v10 = vpop.f32.mrf.mxu1 }
 0x511   :  { %v1323_v6 = vmul.f32 0.5, %v1313_v44 }
 0x512   :  { %1977 = vtanh.f32 %v1314_v5  ;;  %v1976_v18 = vpop.eup %1975 }
 0x513   :  { %1979 = vtanh.f32 %v1312_v13  ;;  %v1320_v37 = vadd.f32 1.0, %v1976_v18 }
 0x514   :  { %1981 = vtanh.f32 %v1323_v6 }
 0x515   :  { %v1269_v26 = vpop.f32.mrf.mxu3  ;;  %v1321_v57 = vmul.f32 0.5, %v1320_v37 }
 0x516   :  { %v1308_v32 = vpop.f32.mrf.mxu2 }
 0x517   :  { %v1327_v46 = vmul.f32 %v1321_v57, %v2742_v19  ;;  %v1898_v19 = vld [vmem:[%s2859_s8 + $0x28] sm:$0xff] }
 0x518   :  { %v1978_v50 = vpop.eup %1977 }
 0x519   :  { %v1316_v52 = vadd.f32 1.0, %v1978_v50  ;;  %v1980_v8 = vpop.eup %1979 }
 0x51a   :  { %v1982_v23 = vpop.eup %1981 }
 0x51b   :  { %v1317_v2 = vmul.f32 0.5, %v1316_v52  ;;  %v1325_v17 = vadd.f32 1.0, %v1982_v23 }
 0x51d   :  { %v1328_v9 = vmul.f32 %v1980_v8, %v1317_v2  ;;  %v1346_v36 = vpop.f32.mrf.mxu3  ;;  %v1326_v14 = vmul.f32 0.5, %v1325_v17 }
 0x51e   :  { %v1347_v42 = vadd.f32 %v2739_v41, %v1346_v36 }
 0x51f   :  { %v2793_v62 = vadd.f32 %v1328_v9, %v1327_v46 }
 0x520   :  { %v1350_v28 = vmax.f32 %v1347_v42, 0.0 }
 0x521   :  { %1983 = vtanh.f32 %v2793_v62 }
 0x522   :  { %v1351_v22 = vpack.c.bf16 %v1350_v28, %v1350_v28  ;;  %v1901_v28 = vld [vmem:[%s2860_s10] sm:$0xff] }
 0x524   :  { %1804 = vmatmul.msk.bf16.vlgmr.msrb.gmra.mxu0 %vm140_vm2, %v1351_v22  ;;  %1805 = vmatmul.msk.bf16.vlgmr.msra.gmra.mxu1 %vm140_vm2, %v1351_v22 }
 0x525   :  { %1806 = vmatmul.msk.bf16.vlgmr.msrb.gmra.mxu2 %vm140_vm2, %v1351_v22  ;;  %1807 = vmatmul.msk.bf16.vlgmr.msra.gmra.mxu3 %vm140_vm2, %v1351_v22  ;;  %v1348_v4 = vpop.f32.mrf.mxu3  ;;  %v1913_v22 = vld [vmem:[%s2858_s9] ss:$0 sm:$0xff] }
 0x526   :  { %1551 = vmatpush.bf16.msrb.mxu0 %v1900_v33  ;;  %1610 = vmatpush.bf16.msra.mxu1 %v1904_v30 }
 0x527   :  { %v1984_v53 = vpop.eup %1983 }
 0x528   :  { %v1331_v1 = vmul.f32 %v1984_v53, %v1326_v14  ;;  %v1914_v14 = vld [vmem:[%s2861_s11] ss:$0 sm:$0xff] }
 0x52a   :  { %v1407_v41 = vpack.c.bf16 %v1331_v1, %v1331_v1  ;;  %1552 = vmatpush.bf16.msrb.mxu0 %v1899_v54  ;;  %1611 = vmatpush.bf16.msra.mxu1 %v1903_v39 }
 0x52e   :  { %1553 = vmatpush.bf16.msrb.mxu0 %v1898_v19  ;;  %1612 = vmatpush.bf16.msra.mxu1 %v1902_v51 }
 0x532   :  { %1554 = vmatpush.bf16.msrb.mxu0 %v1897_v35  ;;  %1613 = vmatpush.bf16.msra.mxu1 %v1901_v28 }
 0x534   :  { %1416 = vmatmul.bf16.vlgmr.msra.gmra.mxu0 %v1407_v41  ;;  %1429 = vmatmul.bf16.vlgmr.msrb.gmra.mxu1 %v1407_v41 }
 0x535   :  { %1442 = vmatmul.bf16.vlgmr.msra.gmra.mxu2 %v1407_v41  ;;  %1455 = vmatmul.bf16.vlgmr.msrb.gmra.mxu3 %v1407_v41 }
 0x536   :  { %1555 = vmatpush.bf16.msrb.mxu0 %v1896_v58 }
 0x53a   :  { %1556 = vmatpush.bf16.msrb.mxu0 %v1895_v56 }
 0x53e   :  { %1557 = vmatpush.bf16.msrb.mxu0 %v1894_v40 }
 0x542   :  { %1558 = vmatpush.bf16.msrb.mxu0 %v1893_v11 }
 0x5a1   :  { %v1364_v49 = vpop.f32.mrf.mxu0  ;;  %v1377_v27 = vpop.f32.mrf.mxu1 }
 0x5a2   :  { %v1365_v12 = vadd.f32 %v1364_v49, %v2883_v47  ;;  %v1378_v16 = vadd.f32 %v1377_v27, %v2881_v61 }
 0x5a8   :  { %v1390_v45 = vpop.f32.mrf.mxu2  ;;  %v1403_v31 = vpop.f32.mrf.mxu3 }
 0x5a9   :  { %v1366_v3 = vpop.f32.mrf.mxu0  ;;  %v1379_v7 = vpop.f32.mrf.mxu1  ;;  %v1391_v61 = vadd.f32 %v1390_v45, %v2882_v0  ;;  %v1404_v47 = vadd.f32 %v1403_v31, %v2469_v15 }
 0x5b0   :  { %v1392_v20 = vpop.f32.mrf.mxu2  ;;  %v1405_v21 = vpop.f32.mrf.mxu3 }
 0x5b1   :  { %v1417_v25 = vpop.f32.mrf.mxu0  ;;  %v1430_v29 = vpop.f32.mrf.mxu1 }
 0x5b2   :  { %v1460_v34 = vadd.f32 %v1417_v25, %v1365_v12  ;;  %v1461_v38 = vadd.f32 %v1430_v29, %v1378_v16 }
 0x5b4   :  { %v1464_v43 = vmul.f32 0.5, %v1460_v34  ;;  %v1468_v48 = vmul.f32 0.5, %v1461_v38 }
 0x5b6   :  { %1985 = vtanh.f32 %v1464_v43 }
 0x5b7   :  { %1987 = vtanh.f32 %v1468_v48 }
 0x5b8   :  { %v1443_v55 = vpop.f32.mrf.mxu2  ;;  %v1456_v59 = vpop.f32.mrf.mxu3 }
 0x5b9   :  { %v1462_v60 = vadd.f32 %v1443_v55, %v1391_v61  ;;  %v1463_v63 = vadd.f32 %v1456_v59, %v1404_v47  ;;  %v1419_v5 = vpop.f32.mrf.mxu0  ;;  %v1432_v10 = vpop.f32.mrf.mxu1 }
 0x5bb   :  { %1989 = vtanh.f32 %v1462_v60  ;;  %v1473_v13 = vmul.f32 0.5, %v1463_v63 }
 0x5bc   :  { %v1986_v18 = vpop.eup %1985 }
 0x5bd   :  { %v1988_v24 = vpop.eup %1987  ;;  %v1466_v0 = vadd.f32 1.0, %v1986_v18  ;;  %1991 = vtanh.f32 %v1473_v13 }
 0x5be   :  { %v1470_v26 = vadd.f32 1.0, %v1988_v24 }
 0x5bf   :  { %v1467_v15 = vmul.f32 0.5, %v1466_v0 }
 0x5c0   :  { %v1471_v32 = vmul.f32 0.5, %v1470_v26  ;;  %v1445_v37 = vpop.f32.mrf.mxu2  ;;  %v1458_v44 = vpop.f32.mrf.mxu3 }
 0x5c1   :  { %v1990_v50 = vpop.eup %1989 }
 0x5c2   :  { %v1477_v52 = vmul.f32 %v1471_v32, %v2793_v62  ;;  %v1478_v57 = vmul.f32 %v1990_v50, %v1467_v15 }
 0x5c3   :  { %v1992_v2 = vpop.eup %1991 }
 0x5c4   :  { %v1479_v6 = vadd.f32 %v1478_v57, %v1477_v52  ;;  %v1475_v8 = vadd.f32 1.0, %v1992_v2 }
 0x5c6   :  { %1993 = vtanh.f32 %v1479_v6  ;;  %v1476_v9 = vmul.f32 0.5, %v1475_v8 }
 0x5cc   :  { %v1994_v36 = vpop.eup %1993 }
 0x5cd   :  { %v1481_v42 = vmul.f32 %v1994_v36, %v1476_v9 }
 0x5cf   :  { %v1482_v46 = vpack.c.bf16 %v1481_v42, %v1481_v42 }
 0x5d1   :  { %1559 = vmatmul.bf16.vlgmr.msrb.gmra.mxu0 %v1482_v46 }
 0x64e   :  { %v1560_v62 = vpop.f32.mrf.mxu0 }
 0x64f   :  { %v1561_v23 = vadd.f32 %v1913_v22, %v1560_v62 }
 0x651   :  { %v1564_v4 = vmax.f32 %v1561_v23, 0.0 }
 0x653   :  { %v1565_v17 = vpack.c.bf16 %v1564_v4, %v1564_v4 }
 0x655   :  { %1856 = vmatmul.msk.bf16.vlgmr.msra.gmra.mxu1 %vm1602_vm3, %v1565_v17 }
 0x656   :  { %v1562_v53 = vpop.f32.mrf.mxu0 }
 0x6d2   :  { %v1615_v1 = vpop.f32.mrf.mxu1 }
 0x6d3   :  { %v1616_v41 = vadd.f32 %v1914_v14, %v1615_v1 }
 0x6d5   :  { %1619 = vst [vmem:[%s2862_s12] sm:$0xff] %v1616_v41 }
 0x6da   :  { %v1617_v33 = vpop.f32.mrf.mxu1 }

// kernel: trajectory_discriminator_forward.2
= control target key start
LH: loop header
LB: loop body
LE: loop exit
PB: predicated region body
PF: predicated region fallthrough
CT: control target
= control target key end

     0   :  { %vm108_vm0 = vcmask 1042432   ;;  %vm95_vm3 = vcmask 48128   ;;  %vm187_vm10 = vcmask 130048   ;;  %s2362_s2 = inlined_call_operand.vmem [shape: bf16[6,16], index: 2, kind: input, shape index: {}]   ;;  %s2363_s1 = inlined_call_operand.vmem [shape: f32[64,6], index: 1, kind: input, shape index: {}]   ;;  %s2364_s3 = inlined_call_operand.vmem [shape: f32[1,16], index: 3, kind: input, shape index: {}]   ;;  %s2365_s4 = inlined_call_operand.vmem [shape: bf16[16,512], index: 4, kind: input, shape index: {}]   ;;  %s2366_s5 = inlined_call_operand.vmem [shape: bf16[128,512], index: 5, kind: input, shape index: {}]   ;;  %s2367_s0 = inlined_call_operand.vmem [shape: s32[8,1], index: 0, kind: input, shape index: {}]   ;;  %s2368_s6 = inlined_call_operand.vmem [shape: f32[1,512], index: 6, kind: input, shape index: {}]   ;;  %s2369_s8 = inlined_call_operand.vmem [shape: f32[8,128], index: 8, kind: output, shape index: {1}]   ;;  %s2370_s7 = inlined_call_operand.vmem [shape: f32[8,128], index: 7, kind: output, shape index: {0}]  }
   0x1   :  { %v90_v0 = vld [vmem:[%s2362_s2] sm:$0x7]  ;;  %v63_v2 = vld [vmem:[%s2363_s1 + $0x8] sm:$0xff]  ;;  %v68_v4 = vld [vmem:[%s2363_s1 + $0x30] sm:$0xff] }
   0x2   :  { %v62_v1 = vld [vmem:[%s2363_s1] sm:$0xff]  ;;  %v110_v3 = vsel %vm108_vm0, %v90_v0, 0  ;;  %vm71_vm2 = vcmp.ne.f32.partialorder %v63_v2, %v63_v2  ;;  %v69_v5 = vld [vmem:[%s2363_s1 + $0x38] sm:$0xff]  ;;  %vm76_vm4 = vcmp.ne.f32.partialorder %v68_v4, %v68_v4  ;;  %v64_v12 = vld [vmem:[%s2363_s1 + $0x10] sm:$0xff] }
   0x3   :  { %vm70_vm1 = vcmp.ne.f32.partialorder %v62_v1, %v62_v1  ;;  %119 = vmatpush.bf16.msra.mxu0 %v110_v3  ;;  %1425 = vmatpush.bf16.msra.mxu2 %v110_v3  ;;  %v79_v7 = vsel %vm71_vm2, 0.0, %v63_v2  ;;  %vm77_vm5 = vcmp.ne.f32.partialorder %v69_v5, %v69_v5  ;;  %v84_v9 = vsel %vm76_vm4, 0.0, %v68_v4  ;;  %v65_v13 = vld [vmem:[%s2363_s1 + $0x18] sm:$0xff]  ;;  %v66_v17 = vld [vmem:[%s2363_s1 + $0x20] sm:$0xff]  ;;  %v67_v18 = vld [vmem:[%s2363_s1 + $0x28] sm:$0xff] }
   0x4   :  { %v78_v6 = vsel %vm70_vm1, 0.0, %v62_v1  ;;  %v85_v10 = vsel %vm77_vm5, 0.0, %v69_v5  ;;  %vm72_vm6 = vcmp.ne.f32.partialorder %v64_v12, %v64_v12  ;;  %vm73_vm7 = vcmp.ne.f32.partialorder %v65_v13, %v65_v13  ;;  %v1219_v22 = vld [vmem:[%s2365_s4] sm:$0xf]  ;;  %v1423_v23 = vld [vmem:[%s2365_s4 + $0xc] sm:$0xf0] }
   0x5   :  { %v86_v8 = vpack.c.bf16 %v79_v7, %v78_v6  ;;  %v89_v11 = vpack.c.bf16 %v85_v10, %v84_v9  ;;  %v80_v14 = vsel %vm72_vm6, 0.0, %v64_v12  ;;  %v81_v15 = vsel %vm73_vm7, 0.0, %v65_v13  ;;  %v1421_v24 = vld [vmem:[%s2365_s4 + $0x4] sm:$0xf]  ;;  %v1221_v26 = vld [vmem:[%s2365_s4 + $0x10] sm:$0xf0] }
   0x6   :  { %v87_v16 = vpack.c.bf16 %v81_v15, %v80_v14  ;;  %vm74_vm8 = vcmp.ne.f32.partialorder %v66_v17, %v66_v17  ;;  %vm75_vm9 = vcmp.ne.f32.partialorder %v67_v18, %v67_v18  ;;  %v1220_v25 = vor.u32 %v1423_v23, %v1219_v22  ;;  %v1422_v27 = vld [vmem:[%s2365_s4 + $0xc] sm:$0xf]  ;;  %v1229_v28 = vld [vmem:[%s2365_s4 + $0x18] sm:$0xf0]  ;;  %v1363_v31 = vld [vmem:[%s2366_s5 + $0xe0] sm:$0xf] }
   0x7   :  { %1213 = vmatmul.msk.bf16.vlgmr.msra.gmra.mxu0 %vm95_vm3, %v86_v8  ;;  %1216 = vmatmul.msk.bf16.vlgmr.msra.gmra.mxu2 %vm95_vm3, %v89_v11  ;;  %v82_v19 = vsel %vm74_vm8, 0.0, %v66_v17  ;;  %v83_v20 = vsel %vm75_vm9, 0.0, %v67_v18  ;;  %v1224_v29 = vor.u32 %v1421_v24, %v1221_v26  ;;  %v1232_v30 = vor.u32 %v1422_v27, %v1229_v28  ;;  %v1419_v32 = vld [vmem:[%s2366_s5 + $0xec] sm:$0xf0]  ;;  %v1347_v34 = vld [vmem:[%s2366_s5 + $0xc0] sm:$0xf] }
   0x8   :  { %v88_v21 = vpack.c.bf16 %v83_v20, %v82_v19  ;;  %207 = vmatpush.bf16.msra.mxu1 %v1220_v25  ;;  %1426 = vmatpush.bf16.msra.mxu3 %v1220_v25  ;;  %v1613_v33 = vor.u32 %v1419_v32, %v1363_v31  ;;  %v1415_v35 = vld [vmem:[%s2366_s5 + $0xcc] sm:$0xf0]  ;;  %v1227_v36 = vld [vmem:[%s2365_s4 + $0x8] sm:$0xf]  ;;  %v1424_v37 = vld [vmem:[%s2365_s4 + $0x14] sm:$0xf0] }
   0x9   :  { %236 = vmatpush.bf16.msrb.mxu2 %v1224_v29  ;;  %294 = vmatpush.bf16.msrb.mxu0 %v1232_v30  ;;  %v1628_v38 = vor.u32 %v1415_v35, %v1347_v34  ;;  %v1228_v39 = vor.u32 %v1424_v37, %v1227_v36  ;;  %v1331_v40 = vld [vmem:[%s2366_s5 + $0xa0] sm:$0xf]  ;;  %v1411_v41 = vld [vmem:[%s2366_s5 + $0xac] sm:$0xf0]  ;;  %v1417_v47 = vld [vmem:[%s2366_s5 + $0xe4] sm:$0xf] }
   0xa   :  { %v1637_v42 = vor.u32 %v1411_v41, %v1331_v40  ;;  %v1315_v43 = vld [vmem:[%s2366_s5 + $0x80] sm:$0xf]  ;;  %v1407_v44 = vld [vmem:[%s2366_s5 + $0x8c] sm:$0xf0]  ;;  %v1365_v48 = vld [vmem:[%s2366_s5 + $0xf0] sm:$0xf0] }
   0xb   :  { %v1646_v45 = vor.u32 %v1407_v44, %v1315_v43  ;;  %v1655_v49 = vor.u32 %v1417_v47, %v1365_v48  ;;  %v1299_v50 = vld [vmem:[%s2366_s5 + $0x60] sm:$0xf]  ;;  %v1403_v51 = vld [vmem:[%s2366_s5 + $0x6c] sm:$0xf0]  ;;  %v1371_v57 = vld [vmem:[%s2366_s5 + $0xe8] sm:$0xf] }
   0xc   :  { %512 = vmatpush.bf16.msrb.mxu1 %v1613_v33  ;;  %265 = vmatpush.bf16.msrb.mxu3 %v1228_v39  ;;  %v1663_v52 = vor.u32 %v1403_v51, %v1299_v50  ;;  %v1668_v53 = vld [vmem:[%s2364_s3] ss:$0 sm:$0xff]  ;;  %v1399_v56 = vld [vmem:[%s2366_s5 + $0x4c] sm:$0xf0]  ;;  %v1420_v58 = vld [vmem:[%s2366_s5 + $0xf4] sm:$0xf0] }
   0xd   :  { %525 = vmatpush.bf16.msra.mxu2 %v1655_v49  ;;  %v1283_v55 = vld [vmem:[%s2366_s5 + $0x40] sm:$0xf]  ;;  %v1413_v60 = vld [vmem:[%s2366_s5 + $0xc4] sm:$0xf]  ;;  %v1690_v62 = vor.u32 %v1420_v58, %v1371_v57  ;;  %v1349_v63 = vld [vmem:[%s2366_s5 + $0xd0] sm:$0xf0] }
   0xe   :  { %v1685_v59 = vor.u32 %v1399_v56, %v1283_v55  ;;  %v1696_v1 = vor.u32 %v1413_v60, %v1349_v63  ;;  %v1267_v4 = vld [vmem:[%s2366_s5 + $0x20] sm:$0xf]  ;;  %v1395_v5 = vld [vmem:[%s2366_s5 + $0x2c] sm:$0xf0]  ;;  %v1355_v9 = vld [vmem:[%s2366_s5 + $0xc8] sm:$0xf] }
   0xf   :  { %625 = vmatpush.bf16.msra.mxu0 %v1690_v62  ;;  %v1707_v6 = vor.u32 %v1395_v5, %v1267_v4  ;;  %v1416_v10 = vld [vmem:[%s2366_s5 + $0xd4] sm:$0xf0]  ;;  %v1251_v11 = vld [vmem:[%s2366_s5] sm:$0xf]  ;;  %v1391_v13 = vld [vmem:[%s2366_s5 + $0xc] sm:$0xf0] }
  0x10   :  { %513 = vmatpush.bf16.msrb.mxu1 %v1628_v38  ;;  %v1418_v14 = vld [vmem:[%s2366_s5 + $0xec] sm:$0xf]  ;;  %v1373_v15 = vld [vmem:[%s2366_s5 + $0xf8] sm:$0xf0]  ;;  %v1735_v17 = vor.u32 %v1416_v10, %v1355_v9  ;;  %v1737_v18 = vor.u32 %v1391_v13, %v1251_v11  ;;  %v1409_v22 = vld [vmem:[%s2366_s5 + $0xa4] sm:$0xf] }
  0x11   :  { %526 = vmatpush.bf16.msra.mxu2 %v1696_v1  ;;  %v1739_v19 = vor.u32 %v1418_v14, %v1373_v15  ;;  %v1333_v23 = vld [vmem:[%s2366_s5 + $0xb0] sm:$0xf0]  ;;  %v1414_v24 = vld [vmem:[%s2366_s5 + $0xcc] sm:$0xf]  ;;  %v1357_v26 = vld [vmem:[%s2366_s5 + $0xd8] sm:$0xf0] }
  0x12   :  { %v1754_v25 = vor.u32 %v1409_v22, %v1333_v23  ;;  %v1761_v29 = vor.u32 %v1414_v24, %v1357_v26  ;;  %v1339_v32 = vld [vmem:[%s2366_s5 + $0xa8] sm:$0xf]  ;;  %v1412_v34 = vld [vmem:[%s2366_s5 + $0xb4] sm:$0xf0]  ;;  %v1405_v35 = vld [vmem:[%s2366_s5 + $0x84] sm:$0xf] }
  0x13   :  { %626 = vmatpush.bf16.msra.mxu0 %v1735_v17  ;;  %v1780_v36 = vor.u32 %v1412_v34, %v1339_v32  ;;  %v1317_v37 = vld [vmem:[%s2366_s5 + $0x90] sm:$0xf0]  ;;  %v1410_v39 = vld [vmem:[%s2366_s5 + $0xac] sm:$0xf]  ;;  %v1341_v40 = vld [vmem:[%s2366_s5 + $0xb8] sm:$0xf0] }
  0x14   :  { %514 = vmatpush.bf16.msrb.mxu1 %v1637_v42  ;;  %v1791_v43 = vor.u32 %v1405_v35, %v1317_v37  ;;  %v1793_v44 = vor.u32 %v1410_v39, %v1341_v40  ;;  %v1325_v47 = vld [vmem:[%s2366_s5 + $0x98] sm:$0xf0]  ;;  %v1323_v48 = vld [vmem:[%s2366_s5 + $0x88] sm:$0xf]  ;;  %v1401_v60 = vld [vmem:[%s2366_s5 + $0x64] sm:$0xf] }
  0x15   :  { %527 = vmatpush.bf16.msra.mxu2 %v1754_v25  ;;  %v1402_v63 = vld [vmem:[%s2366_s5 + $0x6c] sm:$0xf]  ;;  %v1397_v5 = vld [vmem:[%s2366_s5 + $0x44] sm:$0xf]  ;;  %v2371_v13 = vmov 0  }
  0x16   :  { %v1398_v9 = vld [vmem:[%s2366_s5 + $0x4c] sm:$0xf]  ;;  %1428 = vset.pattern.permute.xlu0 %v2371_v13  ;;  %1429 = vset.pattern.permute.xlu1 %v2371_v13  ;;  %v1277_v24 = vld [vmem:[%s2366_s5 + $0x38] sm:$0xf0]  ;;  %v1253_v32 = vld [vmem:[%s2366_s5 + $0x10] sm:$0xf0] }
  0x17   :  { %1214 = vmatmul.msk.bf16.gmra.mxu0 %vm95_vm3, %v87_v16  ;;  %1430 = vset.pattern.permute.xlu2 %v2371_v13  ;;  %v1394_v23 = vld [vmem:[%s2366_s5 + $0x2c] sm:$0xf]  ;;  %v1261_v37 = vld [vmem:[%s2366_s5 + $0x18] sm:$0xf0]  ;;  %v1291_v39 = vld [vmem:[%s2366_s5 + $0x48] sm:$0xf] }
  0x18   :  { %515 = vmatpush.bf16.msrb.mxu1 %v1646_v45  ;;  %627 = vmatpush.bf16.msra.mxu0 %v1780_v36  ;;  %v1390_v34 = vld [vmem:[%s2366_s5 + $0xc] sm:$0xf]  ;;  %v1400_v40 = vld [vmem:[%s2366_s5 + $0x54] sm:$0xf0] }
  0x19   :  { %528 = vmatpush.bf16.msra.mxu2 %v1791_v43 }
  0x1c   :  { %516 = vmatpush.bf16.msrb.mxu1 %v1663_v52 }
  0x20   :  { %517 = vmatpush.bf16.msrb.mxu1 %v1685_v59 }
  0x24   :  { %518 = vmatpush.bf16.msrb.mxu1 %v1707_v6 }
  0x27   :  { %1215 = vmatmul.msk.bf16.gmra.mxu0 %vm95_vm3, %v88_v21 }
  0x28   :  { %519 = vmatpush.bf16.msrb.mxu1 %v1737_v18 }
  0x84   :  { %v121_v46 = vpop.f32.mrf.mxu0 }
  0x85   :  { %v122_v54 = vadd.f32 %v1668_v53, %v121_v46  ;;  %v1406_v46 = vld [vmem:[%s2366_s5 + $0x8c] sm:$0xf] }
  0x86   :  { %v1811_v55 = vor.u32 %v1406_v46, %v1325_v47  ;;  %v1921_v46 = vor.u32 %v1400_v40, %v1291_v39 }
  0x87   :  { %v141_v2 = vmax.f32 %v122_v54, 0.0  ;;  %v1408_v54 = vld [vmem:[%s2366_s5 + $0x94] sm:$0xf0] }
  0x88   :  { %v1814_v57 = vor.u32 %v1408_v54, %v1323_v48  ;;  %v1259_v54 = vld [vmem:[%s2366_s5 + $0x8] sm:$0xf] }
  0x8a   :  { %v136_v61 = vpop.f32.mrf.mxu2  ;;  %628 = vmatpush.bf16.msra.mxu0 %v1814_v57 }
  0x8b   :  { %v137_v12 = vadd.f32 %v1668_v53, %v136_v61  ;;  %v1301_v61 = vld [vmem:[%s2366_s5 + $0x70] sm:$0xf0] }
  0x8c   :  { %v123_v0 = vpop.f32.mrf.mxu0 }
  0x8d   :  { %v124_v3 = vadd.f32 %v1668_v53, %v123_v0  ;;  %v147_v27 = vmax.f32 %v137_v12, 0.0  ;;  %v1833_v0 = vor.u32 %v1401_v60, %v1301_v61  ;;  %v1293_v12 = vld [vmem:[%s2366_s5 + $0x58] sm:$0xf0]  ;;  %v1392_v60 = vld [vmem:[%s2366_s5 + $0x14] sm:$0xf0]  ;;  %v1973_v61 = vld [vmem:[%s2367_s0] sm:$0xff] }
  0x8e   :  { %v1861_v14 = vor.u32 %v1398_v9, %v1293_v12  ;;  %vm586_vm11 = vcmp.le.s32.totalorder %v1973_v61, 0  ;;  %vm673_vm12 = vcmp.le.s32.totalorder %v1973_v61, 1  ;;  %vm1108_vm13 = vcmp.le.s32.totalorder %v1973_v61, 6 }
  0x8f   :  { %v142_v7 = vmax.f32 %v124_v3, 0.0  ;;  %529 = vmatpush.bf16.msra.mxu2 %v1833_v0  ;;  %vm760_vm0 = vcmp.le.s32.totalorder %v1973_v61, 2  ;;  %vm847_vm1 = vcmp.le.s32.totalorder %v1973_v61, 3  ;;  %vm1195_vm2 = vcmp.le.s32.totalorder %v1973_v61, 7 }
  0x90   :  { %vm934_vm5 = vcmp.le.s32.totalorder %v1973_v61, 4  ;;  %vm1021_vm6 = vcmp.le.s32.totalorder %v1973_v61, 5 }
  0x91   :  { %v1710_v8 = vpack.c.bf16 %v142_v7, %v141_v2  ;;  %v1309_v2 = vld [vmem:[%s2366_s5 + $0x78] sm:$0xf0]  ;;  %v1285_v7 = vld [vmem:[%s2366_s5 + $0x50] sm:$0xf0] }
  0x92   :  { %v138_v16 = vpop.f32.mrf.mxu2  ;;  %v1841_v4 = vor.u32 %v1402_v63, %v1309_v2  ;;  %v1854_v11 = vor.u32 %v1397_v5, %v1285_v7  ;;  %v587_v63 = vsel %vm586_vm11, 1, %v2371_v13  ;;  %v674_v2 = vsel %vm673_vm12, 1, %v2371_v13  ;;  %v157_v7 = vld [vmem:[%s2368_s6] sm:$0xf] }
  0x93   :  { %1233 = vmatmul.msk.bf16.vlgmr.msra.gmra.mxu1 %vm187_vm10, %v1710_v8  ;;  %1237 = vmatmul.msk.bf16.vlgmr.msrb.gmra.mxu2 %vm187_vm10, %v1710_v8  ;;  %v139_v20 = vadd.f32 %v1668_v53, %v138_v16  ;;  %v1307_v16 = vld [vmem:[%s2366_s5 + $0x68] sm:$0xf]  ;;  %v2037_v9 = vperm.slane %v157_v7, 0 }
  0x94   :  { %1245 = vmatmul.msk.bf16.vlgmr.msrb.gmra.mxu0 %vm187_vm10, %v1710_v8  ;;  %v126_v21 = vpop.f32.mrf.mxu0  ;;  %551 = vmatpush.bf16.msra.mxu1 %v1739_v19 }
  0x95   :  { %v148_v28 = vmax.f32 %v139_v20, 0.0  ;;  %v127_v31 = vadd.f32 %v1668_v53, %v126_v21  ;;  %530 = vmatpush.bf16.msra.mxu2 %v1854_v11  ;;  %v1404_v20 = vld [vmem:[%s2366_s5 + $0x74] sm:$0xf0]  ;;  %v1393_v21 = vld [vmem:[%s2366_s5 + $0x24] sm:$0xf]  ;;  %589 = vperm.xlu0 %1428, %v587_v63  }
  0x96   :  { %v1879_v22 = vor.u32 %v1404_v20, %v1307_v16 }
  0x97   :  { %v1764_v30 = vpack.c.bf16 %v148_v28, %v147_v27  ;;  %v143_v50 = vmax.f32 %v127_v31, 0.0  ;;  %v1892_v28 = vor.u32 %v1394_v23, %v1277_v24  ;;  %v1389_v31 = vld [vmem:[%s2366_s5 + $0x4] sm:$0xf] }
  0x98   :  { %552 = vmatpush.bf16.msra.mxu1 %v1761_v29  ;;  %629 = vmatpush.bf16.msra.mxu0 %v1879_v22 }
  0x99   :  { %1236 = vmatmul.msk.bf16.vlgmr.msra.gmra.mxu3 %vm187_vm10, %v1764_v30 }
  0x9a   :  { %538 = vmatpush.bf16.msra.mxu3 %v1690_v62 }
  0x9c   :  { %v128_v41 = vpop.f32.mrf.mxu0  ;;  %553 = vmatpush.bf16.msra.mxu1 %v1793_v44  ;;  %630 = vmatpush.bf16.msra.mxu0 %v1921_v46 }
  0x9d   :  { %v129_v51 = vadd.f32 %v1668_v53, %v128_v41  ;;  %v1919_v41 = vor.u32 %v1390_v34, %v1261_v37  ;;  %676 = vperm.xlu0 %1428, %v674_v2  }
  0x9e   :  { %539 = vmatpush.bf16.msra.mxu3 %v1735_v17 }
  0x9f   :  { %v144_v56 = vmax.f32 %v129_v51, 0.0  ;;  %v1396_v51 = vld [vmem:[%s2366_s5 + $0x34] sm:$0xf0] }
  0xa0   :  { %554 = vmatpush.bf16.msra.mxu1 %v1811_v55 }
  0xa1   :  { %v1816_v58 = vpack.c.bf16 %v144_v56, %v143_v50  ;;  %v1275_v50 = vld [vmem:[%s2366_s5 + $0x28] sm:$0xf] }
  0xa2   :  { %540 = vmatpush.bf16.msra.mxu3 %v1780_v36  ;;  %v1943_v56 = vor.u32 %v1396_v51, %v1275_v50 }
  0xa3   :  { %1234 = vmatmul.msk.bf16.gmra.mxu1 %vm187_vm10, %v1816_v58  ;;  %1238 = vmatmul.msk.bf16.gmra.mxu2 %vm187_vm10, %v1816_v58 }
  0xa4   :  { %1246 = vmatmul.msk.bf16.gmra.mxu0 %vm187_vm10, %v1816_v58  ;;  %v131_v3 = vpop.f32.mrf.mxu0  ;;  %555 = vmatpush.bf16.msra.mxu1 %v1841_v4 }
  0xa5   :  { %v132_v10 = vadd.f32 %v1668_v53, %v131_v3  ;;  %631 = vmatpush.bf16.msra.mxu0 %v1943_v56 }
  0xa6   :  { %541 = vmatpush.bf16.msra.mxu3 %v1814_v57 }
  0xa7   :  { %v145_v15 = vmax.f32 %v132_v10, 0.0  ;;  %v2039_v10 = vperm.slane %v157_v7, 3 }
  0xa8   :  { %556 = vmatpush.bf16.msra.mxu1 %v1861_v14 }
  0xa9   :  { %1241 = vmatmul.msk.bf16.vlgmr.msrb.gmra.mxu3 %vm187_vm10, %v1710_v8  ;;  %v1269_v8 = vld [vmem:[%s2366_s5 + $0x30] sm:$0xf0] }
  0xaa   :  { %v1890_v27 = vor.u32 %v1393_v21, %v1269_v8  ;;  %542 = vmatpush.bf16.msra.mxu3 %v1879_v22  ;;  %v160_v8 = vperm.slane %v157_v7, 1 }
  0xac   :  { %v133_v26 = vpop.f32.mrf.mxu0  ;;  %531 = vmatpush.bf16.msra.mxu2 %v1890_v27  ;;  %557 = vmatpush.bf16.msra.mxu1 %v1892_v28 }
  0xad   :  { %v134_v35 = vadd.f32 %v1668_v53, %v133_v26  ;;  %v1917_v53 = vor.u32 %v1389_v31, %v1253_v32 }
  0xae   :  { %543 = vmatpush.bf16.msra.mxu3 %v1921_v46 }
  0xaf   :  { %v146_v47 = vmax.f32 %v134_v35, 0.0 }
  0xb0   :  { %532 = vmatpush.bf16.msra.mxu2 %v1917_v53  ;;  %558 = vmatpush.bf16.msra.mxu1 %v1919_v41 }
  0xb1   :  { %v151_v48 = vpack.c.bf16 %v146_v47, %v145_v15 }
  0xb2   :  { %544 = vmatpush.bf16.msra.mxu3 %v1943_v56 }
  0xb3   :  { %1235 = vmatmul.msk.bf16.gmra.mxu1 %vm187_vm10, %v151_v48  ;;  %1239 = vmatmul.msk.bf16.gmra.mxu2 %vm187_vm10, %v151_v48 }
  0xb4   :  { %1247 = vmatmul.msk.bf16.gmra.mxu0 %vm187_vm10, %v151_v48  ;;  %599 = vmatpush.bf16.msrb.mxu2 %v1613_v33 }
  0xb8   :  { %600 = vmatpush.bf16.msrb.mxu2 %v1628_v38 }
  0xb9   :  { %1242 = vmatmul.msk.bf16.gmra.mxu3 %vm187_vm10, %v1816_v58  ;;  %v1950_v58 = vor.u32 %v1392_v60, %v1259_v54 }
  0xbb   :  { %545 = vmatpush.bf16.msra.mxu3 %v1950_v58  ;;  %632 = vmatpush.bf16.msra.mxu0 %v1950_v58 }
  0xbc   :  { %601 = vmatpush.bf16.msrb.mxu2 %v1637_v42 }
  0xbf   :  { %612 = vmatpush.bf16.msrb.mxu3 %v1655_v49  ;;  %712 = vmatpush.bf16.msrb.mxu0 %v1690_v62 }
  0xc0   :  { %602 = vmatpush.bf16.msrb.mxu2 %v1646_v45 }
  0xc3   :  { %1240 = vmatmul.msk.bf16.gmra.mxu2 %vm187_vm10, %v1764_v30  ;;  %520 = vmatmul.bf16.vlgmr.msrb.gmra.mxu1 %v2371_v13 }
  0xc4   :  { %1248 = vmatmul.msk.bf16.gmra.mxu0 %vm187_vm10, %v1764_v30  ;;  %638 = vmatpush.bf16.msrb.mxu1 %v1739_v19 }
  0xc5   :  { %603 = vmatpush.bf16.msrb.mxu2 %v1663_v52  ;;  %613 = vmatpush.bf16.msrb.mxu3 %v1696_v1 }
  0xc6   :  { %713 = vmatpush.bf16.msrb.mxu0 %v1735_v17 }
  0xc8   :  { %639 = vmatpush.bf16.msrb.mxu1 %v1761_v29 }
  0xc9   :  { %604 = vmatpush.bf16.msrb.mxu2 %v1685_v59  ;;  %1243 = vmatmul.msk.bf16.gmra.mxu3 %vm187_vm10, %v151_v48 }
  0xca   :  { %714 = vmatpush.bf16.msrb.mxu0 %v1780_v36  ;;  %614 = vmatpush.bf16.msrb.mxu3 %v1754_v25 }
  0xcc   :  { %640 = vmatpush.bf16.msrb.mxu1 %v1793_v44 }
  0xcd   :  { %605 = vmatpush.bf16.msrb.mxu2 %v1707_v6 }
  0xce   :  { %715 = vmatpush.bf16.msrb.mxu0 %v1814_v57  ;;  %615 = vmatpush.bf16.msrb.mxu3 %v1791_v43 }
  0xd0   :  { %641 = vmatpush.bf16.msrb.mxu1 %v1811_v55 }
  0xd1   :  { %606 = vmatpush.bf16.msrb.mxu2 %v1737_v18 }
  0xd2   :  { %716 = vmatpush.bf16.msrb.mxu0 %v1879_v22  ;;  %616 = vmatpush.bf16.msrb.mxu3 %v1833_v0 }
  0xd3   :  { %533 = vmatmul.bf16.vlgmr.msra.gmra.mxu2 %v2371_v13  ;;  %559 = vmatmul.bf16.vlgmr.msra.gmra.mxu1 %v2371_v13 }
  0xd4   :  { %642 = vmatpush.bf16.msrb.mxu1 %v1841_v4 }
  0xd5   :  { %686 = vmatpush.bf16.msra.mxu2 %v1613_v33 }
  0xd6   :  { %717 = vmatpush.bf16.msrb.mxu0 %v1921_v46  ;;  %617 = vmatpush.bf16.msrb.mxu3 %v1854_v11 }
  0xd8   :  { %643 = vmatpush.bf16.msrb.mxu1 %v1861_v14 }
  0xd9   :  { %687 = vmatpush.bf16.msra.mxu2 %v1628_v38  ;;  %1244 = vmatmul.msk.bf16.gmra.mxu3 %vm187_vm10, %v1764_v30  ;;  %v1109_v30 = vsel %vm1108_vm13, 1, %v2371_v13 }
  0xda   :  { %718 = vmatpush.bf16.msrb.mxu0 %v1943_v56  ;;  %618 = vmatpush.bf16.msrb.mxu3 %v1890_v27 }
  0xdb   :  { %1111 = vperm.xlu0 %1428, %v1109_v30  }
  0xdc   :  { %644 = vmatpush.bf16.msrb.mxu1 %v1892_v28 }
  0xdd   :  { %688 = vmatpush.bf16.msra.mxu2 %v1637_v42 }
  0xde   :  { %719 = vmatpush.bf16.msrb.mxu0 %v1950_v58  ;;  %619 = vmatpush.bf16.msrb.mxu3 %v1917_v53 }
  0xe0   :  { %645 = vmatpush.bf16.msrb.mxu1 %v1919_v41 }
  0xe1   :  { %689 = vmatpush.bf16.msra.mxu2 %v1646_v45 }
  0xe4   :  { %725 = vmatpush.bf16.msra.mxu1 %v1739_v19 }
  0xe5   :  { %690 = vmatpush.bf16.msra.mxu2 %v1663_v52 }
  0xe8   :  { %726 = vmatpush.bf16.msra.mxu1 %v1761_v29 }
  0xe9   :  { %691 = vmatpush.bf16.msra.mxu2 %v1685_v59  ;;  %546 = vmatmul.bf16.vlgmr.msra.gmra.mxu3 %v2371_v13 }
  0xea   :  { %699 = vmatpush.bf16.msra.mxu3 %v1655_v49 }
  0xec   :  { %727 = vmatpush.bf16.msra.mxu1 %v1793_v44 }
  0xed   :  { %692 = vmatpush.bf16.msra.mxu2 %v1707_v6 }
  0xee   :  { %700 = vmatpush.bf16.msra.mxu3 %v1696_v1 }
  0xf0   :  { %728 = vmatpush.bf16.msra.mxu1 %v1811_v55 }
  0xf1   :  { %693 = vmatpush.bf16.msra.mxu2 %v1737_v18 }
  0xf2   :  { %701 = vmatpush.bf16.msra.mxu3 %v1754_v25 }
  0xf4   :  { %729 = vmatpush.bf16.msra.mxu1 %v1841_v4 }
  0xf6   :  { %702 = vmatpush.bf16.msra.mxu3 %v1791_v43 }
  0xf8   :  { %730 = vmatpush.bf16.msra.mxu1 %v1861_v14 }
  0xfa   :  { %703 = vmatpush.bf16.msra.mxu3 %v1833_v0 }
  0xfc   :  { %731 = vmatpush.bf16.msra.mxu1 %v1892_v28 }
  0xfe   :  { %704 = vmatpush.bf16.msra.mxu3 %v1854_v11 }
 0x100   :  { %732 = vmatpush.bf16.msra.mxu1 %v1919_v41 }
 0x102   :  { %705 = vmatpush.bf16.msra.mxu3 %v1890_v27 }
 0x106   :  { %706 = vmatpush.bf16.msra.mxu3 %v1917_v53 }
 0x110   :  { %v2030_v3 = vpop.f32.mrf.mxu1 }
 0x111   :  { %v2032_v5 = vpop.f32.mrf.mxu0 }
 0x116   :  { %v238_v12 = vpop.f32.mrf.mxu2 }
 0x118   :  { %v211_v15 = vpop.f32.mrf.mxu1 }
 0x119   :  { %v2042_v16 = vadd.f32 %v211_v15, %v2037_v9  ;;  %v298_v20 = vpop.f32.mrf.mxu0 }
 0x11a   :  { %v2045_v21 = vadd.f32 %v298_v20, %v2039_v10 }
 0x11c   :  { %v224_v23 = vpop.f32.mrf.mxu3 }
 0x11d   :  { %v2048_v24 = vadd.f32 %v224_v23, %v2037_v9 }
 0x11e   :  { %v240_v26 = vpop.f32.mrf.mxu2 }
 0x11f   :  { %2373 = vst [vmem:[#allocation3_spill] sm:$0xff] %v2048_v24  ;;  %v2050_v31 = vadd.f32 %v240_v26, %v160_v8  ;;  %v161_v26 = vperm.slane %v157_v7, 2 }
 0x120   :  { %v214_v32 = vpop.f32.mrf.mxu1 }
 0x121   :  { %v2053_v34 = vadd.f32 %v214_v32, %v2037_v9  ;;  %v301_v35 = vpop.f32.mrf.mxu0 }
 0x122   :  { %v2056_v37 = vadd.f32 %v301_v35, %v2039_v10 }
 0x124   :  { %2374 = vst [vmem:[#allocation4_spill] sm:$0xff] %v2056_v37  ;;  %v2058_v39 = vpop.f32.mrf.mxu3 }
 0x125   :  { %2375 = vst [vmem:[#allocation5_spill] sm:$0xff] %v2058_v39 }
 0x126   :  { %v243_v40 = vpop.f32.mrf.mxu2 }
 0x127   :  { %v2060_v47 = vadd.f32 %v243_v40, %v160_v8 }
 0x128   :  { %v216_v48 = vpop.f32.mrf.mxu1 }
 0x129   :  { %v2063_v50 = vadd.f32 %v216_v48, %v2037_v9  ;;  %v303_v51 = vpop.f32.mrf.mxu0 }
 0x12a   :  { %v2066_v54 = vadd.f32 %v303_v51, %v2039_v10 }
 0x12b   :  { %2376 = vst [vmem:[#allocation6_spill] sm:$0xff] %v2063_v50 }
 0x12c   :  { %2377 = vst [vmem:[#allocation7_spill] sm:$0xff] %v2066_v54  ;;  %v267_v60 = vpop.f32.mrf.mxu3 }
 0x12e   :  { %v245_v63 = vpop.f32.mrf.mxu2 }
 0x12f   :  { %v2068_v2 = vadd.f32 %v245_v63, %v160_v8 }
 0x130   :  { %v219_v30 = vpop.f32.mrf.mxu1 }
 0x131   :  { %2378 = vst [vmem:[#allocation8_spill] sm:$0xff] %v2068_v2  ;;  %v2071_v15 = vadd.f32 %v219_v30, %v2037_v9  ;;  %v306_v20 = vpop.f32.mrf.mxu0 }
 0x132   :  { %v2074_v23 = vadd.f32 %v306_v20, %v2039_v10 }
 0x133   :  { %2379 = vst [vmem:[#allocation9_spill] sm:$0xff] %v2071_v15 }
 0x134   :  { %2380 = vst [vmem:[#allocation10_spill] sm:$0xff] %v2074_v23  ;;  %v269_v32 = vpop.f32.mrf.mxu3 }
 0x135   :  { %v2076_v35 = vadd.f32 %v269_v32, %v161_v26 }
 0x136   :  { %v248_v40 = vpop.f32.mrf.mxu2 }
 0x137   :  { %v2078_v48 = vadd.f32 %v248_v40, %v160_v8 }
 0x138   :  { %v221_v51 = vpop.f32.mrf.mxu1 }
 0x139   :  { %2381 = vst [vmem:[#allocation11_spill] sm:$0xff] %v2078_v48  ;;  %v2081_v13 = vadd.f32 %v221_v51, %v2037_v9  ;;  %v308_v63 = vpop.f32.mrf.mxu0 }
 0x13a   :  { %v2084_v39 = vadd.f32 %v308_v63, %v2039_v10 }
 0x13b   :  { %2382 = vst [vmem:[#allocation12_spill] sm:$0xff] %v2081_v13 }
 0x13c   :  { %2383 = vst [vmem:[#allocation13_spill] sm:$0xff] %v2084_v39  ;;  %v272_v30 = vpop.f32.mrf.mxu3 }
 0x13d   :  { %v2086_v24 = vadd.f32 %v272_v30, %v161_v26 }
 0x13e   :  { %v250_v20 = vpop.f32.mrf.mxu2 }
 0x13f   :  { %2384 = vst [vmem:[#allocation14_spill] sm:$0xff] %v2086_v24  ;;  %v2088_v23 = vadd.f32 %v250_v20, %v160_v8 }
 0x140   :  { %v521_v7 = vpop.f32.mrf.mxu1 }
 0x141   :  { %2385 = vst [vmem:[#allocation15_spill] sm:$0xff] %v2088_v23  ;;  %v311_v32 = vpop.f32.mrf.mxu0 }
 0x142   :  { %v2091_v15 = vadd.f32 %v311_v32, %v2039_v10 }
 0x144   :  { %2386 = vst [vmem:[#allocation16_spill] sm:$0xff] %v2091_v15  ;;  %v274_v40 = vpop.f32.mrf.mxu3  ;;  %v239_v15 = vadd.f32 %v238_v12, %v160_v8 }
 0x145   :  { %v2093_v48 = vadd.f32 %v274_v40, %v161_v26  ;;  %v210_v40 = vadd.f32 %v2030_v3, %v2037_v9 }
 0x146   :  { %v253_v51 = vpop.f32.mrf.mxu2 }
 0x147   :  { %2387 = vst [vmem:[#allocation17_spill] sm:$0xff] %v2093_v48  ;;  %v2095_v13 = vadd.f32 %v253_v51, %v160_v8 }
 0x148   :  { %v523_v54 = vpop.f32.mrf.mxu1 }
 0x149   :  { %2388 = vst [vmem:[#allocation18_spill] sm:$0xff] %v2095_v13 }
 0x14c   :  { %v277_v63 = vpop.f32.mrf.mxu3 }
 0x14d   :  { %v2097_v39 = vadd.f32 %v277_v63, %v161_v26  ;;  %v564_v63 = vadd.f32 %v521_v7, %v210_v40 }
 0x14e   :  { %v255_v30 = vpop.f32.mrf.mxu2 }
 0x14f   :  { %2389 = vst [vmem:[#allocation19_spill] sm:$0xff] %v2097_v39  ;;  %v2099_v2 = vadd.f32 %v255_v30, %v160_v8  ;;  %v568_v48 = vmul.f32 0.5, %v564_v63 }
 0x150   :  { %v560_v20 = vpop.f32.mrf.mxu1 }
 0x151   :  { %2390 = vst [vmem:[#allocation20_spill] sm:$0xff] %v2099_v2 }
 0x154   :  { %v279_v23 = vpop.f32.mrf.mxu3 }
 0x155   :  { %v2101_v50 = vadd.f32 %v279_v23, %v161_v26  ;;  %v297_v23 = vadd.f32 %v2032_v5, %v2039_v10 }
 0x156   :  { %v534_v37 = vpop.f32.mrf.mxu2 }
 0x157   :  { %2391 = vst [vmem:[#allocation21_spill] sm:$0xff] %v2101_v50  ;;  %v565_v51 = vadd.f32 %v534_v37, %v239_v15  ;;  %v567_v12 = vadd.f32 %v560_v20, %v297_v23 }
 0x158   :  { %v562_v32 = vpop.f32.mrf.mxu1 }
 0x159   :  { %v572_v39 = vmul.f32 0.5, %v565_v51  ;;  %v268_v32 = vadd.f32 %v267_v60, %v161_v26 }
 0x15b   :  { %1432 = vtanh.f32 %v572_v39 }
 0x15c   :  { %v282_v24 = vpop.f32.mrf.mxu3  ;;  %1434 = vtanh.f32 %v568_v48 }
 0x15d   :  { %v2105_v13 = vadd.f32 %v282_v24, %v161_v26  ;;  %v577_v24 = vmul.f32 0.5, %v567_v12 }
 0x15e   :  { %v536_v54 = vpop.f32.mrf.mxu2 }
 0x161   :  { %v1433_v8 = vpop.eup %1432 }
 0x162   :  { %v1435_v3 = vpop.eup %1434  ;;  %v574_v15 = vadd.f32 1.0, %v1433_v8 }
 0x163   :  { %v570_v7 = vadd.f32 1.0, %v1435_v3  ;;  %v2147_v3 = vpop.f32.mrf.mxu0 }
 0x164   :  { %v284_v30 = vpop.f32.mrf.mxu3  ;;  %v575_v40 = vmul.f32 0.5, %v574_v15 }
 0x165   :  { %v2107_v2 = vadd.f32 %v284_v30, %v161_v26  ;;  %v571_v51 = vmul.f32 0.5, %v570_v7  ;;  %v590_v30 = vpop.permute.xlu0 %589 }
 0x166   :  { %v581_v63 = vmul.f32 0.0, %v575_v40  ;;  %vm591_vm14 = vcmp.eq.s32.totalorder %v590_v30, 1  ;;  %v2392_v30 = vmov 0  }
 0x167   :  { %vm1377_vm15 = vmpackc.low %vm591_vm14, %vm591_vm14 }
 0x16c   :  { %v547_v50 = vpop.f32.mrf.mxu3 }
 0x16d   :  { %v566_v37 = vadd.f32 %v547_v50, %v268_v32 }
 0x16f   :  { %1436 = vtanh.f32 %v566_v37 }
 0x170   :  { %1438 = vtanh.f32 %v577_v24 }
 0x174   :  { %v549_v39 = vpop.f32.mrf.mxu3 }
 0x175   :  { %v1437_v54 = vpop.eup %1436 }
 0x176   :  { %v582_v48 = vmul.f32 %v1437_v54, %v571_v51  ;;  %v1439_v5 = vpop.eup %1438 }
 0x177   :  { %v579_v26 = vadd.f32 1.0, %v1439_v5  ;;  %v761_v5 = vsel %vm760_vm0, 1, %v2392_v30 }
 0x178   :  { %v583_v20 = vadd.f32 %v582_v48, %v581_v63  ;;  %763 = vperm.xlu1 %1429, %v761_v5  }
 0x179   :  { %v580_v50 = vmul.f32 0.5, %v579_v26 }
 0x17a   :  { %1440 = vtanh.f32 %v583_v20  ;;  %v2111_v60 = vsel %vm591_vm14, %v583_v20, 0.0 }
 0x180   :  { %v1441_v23 = vpop.eup %1440 }
 0x181   :  { %v585_v12 = vmul.f32 %v1441_v23, %v580_v50  ;;  %v848_v23 = vsel %vm847_vm1, 1, %v2392_v30 }
 0x182   :  { %850 = vperm.xlu1 %1429, %v848_v23  }
 0x183   :  { %v1378_v8 = vpack.c.bf16 %v585_v12, %v585_v12  ;;  %v2113_v32 = vsel %vm591_vm14, %v585_v12, 0.0 }
 0x185   :  { %1379 = vmatmul.msk.bf16.vlgmr.msrb.gmra.mxu2 %vm1377_vm15, %v1378_v8  ;;  %1382 = vmatmul.msk.bf16.vlgmr.msrb.gmra.mxu3 %vm1377_vm15, %v1378_v8 }
 0x186   :  { %1385 = vmatmul.msk.bf16.vlgmr.msra.gmra.mxu0 %vm1377_vm15, %v1378_v8  ;;  %1388 = vmatmul.msk.bf16.vlgmr.msrb.gmra.mxu1 %vm1377_vm15, %v1378_v8 }
 0x187   :  { %773 = vmatpush.bf16.msrb.mxu2 %v1613_v33  ;;  %786 = vmatpush.bf16.msrb.mxu3 %v1655_v49 }
 0x188   :  { %799 = vmatpush.bf16.msra.mxu0 %v1690_v62  ;;  %812 = vmatpush.bf16.msrb.mxu1 %v1739_v19 }
 0x18b   :  { %774 = vmatpush.bf16.msrb.mxu2 %v1628_v38  ;;  %787 = vmatpush.bf16.msrb.mxu3 %v1696_v1 }
 0x18c   :  { %800 = vmatpush.bf16.msra.mxu0 %v1735_v17  ;;  %813 = vmatpush.bf16.msrb.mxu1 %v1761_v29 }
 0x18f   :  { %775 = vmatpush.bf16.msrb.mxu2 %v1637_v42  ;;  %788 = vmatpush.bf16.msrb.mxu3 %v1754_v25 }
 0x190   :  { %801 = vmatpush.bf16.msra.mxu0 %v1780_v36  ;;  %814 = vmatpush.bf16.msrb.mxu1 %v1793_v44 }
 0x193   :  { %776 = vmatpush.bf16.msrb.mxu2 %v1646_v45  ;;  %789 = vmatpush.bf16.msrb.mxu3 %v1791_v43 }
 0x194   :  { %802 = vmatpush.bf16.msra.mxu0 %v1814_v57  ;;  %815 = vmatpush.bf16.msrb.mxu1 %v1811_v55 }
 0x197   :  { %777 = vmatpush.bf16.msrb.mxu2 %v1663_v52  ;;  %790 = vmatpush.bf16.msrb.mxu3 %v1833_v0 }
 0x198   :  { %803 = vmatpush.bf16.msra.mxu0 %v1879_v22  ;;  %816 = vmatpush.bf16.msrb.mxu1 %v1841_v4 }
 0x19b   :  { %778 = vmatpush.bf16.msrb.mxu2 %v1685_v59  ;;  %791 = vmatpush.bf16.msrb.mxu3 %v1854_v11 }
 0x19c   :  { %804 = vmatpush.bf16.msra.mxu0 %v1921_v46  ;;  %817 = vmatpush.bf16.msrb.mxu1 %v1861_v14 }
 0x19f   :  { %779 = vmatpush.bf16.msrb.mxu2 %v1707_v6  ;;  %792 = vmatpush.bf16.msrb.mxu3 %v1890_v27 }
 0x1a0   :  { %805 = vmatpush.bf16.msra.mxu0 %v1943_v56  ;;  %818 = vmatpush.bf16.msrb.mxu1 %v1892_v28 }
 0x1a3   :  { %780 = vmatpush.bf16.msrb.mxu2 %v1737_v18  ;;  %793 = vmatpush.bf16.msrb.mxu3 %v1917_v53 }
 0x1a4   :  { %806 = vmatpush.bf16.msra.mxu0 %v1950_v58  ;;  %819 = vmatpush.bf16.msrb.mxu1 %v1919_v41 }
 0x203   :  { %v634_v37 = vpop.f32.mrf.mxu0  ;;  %v647_v24 = vpop.f32.mrf.mxu1 }
 0x204   :  { %v653_v20 = vadd.f32 %v634_v37, %v2076_v35  ;;  %v654_v26 = vadd.f32 %v647_v24, %v2045_v21 }
 0x208   :  { %v608_v15 = vpop.f32.mrf.mxu2  ;;  %v621_v7 = vpop.f32.mrf.mxu3 }
 0x209   :  { %v651_v40 = vadd.f32 %v608_v15, %v2042_v16  ;;  %v652_v51 = vadd.f32 %v621_v7, %v2050_v31  ;;  %v664_v31 = vmul.f32 0.5, %v654_v26 }
 0x20b   :  { %v655_v39 = vmul.f32 0.5, %v651_v40  ;;  %v659_v54 = vmul.f32 0.5, %v652_v51  ;;  %v636_v63 = vpop.f32.mrf.mxu0  ;;  %v649_v48 = vpop.f32.mrf.mxu1  ;;  %v1196_v51 = vsel %vm1195_vm2, 1, %v2392_v30 }
 0x20c   :  { %1198 = vperm.xlu1 %1429, %v1196_v51   ;;  %v2394_v51 = vld [vmem:[#allocation4_spill] sm:$0xff] }
 0x20d   :  { %1442 = vtanh.f32 %v655_v39 }
 0x20e   :  { %1444 = vtanh.f32 %v659_v54  ;;  %v677_v54 = vpop.permute.xlu0 %676 }
 0x20f   :  { %1446 = vtanh.f32 %v653_v20  ;;  %vm678_vm3 = vcmp.eq.s32.totalorder %v677_v54, 1 }
 0x210   :  { %v610_v16 = vpop.f32.mrf.mxu2  ;;  %v623_v50 = vpop.f32.mrf.mxu3  ;;  %1448 = vtanh.f32 %v664_v31 }
 0x213   :  { %v1443_v12 = vpop.eup %1442 }
 0x214   :  { %v1445_v8 = vpop.eup %1444  ;;  %v657_v15 = vadd.f32 1.0, %v1443_v12 }
 0x215   :  { %v661_v7 = vadd.f32 1.0, %v1445_v8  ;;  %v1447_v21 = vpop.eup %1446 }
 0x216   :  { %v658_v40 = vmul.f32 0.5, %v657_v15  ;;  %v1449_v39 = vpop.eup %1448 }
 0x217   :  { %v662_v35 = vmul.f32 0.5, %v661_v7  ;;  %v666_v5 = vadd.f32 1.0, %v1449_v39 }
 0x218   :  { %v669_v37 = vmul.f32 %v1447_v21, %v658_v40 }
 0x219   :  { %v668_v24 = vmul.f32 %v662_v35, %v2111_v60  ;;  %v667_v20 = vmul.f32 0.5, %v666_v5 }
 0x21b   :  { %v670_v63 = vadd.f32 %v669_v37, %v668_v24  ;;  %v2393_v37 = vld [vmem:[#allocation14_spill] sm:$0xff] }
 0x21d   :  { %1450 = vtanh.f32 %v670_v63  ;;  %v2161_v48 = vsel %vm678_vm3, %v670_v63, %v2111_v60 }
 0x223   :  { %v1451_v26 = vpop.eup %1450 }
 0x224   :  { %v672_v16 = vmul.f32 %v1451_v26, %v667_v20 }
 0x226   :  { %v2164_v50 = vsel %vm678_vm3, %v672_v16, %v2113_v32 }
 0x227   :  { %v685_v31 = vpack.c.bf16 %v2164_v50, %v2164_v50 }
 0x229   :  { %694 = vmatmul.bf16.vlgmr.msra.gmra.mxu2 %v685_v31  ;;  %707 = vmatmul.bf16.vlgmr.msra.gmra.mxu3 %v685_v31 }
 0x22a   :  { %720 = vmatmul.bf16.vlgmr.msrb.gmra.mxu0 %v685_v31  ;;  %733 = vmatmul.bf16.vlgmr.msra.gmra.mxu1 %v685_v31 }
 0x22b   :  { %860 = vmatpush.bf16.msra.mxu2 %v1613_v33  ;;  %873 = vmatpush.bf16.msra.mxu3 %v1655_v49 }
 0x22c   :  { %886 = vmatpush.bf16.msrb.mxu0 %v1690_v62  ;;  %899 = vmatpush.bf16.msra.mxu1 %v1739_v19 }
 0x22f   :  { %861 = vmatpush.bf16.msra.mxu2 %v1628_v38  ;;  %874 = vmatpush.bf16.msra.mxu3 %v1696_v1 }
 0x230   :  { %887 = vmatpush.bf16.msrb.mxu0 %v1735_v17  ;;  %900 = vmatpush.bf16.msra.mxu1 %v1761_v29 }
 0x233   :  { %862 = vmatpush.bf16.msra.mxu2 %v1637_v42  ;;  %875 = vmatpush.bf16.msra.mxu3 %v1754_v25 }
 0x234   :  { %888 = vmatpush.bf16.msrb.mxu0 %v1780_v36  ;;  %901 = vmatpush.bf16.msra.mxu1 %v1793_v44 }
 0x237   :  { %863 = vmatpush.bf16.msra.mxu2 %v1646_v45  ;;  %876 = vmatpush.bf16.msra.mxu3 %v1791_v43 }
 0x238   :  { %889 = vmatpush.bf16.msrb.mxu0 %v1814_v57  ;;  %902 = vmatpush.bf16.msra.mxu1 %v1811_v55 }
 0x23b   :  { %864 = vmatpush.bf16.msra.mxu2 %v1663_v52  ;;  %877 = vmatpush.bf16.msra.mxu3 %v1833_v0 }
 0x23c   :  { %890 = vmatpush.bf16.msrb.mxu0 %v1879_v22  ;;  %903 = vmatpush.bf16.msra.mxu1 %v1841_v4 }
 0x23f   :  { %865 = vmatpush.bf16.msra.mxu2 %v1685_v59  ;;  %878 = vmatpush.bf16.msra.mxu3 %v1854_v11 }
 0x240   :  { %891 = vmatpush.bf16.msrb.mxu0 %v1921_v46  ;;  %904 = vmatpush.bf16.msra.mxu1 %v1861_v14 }
 0x243   :  { %866 = vmatpush.bf16.msra.mxu2 %v1707_v6  ;;  %879 = vmatpush.bf16.msra.mxu3 %v1890_v27 }
 0x244   :  { %892 = vmatpush.bf16.msrb.mxu0 %v1943_v56  ;;  %905 = vmatpush.bf16.msra.mxu1 %v1892_v28 }
 0x247   :  { %867 = vmatpush.bf16.msra.mxu2 %v1737_v18  ;;  %880 = vmatpush.bf16.msra.mxu3 %v1917_v53 }
 0x248   :  { %893 = vmatpush.bf16.msrb.mxu0 %v1950_v58  ;;  %906 = vmatpush.bf16.msra.mxu1 %v1919_v41 }
 0x2a7   :  { %v721_v60 = vpop.f32.mrf.mxu0  ;;  %v734_v32 = vpop.f32.mrf.mxu1 }
 0x2a8   :  { %v740_v24 = vadd.f32 %v721_v60, %v2393_v37  ;;  %v741_v39 = vadd.f32 %v734_v32, %v2394_v51 }
 0x2aa   :  { %v751_v5 = vmul.f32 0.5, %v741_v39 }
 0x2ac   :  { %v695_v23 = vpop.f32.mrf.mxu2  ;;  %v708_v12 = vpop.f32.mrf.mxu3 }
 0x2ad   :  { %v738_v8 = vadd.f32 %v695_v23, %v2053_v34  ;;  %v739_v15 = vadd.f32 %v708_v12, %v2060_v47 }
 0x2af   :  { %v742_v7 = vmul.f32 0.5, %v738_v8  ;;  %v746_v40 = vmul.f32 0.5, %v739_v15  ;;  %v723_v21 = vpop.f32.mrf.mxu0  ;;  %v736_v35 = vpop.f32.mrf.mxu1 }
 0x2b0   :  { %v764_v8 = vpop.permute.xlu1 %763 }
 0x2b1   :  { %1452 = vtanh.f32 %v742_v7  ;;  %vm765_vm4 = vcmp.eq.s32.totalorder %v764_v8, 1 }
 0x2b2   :  { %1454 = vtanh.f32 %v746_v40 }
 0x2b3   :  { %1456 = vtanh.f32 %v740_v24 }
 0x2b4   :  { %v697_v54 = vpop.f32.mrf.mxu2  ;;  %v710_v63 = vpop.f32.mrf.mxu3  ;;  %1458 = vtanh.f32 %v751_v5 }
 0x2b5   :  { %v2395_v63 = vld [vmem:[#allocation6_spill] sm:$0xff] }
 0x2b7   :  { %v1453_v20 = vpop.eup %1452 }
 0x2b8   :  { %v1455_v26 = vpop.eup %1454  ;;  %v744_v16 = vadd.f32 1.0, %v1453_v20  ;;  %v2396_v20 = vld [vmem:[#allocation8_spill] sm:$0xff]  ;;  %v851_v61 = vpop.permute.xlu1 %850 }
 0x2b9   :  { %v748_v34 = vadd.f32 1.0, %v1455_v26  ;;  %v1457_v31 = vpop.eup %1456  ;;  %vm852_vm7 = vcmp.eq.s32.totalorder %v851_v61, 1 }
 0x2ba   :  { %v745_v47 = vmul.f32 0.5, %v744_v16  ;;  %v1459_v32 = vpop.eup %1458 }
 0x2bb   :  { %v749_v23 = vmul.f32 0.5, %v748_v34  ;;  %v753_v40 = vadd.f32 1.0, %v1459_v32 }
 0x2bc   :  { %v756_v12 = vmul.f32 %v1457_v31, %v745_v47 }
 0x2bd   :  { %v755_v60 = vmul.f32 %v749_v23, %v2161_v48  ;;  %v754_v21 = vmul.f32 0.5, %v753_v40  ;;  %v935_v23 = vsel %vm934_vm5, 1, %v2392_v30 }
 0x2be   :  { %937 = vperm.xlu2 %1430, %v935_v23  }
 0x2bf   :  { %v757_v15 = vadd.f32 %v756_v12, %v755_v60  ;;  %v2397_v12 = vld [vmem:[#allocation17_spill] sm:$0xff]  ;;  %v2398_v60 = vld [vmem:[#allocation7_spill] sm:$0xff] }
 0x2c1   :  { %1460 = vtanh.f32 %v757_v15  ;;  %v2206_v7 = vsel %vm765_vm4, %v757_v15, %v2161_v48 }
 0x2c7   :  { %v1461_v35 = vpop.eup %1460 }
 0x2c8   :  { %v759_v37 = vmul.f32 %v1461_v35, %v754_v21  ;;  %v1022_v35 = vsel %vm1021_vm6, 1, %v2392_v30 }
 0x2c9   :  { %1024 = vperm.xlu2 %1430, %v1022_v35  }
 0x2ca   :  { %v2209_v24 = vsel %vm765_vm4, %v759_v37, %v2164_v50 }
 0x2cb   :  { %v772_v51 = vpack.c.bf16 %v2209_v24, %v2209_v24 }
 0x2cd   :  { %781 = vmatmul.bf16.vlgmr.msrb.gmra.mxu2 %v772_v51  ;;  %794 = vmatmul.bf16.vlgmr.msrb.gmra.mxu3 %v772_v51 }
 0x2ce   :  { %807 = vmatmul.bf16.vlgmr.msra.gmra.mxu0 %v772_v51  ;;  %820 = vmatmul.bf16.vlgmr.msrb.gmra.mxu1 %v772_v51 }
 0x2cf   :  { %947 = vmatpush.bf16.msrb.mxu2 %v1613_v33  ;;  %960 = vmatpush.bf16.msrb.mxu3 %v1655_v49 }
 0x2d0   :  { %973 = vmatpush.bf16.msra.mxu0 %v1690_v62  ;;  %986 = vmatpush.bf16.msrb.mxu1 %v1739_v19 }
 0x2d3   :  { %948 = vmatpush.bf16.msrb.mxu2 %v1628_v38  ;;  %961 = vmatpush.bf16.msrb.mxu3 %v1696_v1 }
 0x2d4   :  { %974 = vmatpush.bf16.msra.mxu0 %v1735_v17  ;;  %987 = vmatpush.bf16.msrb.mxu1 %v1761_v29 }
 0x2d7   :  { %949 = vmatpush.bf16.msrb.mxu2 %v1637_v42  ;;  %962 = vmatpush.bf16.msrb.mxu3 %v1754_v25 }
 0x2d8   :  { %975 = vmatpush.bf16.msra.mxu0 %v1780_v36  ;;  %988 = vmatpush.bf16.msrb.mxu1 %v1793_v44 }
 0x2db   :  { %950 = vmatpush.bf16.msrb.mxu2 %v1646_v45  ;;  %963 = vmatpush.bf16.msrb.mxu3 %v1791_v43 }
 0x2dc   :  { %976 = vmatpush.bf16.msra.mxu0 %v1814_v57  ;;  %989 = vmatpush.bf16.msrb.mxu1 %v1811_v55 }
 0x2df   :  { %951 = vmatpush.bf16.msrb.mxu2 %v1663_v52  ;;  %964 = vmatpush.bf16.msrb.mxu3 %v1833_v0 }
 0x2e0   :  { %977 = vmatpush.bf16.msra.mxu0 %v1879_v22  ;;  %990 = vmatpush.bf16.msrb.mxu1 %v1841_v4 }
 0x2e3   :  { %952 = vmatpush.bf16.msrb.mxu2 %v1685_v59  ;;  %965 = vmatpush.bf16.msrb.mxu3 %v1854_v11 }
 0x2e4   :  { %978 = vmatpush.bf16.msra.mxu0 %v1921_v46  ;;  %991 = vmatpush.bf16.msrb.mxu1 %v1861_v14 }
 0x2e7   :  { %953 = vmatpush.bf16.msrb.mxu2 %v1707_v6  ;;  %966 = vmatpush.bf16.msrb.mxu3 %v1890_v27 }
 0x2e8   :  { %979 = vmatpush.bf16.msra.mxu0 %v1943_v56  ;;  %992 = vmatpush.bf16.msrb.mxu1 %v1892_v28 }
 0x2eb   :  { %954 = vmatpush.bf16.msrb.mxu2 %v1737_v18  ;;  %967 = vmatpush.bf16.msrb.mxu3 %v1917_v53 }
 0x2ec   :  { %980 = vmatpush.bf16.msra.mxu0 %v1950_v58  ;;  %993 = vmatpush.bf16.msrb.mxu1 %v1919_v41 }
 0x34b   :  { %v808_v48 = vpop.f32.mrf.mxu0  ;;  %v821_v50 = vpop.f32.mrf.mxu1 }
 0x34c   :  { %v827_v8 = vadd.f32 %v808_v48, %v2397_v12  ;;  %v828_v32 = vadd.f32 %v821_v50, %v2398_v60 }
 0x34e   :  { %v838_v21 = vmul.f32 0.5, %v828_v32 }
 0x350   :  { %v782_v39 = vpop.f32.mrf.mxu2  ;;  %v795_v54 = vpop.f32.mrf.mxu3 }
 0x351   :  { %v825_v5 = vadd.f32 %v782_v39, %v2395_v63  ;;  %v826_v26 = vadd.f32 %v795_v54, %v2396_v20 }
 0x353   :  { %v829_v16 = vmul.f32 0.5, %v825_v5  ;;  %v833_v34 = vmul.f32 0.5, %v826_v26  ;;  %v810_v47 = vpop.f32.mrf.mxu0  ;;  %v823_v31 = vpop.f32.mrf.mxu1 }
 0x355   :  { %1462 = vtanh.f32 %v829_v16 }
 0x356   :  { %1464 = vtanh.f32 %v833_v34 }
 0x357   :  { %1466 = vtanh.f32 %v827_v8 }
 0x358   :  { %v784_v15 = vpop.f32.mrf.mxu2  ;;  %v797_v40 = vpop.f32.mrf.mxu3  ;;  %1468 = vtanh.f32 %v838_v21  ;;  %v2400_v21 = vld [vmem:[#allocation11_spill] sm:$0xff] }
 0x359   :  { %v2399_v15 = vld [vmem:[#allocation9_spill] sm:$0xff] }
 0x35b   :  { %v1463_v37 = vpop.eup %1462 }
 0x35c   :  { %v1465_v51 = vpop.eup %1464  ;;  %v831_v39 = vadd.f32 1.0, %v1463_v37 }
 0x35d   :  { %v835_v54 = vadd.f32 1.0, %v1465_v51  ;;  %v1467_v48 = vpop.eup %1466 }
 0x35e   :  { %v832_v63 = vmul.f32 0.5, %v831_v39  ;;  %v1469_v26 = vpop.eup %1468 }
 0x35f   :  { %v836_v5 = vmul.f32 0.5, %v835_v54  ;;  %v840_v30 = vadd.f32 1.0, %v1469_v26 }
 0x360   :  { %v843_v50 = vmul.f32 %v1467_v48, %v832_v63  ;;  %v2401_v63 = vld [vmem:[#allocation19_spill] sm:$0xff] }
 0x361   :  { %v842_v20 = vmul.f32 %v836_v5, %v2206_v7  ;;  %v841_v47 = vmul.f32 0.5, %v840_v30  ;;  %v2402_v5 = vld [vmem:[#allocation10_spill] sm:$0xff] }
 0x363   :  { %v844_v16 = vadd.f32 %v843_v50, %v842_v20 }
 0x365   :  { %1470 = vtanh.f32 %v844_v16  ;;  %v2255_v34 = vsel %vm852_vm7, %v844_v16, %v2206_v7 }
 0x36b   :  { %v1471_v31 = vpop.eup %1470 }
 0x36c   :  { %v846_v23 = vmul.f32 %v1471_v31, %v841_v47 }
 0x36e   :  { %v2258_v12 = vsel %vm852_vm7, %v846_v23, %v2209_v24 }
 0x36f   :  { %v859_v8 = vpack.c.bf16 %v2258_v12, %v2258_v12 }
 0x371   :  { %868 = vmatmul.bf16.vlgmr.msra.gmra.mxu2 %v859_v8  ;;  %881 = vmatmul.bf16.vlgmr.msra.gmra.mxu3 %v859_v8 }
 0x372   :  { %894 = vmatmul.bf16.vlgmr.msrb.gmra.mxu0 %v859_v8  ;;  %907 = vmatmul.bf16.vlgmr.msra.gmra.mxu1 %v859_v8 }
 0x373   :  { %1034 = vmatpush.bf16.msra.mxu2 %v1613_v33  ;;  %1047 = vmatpush.bf16.msra.mxu3 %v1655_v49 }
 0x374   :  { %1060 = vmatpush.bf16.msrb.mxu0 %v1690_v62  ;;  %1073 = vmatpush.bf16.msra.mxu1 %v1739_v19 }
 0x377   :  { %1035 = vmatpush.bf16.msra.mxu2 %v1628_v38  ;;  %1048 = vmatpush.bf16.msra.mxu3 %v1696_v1 }
 0x378   :  { %1061 = vmatpush.bf16.msrb.mxu0 %v1735_v17  ;;  %1074 = vmatpush.bf16.msra.mxu1 %v1761_v29 }
 0x37b   :  { %1036 = vmatpush.bf16.msra.mxu2 %v1637_v42  ;;  %1049 = vmatpush.bf16.msra.mxu3 %v1754_v25 }
 0x37c   :  { %1062 = vmatpush.bf16.msrb.mxu0 %v1780_v36  ;;  %1075 = vmatpush.bf16.msra.mxu1 %v1793_v44 }
 0x37f   :  { %1037 = vmatpush.bf16.msra.mxu2 %v1646_v45  ;;  %1050 = vmatpush.bf16.msra.mxu3 %v1791_v43 }
 0x380   :  { %1063 = vmatpush.bf16.msrb.mxu0 %v1814_v57  ;;  %1076 = vmatpush.bf16.msra.mxu1 %v1811_v55 }
 0x383   :  { %1038 = vmatpush.bf16.msra.mxu2 %v1663_v52  ;;  %1051 = vmatpush.bf16.msra.mxu3 %v1833_v0 }
 0x384   :  { %1064 = vmatpush.bf16.msrb.mxu0 %v1879_v22  ;;  %1077 = vmatpush.bf16.msra.mxu1 %v1841_v4 }
 0x387   :  { %1039 = vmatpush.bf16.msra.mxu2 %v1685_v59  ;;  %1052 = vmatpush.bf16.msra.mxu3 %v1854_v11 }
 0x388   :  { %1065 = vmatpush.bf16.msrb.mxu0 %v1921_v46  ;;  %1078 = vmatpush.bf16.msra.mxu1 %v1861_v14 }
 0x38b   :  { %1040 = vmatpush.bf16.msra.mxu2 %v1707_v6  ;;  %1053 = vmatpush.bf16.msra.mxu3 %v1890_v27 }
 0x38c   :  { %1066 = vmatpush.bf16.msrb.mxu0 %v1943_v56  ;;  %1079 = vmatpush.bf16.msra.mxu1 %v1892_v28 }
 0x38f   :  { %1041 = vmatpush.bf16.msra.mxu2 %v1737_v18  ;;  %1054 = vmatpush.bf16.msra.mxu3 %v1917_v53 }
 0x390   :  { %1067 = vmatpush.bf16.msrb.mxu0 %v1950_v58  ;;  %1080 = vmatpush.bf16.msra.mxu1 %v1919_v41 }
 0x3ef   :  { %v895_v7 = vpop.f32.mrf.mxu0  ;;  %v908_v24 = vpop.f32.mrf.mxu1 }
 0x3f0   :  { %v914_v48 = vadd.f32 %v895_v7, %v2401_v63  ;;  %v915_v50 = vadd.f32 %v908_v24, %v2402_v5 }
 0x3f2   :  { %v925_v61 = vmul.f32 0.5, %v915_v50 }
 0x3f4   :  { %v869_v60 = vpop.f32.mrf.mxu2  ;;  %v882_v32 = vpop.f32.mrf.mxu3 }
 0x3f5   :  { %v912_v40 = vadd.f32 %v869_v60, %v2399_v15  ;;  %v913_v35 = vadd.f32 %v882_v32, %v2400_v21  ;;  %v938_v32 = vpop.permute.xlu2 %937 }
 0x3f6   :  { %vm939_vm8 = vcmp.eq.s32.totalorder %v938_v32, 1 }
 0x3f7   :  { %v916_v37 = vmul.f32 0.5, %v912_v40  ;;  %v920_v51 = vmul.f32 0.5, %v913_v35  ;;  %v897_v39 = vpop.f32.mrf.mxu0  ;;  %v910_v54 = vpop.f32.mrf.mxu1 }
 0x3f9   :  { %1472 = vtanh.f32 %v916_v37 }
 0x3fa   :  { %1474 = vtanh.f32 %v920_v51 }
 0x3fb   :  { %1476 = vtanh.f32 %v914_v48 }
 0x3fc   :  { %v871_v20 = vpop.f32.mrf.mxu2  ;;  %v884_v26 = vpop.f32.mrf.mxu3  ;;  %1478 = vtanh.f32 %v925_v61 }
 0x3ff   :  { %v1473_v16 = vpop.eup %1472 }
 0x400   :  { %v1475_v30 = vpop.eup %1474  ;;  %v918_v47 = vadd.f32 1.0, %v1473_v16 }
 0x401   :  { %v922_v31 = vadd.f32 1.0, %v1475_v30  ;;  %v1477_v8 = vpop.eup %1476 }
 0x402   :  { %v919_v23 = vmul.f32 0.5, %v918_v47  ;;  %v1479_v24 = vpop.eup %1478  ;;  %v2407_v47 = vld [vmem:[#allocation3_spill] sm:$0xff] }
 0x403   :  { %v923_v60 = vmul.f32 0.5, %v922_v31  ;;  %v927_v35 = vadd.f32 1.0, %v1479_v24 }
 0x404   :  { %v930_v15 = vmul.f32 %v1477_v8, %v919_v23  ;;  %v2408_v23 = vld [vmem:[#allocation18_spill] sm:$0xff] }
 0x405   :  { %v929_v7 = vmul.f32 %v923_v60, %v2255_v34  ;;  %v928_v37 = vmul.f32 0.5, %v927_v35 }
 0x407   :  { %v931_v40 = vadd.f32 %v930_v15, %v929_v7 }
 0x409   :  { %1480 = vtanh.f32 %v931_v40  ;;  %v2300_v21 = vsel %vm939_vm8, %v931_v40, %v2255_v34  ;;  %v2409_v40 = vld [vmem:[#allocation16_spill] sm:$0xff] }
 0x40f   :  { %v1481_v51 = vpop.eup %1480 }
 0x410   :  { %v933_v39 = vmul.f32 %v1481_v51, %v928_v37 }
 0x412   :  { %v2303_v54 = vsel %vm939_vm8, %v933_v39, %v2258_v12 }
 0x413   :  { %v946_v63 = vpack.c.bf16 %v2303_v54, %v2303_v54 }
 0x415   :  { %955 = vmatmul.bf16.vlgmr.msrb.gmra.mxu2 %v946_v63  ;;  %968 = vmatmul.bf16.vlgmr.msrb.gmra.mxu3 %v946_v63 }
 0x416   :  { %981 = vmatmul.bf16.vlgmr.msra.gmra.mxu0 %v946_v63  ;;  %994 = vmatmul.bf16.vlgmr.msrb.gmra.mxu1 %v946_v63 }
 0x417   :  { %1121 = vmatpush.bf16.msrb.mxu2 %v1613_v33  ;;  %1134 = vmatpush.bf16.msrb.mxu3 %v1655_v49  ;;  %v2403_v49 = vld [vmem:[#allocation12_spill] sm:$0xff] }
 0x418   :  { %1147 = vmatpush.bf16.msra.mxu0 %v1690_v62  ;;  %1160 = vmatpush.bf16.msrb.mxu1 %v1739_v19 }
 0x41b   :  { %1122 = vmatpush.bf16.msrb.mxu2 %v1628_v38  ;;  %1135 = vmatpush.bf16.msrb.mxu3 %v1696_v1 }
 0x41c   :  { %1148 = vmatpush.bf16.msra.mxu0 %v1735_v17  ;;  %1161 = vmatpush.bf16.msrb.mxu1 %v1761_v29  ;;  %v2406_v29 = vld [vmem:[#allocation13_spill] sm:$0xff] }
 0x41f   :  { %1123 = vmatpush.bf16.msrb.mxu2 %v1637_v42  ;;  %1136 = vmatpush.bf16.msrb.mxu3 %v1754_v25  ;;  %v2405_v25 = vld [vmem:[#allocation21_spill] sm:$0xff] }
 0x420   :  { %1149 = vmatpush.bf16.msra.mxu0 %v1780_v36  ;;  %1162 = vmatpush.bf16.msrb.mxu1 %v1793_v44 }
 0x423   :  { %1124 = vmatpush.bf16.msrb.mxu2 %v1646_v45  ;;  %1137 = vmatpush.bf16.msrb.mxu3 %v1791_v43 }
 0x424   :  { %1150 = vmatpush.bf16.msra.mxu0 %v1814_v57  ;;  %1163 = vmatpush.bf16.msrb.mxu1 %v1811_v55 }
 0x427   :  { %1125 = vmatpush.bf16.msrb.mxu2 %v1663_v52  ;;  %1138 = vmatpush.bf16.msrb.mxu3 %v1833_v0 }
 0x428   :  { %1151 = vmatpush.bf16.msra.mxu0 %v1879_v22  ;;  %1164 = vmatpush.bf16.msrb.mxu1 %v1841_v4 }
 0x42b   :  { %1126 = vmatpush.bf16.msrb.mxu2 %v1685_v59  ;;  %1139 = vmatpush.bf16.msrb.mxu3 %v1854_v11  ;;  %v2404_v59 = vld [vmem:[#allocation15_spill] sm:$0xff] }
 0x42c   :  { %1152 = vmatpush.bf16.msra.mxu0 %v1921_v46  ;;  %1165 = vmatpush.bf16.msrb.mxu1 %v1861_v14 }
 0x42f   :  { %1127 = vmatpush.bf16.msrb.mxu2 %v1707_v6  ;;  %1140 = vmatpush.bf16.msrb.mxu3 %v1890_v27 }
 0x430   :  { %1153 = vmatpush.bf16.msra.mxu0 %v1943_v56  ;;  %1166 = vmatpush.bf16.msrb.mxu1 %v1892_v28 }
 0x433   :  { %1128 = vmatpush.bf16.msrb.mxu2 %v1737_v18  ;;  %1141 = vmatpush.bf16.msrb.mxu3 %v1917_v53  ;;  %v1025_v53 = vpop.permute.xlu2 %1024 }
 0x434   :  { %1154 = vmatpush.bf16.msra.mxu0 %v1950_v58  ;;  %1167 = vmatpush.bf16.msrb.mxu1 %v1919_v41  ;;  %vm1026_vm9 = vcmp.eq.s32.totalorder %v1025_v53, 1 }
 0x493   :  { %v982_v33 = vpop.f32.mrf.mxu0  ;;  %v995_v38 = vpop.f32.mrf.mxu1 }
 0x494   :  { %v1001_v18 = vadd.f32 %v982_v33, %v2405_v25  ;;  %v1002_v36 = vadd.f32 %v995_v38, %v2406_v29 }
 0x496   :  { %v1012_v55 = vmul.f32 0.5, %v1002_v36 }
 0x498   :  { %v956_v42 = vpop.f32.mrf.mxu2  ;;  %v969_v45 = vpop.f32.mrf.mxu3 }
 0x499   :  { %v999_v52 = vadd.f32 %v956_v42, %v2403_v49  ;;  %v1000_v62 = vadd.f32 %v969_v45, %v2404_v59 }
 0x49b   :  { %v1003_v1 = vmul.f32 0.5, %v999_v52  ;;  %v1007_v6 = vmul.f32 0.5, %v1000_v62  ;;  %v984_v17 = vpop.f32.mrf.mxu0  ;;  %v997_v19 = vpop.f32.mrf.mxu1 }
 0x49c   :  { %v1112_v52 = vpop.permute.xlu0 %1111 }
 0x49d   :  { %1482 = vtanh.f32 %v1003_v1  ;;  %vm1113_vm10 = vcmp.eq.s32.totalorder %v1112_v52, 1 }
 0x49e   :  { %1484 = vtanh.f32 %v1007_v6 }
 0x49f   :  { %1486 = vtanh.f32 %v1001_v18 }
 0x4a0   :  { %v958_v43 = vpop.f32.mrf.mxu2  ;;  %v971_v44 = vpop.f32.mrf.mxu3  ;;  %1488 = vtanh.f32 %v1012_v55 }
 0x4a1   :  { %v2410_v44 = vld [vmem:[#allocation5_spill] sm:$0xff] }
 0x4a2   :  { %v227_v55 = vadd.f32 %v2410_v44, %v2037_v9 }
 0x4a3   :  { %v1483_v57 = vpop.eup %1482 }
 0x4a4   :  { %v1485_v0 = vpop.eup %1484  ;;  %v1005_v4 = vadd.f32 1.0, %v1483_v57 }
 0x4a5   :  { %v1009_v11 = vadd.f32 1.0, %v1485_v0  ;;  %v1487_v22 = vpop.eup %1486 }
 0x4a6   :  { %v1006_v14 = vmul.f32 0.5, %v1005_v4  ;;  %v1489_v46 = vpop.eup %1488 }
 0x4a7   :  { %v1010_v27 = vmul.f32 0.5, %v1009_v11  ;;  %v1014_v34 = vadd.f32 1.0, %v1489_v46  ;;  %v2411_v11 = vld [vmem:[#allocation20_spill] sm:$0xff] }
 0x4a8   :  { %v1017_v28 = vmul.f32 %v1487_v22, %v1006_v14  ;;  %v314_v22 = vadd.f32 %v2147_v3, %v2039_v10 }
 0x4a9   :  { %v1016_v41 = vmul.f32 %v1010_v27, %v2300_v21  ;;  %v1015_v12 = vmul.f32 0.5, %v1014_v34 }
 0x4ab   :  { %v1018_v56 = vadd.f32 %v1017_v28, %v1016_v41 }
 0x4ad   :  { %1490 = vtanh.f32 %v1018_v56  ;;  %v1028_v58 = vsel %vm1026_vm9, %v1018_v56, %v2300_v21 }
 0x4b3   :  { %v1491_v48 = vpop.eup %1490 }
 0x4b4   :  { %v1020_v5 = vmul.f32 %v1491_v48, %v1015_v12 }
 0x4b6   :  { %v1027_v50 = vsel %vm1026_vm9, %v1020_v5, %v2303_v54 }
 0x4b7   :  { %v1033_v20 = vpack.c.bf16 %v1027_v50, %v1027_v50 }
 0x4b9   :  { %1042 = vmatmul.bf16.vlgmr.msra.gmra.mxu2 %v1033_v20  ;;  %1055 = vmatmul.bf16.vlgmr.msra.gmra.mxu3 %v1033_v20 }
 0x4ba   :  { %1068 = vmatmul.bf16.vlgmr.msrb.gmra.mxu0 %v1033_v20  ;;  %1081 = vmatmul.bf16.vlgmr.msra.gmra.mxu1 %v1033_v20 }
 0x537   :  { %v1069_v26 = vpop.f32.mrf.mxu0  ;;  %v1082_v61 = vpop.f32.mrf.mxu1 }
 0x538   :  { %v1088_v24 = vadd.f32 %v1069_v26, %v2105_v13  ;;  %v1089_v21 = vadd.f32 %v1082_v61, %v2409_v40  ;;  %v1199_v61 = vpop.permute.xlu1 %1198 }
 0x539   :  { %vm1200_vm11 = vcmp.eq.s32.totalorder %v1199_v61, 1 }
 0x53a   :  { %v1099_v51 = vmul.f32 0.5, %v1089_v21 }
 0x53c   :  { %v1043_v16 = vpop.f32.mrf.mxu2  ;;  %v1056_v30 = vpop.f32.mrf.mxu3 }
 0x53d   :  { %v1086_v31 = vadd.f32 %v1043_v16, %v2407_v47  ;;  %v1087_v8 = vadd.f32 %v1056_v30, %v2408_v23 }
 0x53f   :  { %v1090_v60 = vmul.f32 0.5, %v1086_v31  ;;  %v1094_v32 = vmul.f32 0.5, %v1087_v8  ;;  %v1071_v15 = vpop.f32.mrf.mxu0  ;;  %v1084_v7 = vpop.f32.mrf.mxu1 }
 0x541   :  { %1492 = vtanh.f32 %v1090_v60 }
 0x542   :  { %1494 = vtanh.f32 %v1094_v32 }
 0x543   :  { %1496 = vtanh.f32 %v1088_v24 }
 0x544   :  { %v1045_v35 = vpop.f32.mrf.mxu2  ;;  %v1058_v37 = vpop.f32.mrf.mxu3  ;;  %1498 = vtanh.f32 %v1099_v51 }
 0x547   :  { %v1493_v39 = vpop.eup %1492 }
 0x548   :  { %v1495_v54 = vpop.eup %1494  ;;  %v1092_v63 = vadd.f32 1.0, %v1493_v39 }
 0x549   :  { %v1096_v33 = vadd.f32 1.0, %v1495_v54  ;;  %v1497_v42 = vpop.eup %1496 }
 0x54a   :  { %v1093_v38 = vmul.f32 0.5, %v1092_v63  ;;  %v1499_v13 = vpop.eup %1498 }
 0x54b   :  { %v1097_v45 = vmul.f32 0.5, %v1096_v33  ;;  %v1101_v6 = vadd.f32 1.0, %v1499_v13 }
 0x54c   :  { %v1104_v49 = vmul.f32 %v1497_v42, %v1093_v38 }
 0x54d   :  { %v1103_v59 = vmul.f32 %v1097_v45, %v1028_v58  ;;  %v1102_v17 = vmul.f32 0.5, %v1101_v6 }
 0x54f   :  { %v1105_v62 = vadd.f32 %v1104_v49, %v1103_v59 }
 0x551   :  { %1500 = vtanh.f32 %v1105_v62  ;;  %v1115_v1 = vsel %vm1113_vm10, %v1105_v62, %v1028_v58 }
 0x557   :  { %v1501_v19 = vpop.eup %1500 }
 0x558   :  { %v1107_v25 = vmul.f32 %v1501_v19, %v1102_v17 }
 0x55a   :  { %v1114_v18 = vsel %vm1113_vm10, %v1107_v25, %v1027_v50 }
 0x55b   :  { %v1120_v29 = vpack.c.bf16 %v1114_v18, %v1114_v18 }
 0x55d   :  { %1129 = vmatmul.bf16.vlgmr.msrb.gmra.mxu2 %v1120_v29  ;;  %1142 = vmatmul.bf16.vlgmr.msrb.gmra.mxu3 %v1120_v29 }
 0x55e   :  { %1155 = vmatmul.bf16.vlgmr.msra.gmra.mxu0 %v1120_v29  ;;  %1168 = vmatmul.bf16.vlgmr.msrb.gmra.mxu1 %v1120_v29 }
 0x5db   :  { %v1156_v36 = vpop.f32.mrf.mxu0  ;;  %v1169_v43 = vpop.f32.mrf.mxu1 }
 0x5dc   :  { %v1175_v46 = vadd.f32 %v1156_v36, %v2107_v2  ;;  %v1176_v56 = vadd.f32 %v1169_v43, %v314_v22 }
 0x5de   :  { %v1186_v9 = vmul.f32 0.5, %v1176_v56 }
 0x5e0   :  { %v1130_v57 = vpop.f32.mrf.mxu2  ;;  %v1143_v0 = vpop.f32.mrf.mxu3 }
 0x5e1   :  { %v1173_v4 = vadd.f32 %v1130_v57, %v227_v55  ;;  %v1174_v14 = vadd.f32 %v1143_v0, %v2411_v11 }
 0x5e3   :  { %v1177_v27 = vmul.f32 0.5, %v1173_v4  ;;  %v1181_v28 = vmul.f32 0.5, %v1174_v14  ;;  %v1158_v53 = vpop.f32.mrf.mxu0  ;;  %v1171_v41 = vpop.f32.mrf.mxu1 }
 0x5e5   :  { %1502 = vtanh.f32 %v1177_v27 }
 0x5e6   :  { %1504 = vtanh.f32 %v1181_v28 }
 0x5e7   :  { %1506 = vtanh.f32 %v1175_v46 }
 0x5e8   :  { %v1132_v58 = vpop.f32.mrf.mxu2  ;;  %v1145_v34 = vpop.f32.mrf.mxu3  ;;  %1508 = vtanh.f32 %v1186_v9 }
 0x5eb   :  { %v1503_v12 = vpop.eup %1502 }
 0x5ec   :  { %v1505_v48 = vpop.eup %1504  ;;  %v1179_v5 = vadd.f32 1.0, %v1503_v12 }
 0x5ed   :  { %v1183_v50 = vadd.f32 1.0, %v1505_v48  ;;  %v1507_v10 = vpop.eup %1506 }
 0x5ee   :  { %v1180_v20 = vmul.f32 0.5, %v1179_v5  ;;  %v1509_v30 = vpop.eup %1508 }
 0x5ef   :  { %v1184_v3 = vmul.f32 0.5, %v1183_v50  ;;  %v1188_v31 = vadd.f32 1.0, %v1509_v30 }
 0x5f0   :  { %v1191_v26 = vmul.f32 %v1507_v10, %v1180_v20 }
 0x5f1   :  { %v1190_v16 = vmul.f32 %v1184_v3, %v1115_v1  ;;  %v1189_v23 = vmul.f32 0.5, %v1188_v31 }
 0x5f3   :  { %v1192_v2 = vadd.f32 %v1191_v26, %v1190_v16 }
 0x5f5   :  { %1510 = vtanh.f32 %v1192_v2  ;;  %v1202_v47 = vsel %vm1200_vm11, %v1192_v2, %v1115_v1 }
 0x5f6   :  { %1204 = vst [vmem:[%s2369_s8] sm:$0xff] %v1202_v47 }
 0x5fb   :  { %v1511_v8 = vpop.eup %1510 }
 0x5fc   :  { %v1194_v60 = vmul.f32 %v1511_v8, %v1189_v23 }
 0x5fe   :  { %v1201_v32 = vsel %vm1200_vm11, %v1194_v60, %v1114_v18 }
 0x5ff   :  { %1203 = vst [vmem:[%s2370_s7] sm:$0xff] %v1201_v32 }

</bundles_post_ra>
